<compile_context>
chip_gen: v6e
topology: v6e:2x2x1
jax: 0.10.0
libtpu: 0.0.40
codegen_flags: <defaults>
</compile_context>

<pallas_src>
import jax
import jax.numpy as jnp
import numpy as np
from jax import lax
from jax.experimental import pallas as pl
from jax.experimental.pallas import tpu as pltpu

# ----------------------------- model dimensions -----------------------------
E_GNN = 32          # embedding_size_gnn
E = 32              # embedding_size
O = 128             # output_size (spectrum bins), power of two
NUM_SKIP = 7
B_TILE = 128        # graphs per grid step (fills MXU sublanes; batch axis is 'parallel')
LOG2_O = O.bit_length() - 1   # 7


# --------------------------------- kernel -----------------------------------
def _head_kernel(x_ref, anchor_ref,
                 wbn_ref, bbn_ref,
                 sw1_ref, sb1_ref, sw2_ref, sb2_ref,
                 wout_ref, bout_ref,
                 out_ref):
    f32 = jnp.float32

    x = x_ref[...]                                                   # (B_TILE, E_gnn)

    # bottleneck Linear
    h = jnp.dot(x, wbn_ref[...], preferred_element_type=f32) + bbn_ref[...]

    # 7 residual SKIP blocks, statically unrolled.
    # (each bias is distinct, so each (1,E)->(B,E) broadcast is used exactly once)
    for i in range(NUM_SKIP):
        t = jnp.maximum(h, 0.0)
        t = jnp.dot(t, sw1_ref[i], preferred_element_type=f32) + sb1_ref[i]
        t = jnp.maximum(t, 0.0)
        t = jnp.dot(t, sw2_ref[i], preferred_element_type=f32) + sb2_ref[i]
        h = h + t

    h = jnp.maximum(h, 0.0)                                          # relu_out_resnet

    # Fused output heads: one (E, 3*O) matmul, lane-dense (B, 384) result.
    # Columns of the backward head were flipped at pack time, so z[:, O:2O]
    # already holds bwd[:, ::-1].
    z = jnp.dot(h, wout_ref[...], preferred_element_type=f32) + bout_ref[...]
    fwd = z[:, 0 * O:1 * O]
    bwdf = z[:, 1 * O:2 * O]                 # bwdf[b, k] == bwd[b, O-1-k]
    gate = jax.nn.sigmoid(z[:, 2 * O:3 * O])  # logistic -> EUP path

    anchor = anchor_ref[...]                                         # (B_TILE, 1) int32
    bp = fwd.shape[0]
    col = lax.broadcasted_iota(jnp.int32, (bp, O), 1)

    # mask_prediction_by_mass: keep bins with index <= anchor
    keep_fwd = col <= anchor
    fwd = jnp.where(keep_fwd, fwd, 0.0)

    # reverse_prediction: rev[b, j] = bwd[b, anchor_b - j]  (zero outside [0, O))
    #                               = bwdf[b, j + (O - 1 - anchor_b)]
    # i.e. a per-row lane rotation of bwdf by shift_b = (anchor_b + 1) mod O
    # (np.roll convention). Done as a barrel shifter: 7 static pltpu.roll's +
    # per-row bit selects -- no (B, O, O) one-hot, no gather, fully vectorized.
    shift = (anchor + 1) & (O - 1)                                   # (B_TILE, 1) int32

    # Cheap probe (one extra i32 roll) that makes the barrel shifter independent
    # of the hardware rotate-direction convention: under np.roll semantics
    # roll(iota, 1)[:, 0] == O-1; otherwise use the complementary shift.
    probe0 = pltpu.roll(col, shift=1, axis=1)[:, 0:1]                # (B_TILE, 1)
    is_np_roll = probe0 == (O - 1)
    shift = jnp.where(is_np_roll, shift, (O - shift) & (O - 1))

    rev = bwdf
    for p in range(LOG2_O):
        rolled = pltpu.roll(rev, shift=1 << p, axis=1)
        take = (shift & (1 << p)) != 0                               # (B_TILE, 1) bool
        rev = jnp.where(take, rolled, rev)

    keep_rev = keep_fwd & (col > anchor - O)                         # anchor-O < j <= anchor
    rev = jnp.where(keep_rev, rev, 0.0)

    out = gate * fwd + (1.0 - gate) * rev
    out_ref[...] = jnp.maximum(out, 0.0)                             # relu_out


# ------------------------------ pallas wrapper -------------------------------
def _const_spec(shape):
    nd = len(shape)
    return pl.BlockSpec(shape, lambda i, _nd=nd: (0,) * _nd)


def bidirectional_head(x_nodes, batch_index, molecular_weight, mass_shift, params,
                       num_graphs):
    """Forward pass of BIDIRECTIONAL_HEAD (use_graph=True). Returns float32 on device."""
    n = x_nodes.shape[0]

    # gap = global mean pool over the graph batch (plain-JAX glue)
    sums = jax.ops.segment_sum(x_nodes, batch_index, num_segments=num_graphs)
    counts = jax.ops.segment_sum(jnp.ones((n,), jnp.float32), batch_index,
                                 num_segments=num_graphs)
    pooled = (sums / jnp.maximum(counts, 1.0)[:, None]).astype(jnp.float32)  # (B, E_gnn)

    # pad the graph batch up to a multiple of the kernel batch tile
    b_pad = max(B_TILE, ((num_graphs + B_TILE - 1) // B_TILE) * B_TILE)
    assert num_graphs <= b_pad, "num_graphs exceeds padded batch"
    pooled_p = jnp.zeros((b_pad, E_GNN), jnp.float32).at[:num_graphs].set(pooled)
    anchor = jnp.round(molecular_weight).astype(jnp.int32) + jnp.int32(mass_shift)
    anchor_p = jnp.zeros((b_pad, 1), jnp.int32).at[:num_graphs, 0].set(anchor)

    weights = (params["wbn"], params["bbn"],
               params["sw1"], params["sb1"], params["sw2"], params["sb2"],
               params["wout"], params["bout"])

    grid = (b_pad // B_TILE,)
    in_specs = [
        pl.BlockSpec((B_TILE, E_GNN), lambda i: (i, 0)),   # pooled embeddings
        pl.BlockSpec((B_TILE, 1), lambda i: (i, 0)),       # per-graph mass anchors
    ] + [_const_spec(w.shape) for w in weights]            # weights resident across grid

    out = pl.pallas_call(
        _head_kernel,
        out_shape=jax.ShapeDtypeStruct((b_pad, O), jnp.float32),
        grid=grid,
        in_specs=in_specs,
        out_specs=pl.BlockSpec((B_TILE, O), lambda i: (i, 0)),
        compiler_params=pltpu.CompilerParams(
            dimension_semantics=("parallel",)),            # megacore split on v7x
    )(pooled_p, anchor_p, *weights)

    # TODO(synk): torch casts to float64; TPU has no native f64 -> cast on host.
    return out[:num_graphs]


# ------------------------- deterministic parameter init ----------------------
def init_params(key):
    def linear(k, fan_in, fan_out):
        kw, kb = jax.random.split(k)
        lim = 1.0 / float(fan_in) ** 0.5
        w = jax.random.uniform(kw, (fan_in, fan_out), jnp.float32, -lim, lim)
        b = jax.random.uniform(kb, (1, fan_out), jnp.float32, -lim, lim)
        return w, b

    keys = jax.random.split(key, 4 + 2 * NUM_SKIP)
    wbn, bbn = linear(keys[0], E_GNN, E)

    sw1, sb1, sw2, sb2 = [], [], [], []
    for i in range(NUM_SKIP):
        w1, b1 = linear(keys[1 + 2 * i], E, E)
        w2, b2 = linear(keys[2 + 2 * i], E, E)
        sw1.append(w1); sb1.append(b1); sw2.append(w2); sb2.append(b2)

    wf, bf = linear(keys[1 + 2 * NUM_SKIP], E, O)
    wb, bb = linear(keys[2 + 2 * NUM_SKIP], E, O)
    wg, bg = linear(keys[3 + 2 * NUM_SKIP], E, O)

    # Pack the three output heads into one (E, 3*O) weight / (1, 3*O) bias and fold
    # the lane flip of the backward head into its columns (kernel never reverses data).
    wout = jnp.concatenate([wf, wb[:, ::-1], wg], axis=1)
    bout = jnp.concatenate([bf, bb[:, ::-1], bg], axis=1)

    return dict(
        wbn=wbn, bbn=bbn,
        sw1=jnp.stack(sw1), sb1=jnp.stack(sb1),            # (7, E, E), (7, 1, E)
        sw2=jnp.stack(sw2), sb2=jnp.stack(sb2),
        wf=wf, bf=bf, wb=wb, bb=bb, wg=wg, bg=bg,          # raw copies for the reference
        wout=wout, bout=bout,                              # packed/fused for the kernel
    )


# ------------------------------ pure-JAX reference ---------------------------
def _reference(x_nodes, batch_index, molecular_weight, mass_shift, params, num_graphs):
    n = x_nodes.shape[0]
    sums = jax.ops.segment_sum(x_nodes, batch_index, num_segments=num_graphs)
    counts = jax.ops.segment_sum(jnp.ones((n,), jnp.float32), batch_index,
                                 num_segments=num_graphs)
    h = sums / jnp.maximum(counts, 1.0)[:, None]
    h = h @ params["wbn"] + params["bbn"]
    for i in range(NUM_SKIP):
        t = jnp.maximum(h, 0.0)
        t = t @ params["sw1"][i] + params["sb1"][i]
        t = jnp.maximum(t, 0.0)
        t = t @ params["sw2"][i] + params["sb2"][i]
        h = h + t
    h = jnp.maximum(h, 0.0)
    fwd = h @ params["wf"] + params["bf"]
    bwd = h @ params["wb"] + params["bb"]
    gate = jax.nn.sigmoid(h @ params["wg"] + params["bg"])
    anchor = jnp.round(molecular_weight).astype(jnp.int32) + mass_shift       # (B,)
    col = jnp.arange(O)[None, :]
    fwd = fwd * (col <= anchor[:, None]).astype(jnp.float32)
    idx = anchor[:, None] - col                                               # (B, O)
    valid = (idx >= 0) & (idx < O)
    rev = jnp.take_along_axis(bwd, jnp.clip(idx, 0, O - 1), axis=1) * valid
    return jnp.maximum(gate * fwd + (1.0 - gate) * rev, 0.0)


# ----------------------------------- main ------------------------------------
if __name__ == "__main__":
    key = jax.random.PRNGKey(0)
    k_param, k_x = jax.random.split(key)

    params = init_params(k_param)

    # two molecular graphs: 6 + 4 nodes
    num_graphs = 2
    x_nodes = jax.random.normal(k_x, (10, E_GNN), jnp.float32)
    batch_index = jnp.array([0, 0, 0, 0, 0, 0, 1, 1, 1, 1], jnp.int32)
    molecular_weight = jnp.array([60.3, 95.7], jnp.float32)
    mass_shift = 1

    out = bidirectional_head(x_nodes, batch_index, molecular_weight, mass_shift,
                             params, num_graphs)
    out = jax.block_until_ready(out)

    ref = _reference(x_nodes, batch_index, molecular_weight, mass_shift,
                     params, num_graphs)

    # host-side float64 cast (mirrors torch's .type(torch.float64))
    out64 = np.asarray(out, dtype=np.float64)
    ref64 = np.asarray(ref, dtype=np.float64)

    assert out64.shape == (num_graphs, O) and out64.dtype == np.float64
    assert np.allclose(out64, ref64, rtol=1e-4, atol=1e-4), "mismatch vs reference"

    print("KERNEL_OK")
</pallas_src>

<mosaic_0001>
module attributes {stable_mosaic.version = 11 : i64} {
  func.func @_head_kernel(%arg0: i32, %arg1: memref<128x32xf32, #tpu.memory_space<vmem>>, %arg2: memref<128x1xi32, #tpu.memory_space<vmem>>, %arg3: memref<32x32xf32, #tpu.memory_space<vmem>>, %arg4: memref<1x32xf32, #tpu.memory_space<vmem>>, %arg5: memref<7x32x32xf32, #tpu.memory_space<vmem>>, %arg6: memref<7x1x32xf32, #tpu.memory_space<vmem>>, %arg7: memref<7x32x32xf32, #tpu.memory_space<vmem>>, %arg8: memref<7x1x32xf32, #tpu.memory_space<vmem>>, %arg9: memref<32x384xf32, #tpu.memory_space<vmem>>, %arg10: memref<1x384xf32, #tpu.memory_space<vmem>>, %arg11: memref<128x128xf32, #tpu.memory_space<vmem>>) attributes {dimension_semantics = [#tpu.dimension_semantics<parallel>], iteration_bounds = array<i64: 1>, scalar_prefetch = 0 : i64, scratch_operands = 0 : i64, tpu.core_type = #tpu.core_type<tc>, window_params = [{transform_indices = @transform_0, window_bounds = array<i64: 128, 32>}, {transform_indices = @transform_1, window_bounds = array<i64: 128, 1>}, {pipeline_mode = #tpu.pipeline_mode<synchronous>, transform_indices = @transform_2, window_bounds = array<i64: 32, 32>}, {pipeline_mode = #tpu.pipeline_mode<synchronous>, transform_indices = @transform_3, window_bounds = array<i64: 1, 32>}, {pipeline_mode = #tpu.pipeline_mode<synchronous>, transform_indices = @transform_4, window_bounds = array<i64: 7, 32, 32>}, {pipeline_mode = #tpu.pipeline_mode<synchronous>, transform_indices = @transform_5, window_bounds = array<i64: 7, 1, 32>}, {pipeline_mode = #tpu.pipeline_mode<synchronous>, transform_indices = @transform_6, window_bounds = array<i64: 7, 32, 32>}, {pipeline_mode = #tpu.pipeline_mode<synchronous>, transform_indices = @transform_7, window_bounds = array<i64: 7, 1, 32>}, {pipeline_mode = #tpu.pipeline_mode<synchronous>, transform_indices = @transform_8, window_bounds = array<i64: 32, 384>}, {pipeline_mode = #tpu.pipeline_mode<synchronous>, transform_indices = @transform_9, window_bounds = array<i64: 1, 384>}, {transform_indices = @transform_10, window_bounds = array<i64: 128, 128>}]} {
    %c0 = arith.constant 0 : index
    %c0_0 = arith.constant 0 : index
    %0 = vector.load %arg1[%c0, %c0_0] : memref<128x32xf32, #tpu.memory_space<vmem>>, vector<128x32xf32>
    %c0_1 = arith.constant 0 : index
    %c0_2 = arith.constant 0 : index
    %1 = vector.load %arg3[%c0_1, %c0_2] : memref<32x32xf32, #tpu.memory_space<vmem>>, vector<32x32xf32>
    %cst = arith.constant dense<0.000000e+00> : vector<128x32xf32>
    %2 = tpu.matmul %0, %1, %cst {dimension_numbers = #tpu.dot_dimension_numbers<[1], [0], [0], [1], [0, 0, 1, 1], [], []>} : vector<128x32xf32>, vector<32x32xf32>, vector<128x32xf32> -> vector<128x32xf32>
    %c0_3 = arith.constant 0 : index
    %c0_4 = arith.constant 0 : index
    %3 = vector.load %arg4[%c0_3, %c0_4] : memref<1x32xf32, #tpu.memory_space<vmem>>, vector<1x32xf32>
    %4 = vector.broadcast %3 : vector<1x32xf32> to vector<128x32xf32>
    %5 = arith.addf %2, %4 : vector<128x32xf32>
    %cst_5 = arith.constant 0.000000e+00 : f32
    %6 = vector.broadcast %cst_5 : f32 to vector<128x32xf32>
    %7 = arith.maximumf %5, %6 : vector<128x32xf32>
    %c0_6 = arith.constant 0 : index
    %c0_7 = arith.constant 0 : index
    %c0_8 = arith.constant 0 : index
    %8 = vector.load %arg5[%c0_6, %c0_7, %c0_8] : memref<7x32x32xf32, #tpu.memory_space<vmem>>, vector<1x32x32xf32>
    %9 = vector.shape_cast %8 : vector<1x32x32xf32> to vector<32x32xf32>
    %cst_9 = arith.constant dense<0.000000e+00> : vector<128x32xf32>
    %10 = tpu.matmul %7, %9, %cst_9 {dimension_numbers = #tpu.dot_dimension_numbers<[1], [0], [0], [1], [0, 0, 1, 1], [], []>} : vector<128x32xf32>, vector<32x32xf32>, vector<128x32xf32> -> vector<128x32xf32>
    %c0_10 = arith.constant 0 : index
    %c0_11 = arith.constant 0 : index
    %c0_12 = arith.constant 0 : index
    %11 = vector.load %arg6[%c0_10, %c0_11, %c0_12] : memref<7x1x32xf32, #tpu.memory_space<vmem>>, vector<1x1x32xf32>
    %12 = vector.shape_cast %11 : vector<1x1x32xf32> to vector<1x32xf32>
    %13 = vector.broadcast %12 : vector<1x32xf32> to vector<128x32xf32>
    %14 = arith.addf %10, %13 : vector<128x32xf32>
    %cst_13 = arith.constant 0.000000e+00 : f32
    %15 = vector.broadcast %cst_13 : f32 to vector<128x32xf32>
    %16 = arith.maximumf %14, %15 : vector<128x32xf32>
    %c0_14 = arith.constant 0 : index
    %c0_15 = arith.constant 0 : index
    %c0_16 = arith.constant 0 : index
    %17 = vector.load %arg7[%c0_14, %c0_15, %c0_16] : memref<7x32x32xf32, #tpu.memory_space<vmem>>, vector<1x32x32xf32>
    %18 = vector.shape_cast %17 : vector<1x32x32xf32> to vector<32x32xf32>
    %cst_17 = arith.constant dense<0.000000e+00> : vector<128x32xf32>
    %19 = tpu.matmul %16, %18, %cst_17 {dimension_numbers = #tpu.dot_dimension_numbers<[1], [0], [0], [1], [0, 0, 1, 1], [], []>} : vector<128x32xf32>, vector<32x32xf32>, vector<128x32xf32> -> vector<128x32xf32>
    %c0_18 = arith.constant 0 : index
    %c0_19 = arith.constant 0 : index
    %c0_20 = arith.constant 0 : index
    %20 = vector.load %arg8[%c0_18, %c0_19, %c0_20] : memref<7x1x32xf32, #tpu.memory_space<vmem>>, vector<1x1x32xf32>
    %21 = vector.shape_cast %20 : vector<1x1x32xf32> to vector<1x32xf32>
    %22 = vector.broadcast %21 : vector<1x32xf32> to vector<128x32xf32>
    %23 = arith.addf %19, %22 : vector<128x32xf32>
    %24 = arith.addf %5, %23 : vector<128x32xf32>
    %cst_21 = arith.constant 0.000000e+00 : f32
    %25 = vector.broadcast %cst_21 : f32 to vector<128x32xf32>
    %26 = arith.maximumf %24, %25 : vector<128x32xf32>
    %c1 = arith.constant 1 : index
    %c0_22 = arith.constant 0 : index
    %c0_23 = arith.constant 0 : index
    %27 = vector.load %arg5[%c1, %c0_22, %c0_23] : memref<7x32x32xf32, #tpu.memory_space<vmem>>, vector<1x32x32xf32>
    %28 = vector.shape_cast %27 : vector<1x32x32xf32> to vector<32x32xf32>
    %cst_24 = arith.constant dense<0.000000e+00> : vector<128x32xf32>
    %29 = tpu.matmul %26, %28, %cst_24 {dimension_numbers = #tpu.dot_dimension_numbers<[1], [0], [0], [1], [0, 0, 1, 1], [], []>} : vector<128x32xf32>, vector<32x32xf32>, vector<128x32xf32> -> vector<128x32xf32>
    %c1_25 = arith.constant 1 : index
    %c0_26 = arith.constant 0 : index
    %c0_27 = arith.constant 0 : index
    %30 = vector.load %arg6[%c1_25, %c0_26, %c0_27] : memref<7x1x32xf32, #tpu.memory_space<vmem>>, vector<1x1x32xf32>
    %31 = vector.shape_cast %30 : vector<1x1x32xf32> to vector<1x32xf32>
    %32 = vector.broadcast %31 : vector<1x32xf32> to vector<128x32xf32>
    %33 = arith.addf %29, %32 : vector<128x32xf32>
    %cst_28 = arith.constant 0.000000e+00 : f32
    %34 = vector.broadcast %cst_28 : f32 to vector<128x32xf32>
    %35 = arith.maximumf %33, %34 : vector<128x32xf32>
    %c1_29 = arith.constant 1 : index
    %c0_30 = arith.constant 0 : index
    %c0_31 = arith.constant 0 : index
    %36 = vector.load %arg7[%c1_29, %c0_30, %c0_31] : memref<7x32x32xf32, #tpu.memory_space<vmem>>, vector<1x32x32xf32>
    %37 = vector.shape_cast %36 : vector<1x32x32xf32> to vector<32x32xf32>
    %cst_32 = arith.constant dense<0.000000e+00> : vector<128x32xf32>
    %38 = tpu.matmul %35, %37, %cst_32 {dimension_numbers = #tpu.dot_dimension_numbers<[1], [0], [0], [1], [0, 0, 1, 1], [], []>} : vector<128x32xf32>, vector<32x32xf32>, vector<128x32xf32> -> vector<128x32xf32>
    %c1_33 = arith.constant 1 : index
    %c0_34 = arith.constant 0 : index
    %c0_35 = arith.constant 0 : index
    %39 = vector.load %arg8[%c1_33, %c0_34, %c0_35] : memref<7x1x32xf32, #tpu.memory_space<vmem>>, vector<1x1x32xf32>
    %40 = vector.shape_cast %39 : vector<1x1x32xf32> to vector<1x32xf32>
    %41 = vector.broadcast %40 : vector<1x32xf32> to vector<128x32xf32>
    %42 = arith.addf %38, %41 : vector<128x32xf32>
    %43 = arith.addf %24, %42 : vector<128x32xf32>
    %cst_36 = arith.constant 0.000000e+00 : f32
    %44 = vector.broadcast %cst_36 : f32 to vector<128x32xf32>
    %45 = arith.maximumf %43, %44 : vector<128x32xf32>
    %c2 = arith.constant 2 : index
    %c0_37 = arith.constant 0 : index
    %c0_38 = arith.constant 0 : index
    %46 = vector.load %arg5[%c2, %c0_37, %c0_38] : memref<7x32x32xf32, #tpu.memory_space<vmem>>, vector<1x32x32xf32>
    %47 = vector.shape_cast %46 : vector<1x32x32xf32> to vector<32x32xf32>
    %cst_39 = arith.constant dense<0.000000e+00> : vector<128x32xf32>
    %48 = tpu.matmul %45, %47, %cst_39 {dimension_numbers = #tpu.dot_dimension_numbers<[1], [0], [0], [1], [0, 0, 1, 1], [], []>} : vector<128x32xf32>, vector<32x32xf32>, vector<128x32xf32> -> vector<128x32xf32>
    %c2_40 = arith.constant 2 : index
    %c0_41 = arith.constant 0 : index
    %c0_42 = arith.constant 0 : index
    %49 = vector.load %arg6[%c2_40, %c0_41, %c0_42] : memref<7x1x32xf32, #tpu.memory_space<vmem>>, vector<1x1x32xf32>
    %50 = vector.shape_cast %49 : vector<1x1x32xf32> to vector<1x32xf32>
    %51 = vector.broadcast %50 : vector<1x32xf32> to vector<128x32xf32>
    %52 = arith.addf %48, %51 : vector<128x32xf32>
    %cst_43 = arith.constant 0.000000e+00 : f32
    %53 = vector.broadcast %cst_43 : f32 to vector<128x32xf32>
    %54 = arith.maximumf %52, %53 : vector<128x32xf32>
    %c2_44 = arith.constant 2 : index
    %c0_45 = arith.constant 0 : index
    %c0_46 = arith.constant 0 : index
    %55 = vector.load %arg7[%c2_44, %c0_45, %c0_46] : memref<7x32x32xf32, #tpu.memory_space<vmem>>, vector<1x32x32xf32>
    %56 = vector.shape_cast %55 : vector<1x32x32xf32> to vector<32x32xf32>
    %cst_47 = arith.constant dense<0.000000e+00> : vector<128x32xf32>
    %57 = tpu.matmul %54, %56, %cst_47 {dimension_numbers = #tpu.dot_dimension_numbers<[1], [0], [0], [1], [0, 0, 1, 1], [], []>} : vector<128x32xf32>, vector<32x32xf32>, vector<128x32xf32> -> vector<128x32xf32>
    %c2_48 = arith.constant 2 : index
    %c0_49 = arith.constant 0 : index
    %c0_50 = arith.constant 0 : index
    %58 = vector.load %arg8[%c2_48, %c0_49, %c0_50] : memref<7x1x32xf32, #tpu.memory_space<vmem>>, vector<1x1x32xf32>
    %59 = vector.shape_cast %58 : vector<1x1x32xf32> to vector<1x32xf32>
    %60 = vector.broadcast %59 : vector<1x32xf32> to vector<128x32xf32>
    %61 = arith.addf %57, %60 : vector<128x32xf32>
    %62 = arith.addf %43, %61 : vector<128x32xf32>
    %cst_51 = arith.constant 0.000000e+00 : f32
    %63 = vector.broadcast %cst_51 : f32 to vector<128x32xf32>
    %64 = arith.maximumf %62, %63 : vector<128x32xf32>
    %c3 = arith.constant 3 : index
    %c0_52 = arith.constant 0 : index
    %c0_53 = arith.constant 0 : index
    %65 = vector.load %arg5[%c3, %c0_52, %c0_53] : memref<7x32x32xf32, #tpu.memory_space<vmem>>, vector<1x32x32xf32>
    %66 = vector.shape_cast %65 : vector<1x32x32xf32> to vector<32x32xf32>
    %cst_54 = arith.constant dense<0.000000e+00> : vector<128x32xf32>
    %67 = tpu.matmul %64, %66, %cst_54 {dimension_numbers = #tpu.dot_dimension_numbers<[1], [0], [0], [1], [0, 0, 1, 1], [], []>} : vector<128x32xf32>, vector<32x32xf32>, vector<128x32xf32> -> vector<128x32xf32>
    %c3_55 = arith.constant 3 : index
    %c0_56 = arith.constant 0 : index
    %c0_57 = arith.constant 0 : index
    %68 = vector.load %arg6[%c3_55, %c0_56, %c0_57] : memref<7x1x32xf32, #tpu.memory_space<vmem>>, vector<1x1x32xf32>
    %69 = vector.shape_cast %68 : vector<1x1x32xf32> to vector<1x32xf32>
    %70 = vector.broadcast %69 : vector<1x32xf32> to vector<128x32xf32>
    %71 = arith.addf %67, %70 : vector<128x32xf32>
    %cst_58 = arith.constant 0.000000e+00 : f32
    %72 = vector.broadcast %cst_58 : f32 to vector<128x32xf32>
    %73 = arith.maximumf %71, %72 : vector<128x32xf32>
    %c3_59 = arith.constant 3 : index
    %c0_60 = arith.constant 0 : index
    %c0_61 = arith.constant 0 : index
    %74 = vector.load %arg7[%c3_59, %c0_60, %c0_61] : memref<7x32x32xf32, #tpu.memory_space<vmem>>, vector<1x32x32xf32>
    %75 = vector.shape_cast %74 : vector<1x32x32xf32> to vector<32x32xf32>
    %cst_62 = arith.constant dense<0.000000e+00> : vector<128x32xf32>
    %76 = tpu.matmul %73, %75, %cst_62 {dimension_numbers = #tpu.dot_dimension_numbers<[1], [0], [0], [1], [0, 0, 1, 1], [], []>} : vector<128x32xf32>, vector<32x32xf32>, vector<128x32xf32> -> vector<128x32xf32>
    %c3_63 = arith.constant 3 : index
    %c0_64 = arith.constant 0 : index
    %c0_65 = arith.constant 0 : index
    %77 = vector.load %arg8[%c3_63, %c0_64, %c0_65] : memref<7x1x32xf32, #tpu.memory_space<vmem>>, vector<1x1x32xf32>
    %78 = vector.shape_cast %77 : vector<1x1x32xf32> to vector<1x32xf32>
    %79 = vector.broadcast %78 : vector<1x32xf32> to vector<128x32xf32>
    %80 = arith.addf %76, %79 : vector<128x32xf32>
    %81 = arith.addf %62, %80 : vector<128x32xf32>
    %cst_66 = arith.constant 0.000000e+00 : f32
    %82 = vector.broadcast %cst_66 : f32 to vector<128x32xf32>
    %83 = arith.maximumf %81, %82 : vector<128x32xf32>
    %c4 = arith.constant 4 : index
    %c0_67 = arith.constant 0 : index
    %c0_68 = arith.constant 0 : index
    %84 = vector.load %arg5[%c4, %c0_67, %c0_68] : memref<7x32x32xf32, #tpu.memory_space<vmem>>, vector<1x32x32xf32>
    %85 = vector.shape_cast %84 : vector<1x32x32xf32> to vector<32x32xf32>
    %cst_69 = arith.constant dense<0.000000e+00> : vector<128x32xf32>
    %86 = tpu.matmul %83, %85, %cst_69 {dimension_numbers = #tpu.dot_dimension_numbers<[1], [0], [0], [1], [0, 0, 1, 1], [], []>} : vector<128x32xf32>, vector<32x32xf32>, vector<128x32xf32> -> vector<128x32xf32>
    %c4_70 = arith.constant 4 : index
    %c0_71 = arith.constant 0 : index
    %c0_72 = arith.constant 0 : index
    %87 = vector.load %arg6[%c4_70, %c0_71, %c0_72] : memref<7x1x32xf32, #tpu.memory_space<vmem>>, vector<1x1x32xf32>
    %88 = vector.shape_cast %87 : vector<1x1x32xf32> to vector<1x32xf32>
    %89 = vector.broadcast %88 : vector<1x32xf32> to vector<128x32xf32>
    %90 = arith.addf %86, %89 : vector<128x32xf32>
    %cst_73 = arith.constant 0.000000e+00 : f32
    %91 = vector.broadcast %cst_73 : f32 to vector<128x32xf32>
    %92 = arith.maximumf %90, %91 : vector<128x32xf32>
    %c4_74 = arith.constant 4 : index
    %c0_75 = arith.constant 0 : index
    %c0_76 = arith.constant 0 : index
    %93 = vector.load %arg7[%c4_74, %c0_75, %c0_76] : memref<7x32x32xf32, #tpu.memory_space<vmem>>, vector<1x32x32xf32>
    %94 = vector.shape_cast %93 : vector<1x32x32xf32> to vector<32x32xf32>
    %cst_77 = arith.constant dense<0.000000e+00> : vector<128x32xf32>
    %95 = tpu.matmul %92, %94, %cst_77 {dimension_numbers = #tpu.dot_dimension_numbers<[1], [0], [0], [1], [0, 0, 1, 1], [], []>} : vector<128x32xf32>, vector<32x32xf32>, vector<128x32xf32> -> vector<128x32xf32>
    %c4_78 = arith.constant 4 : index
    %c0_79 = arith.constant 0 : index
    %c0_80 = arith.constant 0 : index
    %96 = vector.load %arg8[%c4_78, %c0_79, %c0_80] : memref<7x1x32xf32, #tpu.memory_space<vmem>>, vector<1x1x32xf32>
    %97 = vector.shape_cast %96 : vector<1x1x32xf32> to vector<1x32xf32>
    %98 = vector.broadcast %97 : vector<1x32xf32> to vector<128x32xf32>
    %99 = arith.addf %95, %98 : vector<128x32xf32>
    %100 = arith.addf %81, %99 : vector<128x32xf32>
    %cst_81 = arith.constant 0.000000e+00 : f32
    %101 = vector.broadcast %cst_81 : f32 to vector<128x32xf32>
    %102 = arith.maximumf %100, %101 : vector<128x32xf32>
    %c5 = arith.constant 5 : index
    %c0_82 = arith.constant 0 : index
    %c0_83 = arith.constant 0 : index
    %103 = vector.load %arg5[%c5, %c0_82, %c0_83] : memref<7x32x32xf32, #tpu.memory_space<vmem>>, vector<1x32x32xf32>
    %104 = vector.shape_cast %103 : vector<1x32x32xf32> to vector<32x32xf32>
    %cst_84 = arith.constant dense<0.000000e+00> : vector<128x32xf32>
    %105 = tpu.matmul %102, %104, %cst_84 {dimension_numbers = #tpu.dot_dimension_numbers<[1], [0], [0], [1], [0, 0, 1, 1], [], []>} : vector<128x32xf32>, vector<32x32xf32>, vector<128x32xf32> -> vector<128x32xf32>
    %c5_85 = arith.constant 5 : index
    %c0_86 = arith.constant 0 : index
    %c0_87 = arith.constant 0 : index
    %106 = vector.load %arg6[%c5_85, %c0_86, %c0_87] : memref<7x1x32xf32, #tpu.memory_space<vmem>>, vector<1x1x32xf32>
    %107 = vector.shape_cast %106 : vector<1x1x32xf32> to vector<1x32xf32>
    %108 = vector.broadcast %107 : vector<1x32xf32> to vector<128x32xf32>
    %109 = arith.addf %105, %108 : vector<128x32xf32>
    %cst_88 = arith.constant 0.000000e+00 : f32
    %110 = vector.broadcast %cst_88 : f32 to vector<128x32xf32>
    %111 = arith.maximumf %109, %110 : vector<128x32xf32>
    %c5_89 = arith.constant 5 : index
    %c0_90 = arith.constant 0 : index
    %c0_91 = arith.constant 0 : index
    %112 = vector.load %arg7[%c5_89, %c0_90, %c0_91] : memref<7x32x32xf32, #tpu.memory_space<vmem>>, vector<1x32x32xf32>
    %113 = vector.shape_cast %112 : vector<1x32x32xf32> to vector<32x32xf32>
    %cst_92 = arith.constant dense<0.000000e+00> : vector<128x32xf32>
    %114 = tpu.matmul %111, %113, %cst_92 {dimension_numbers = #tpu.dot_dimension_numbers<[1], [0], [0], [1], [0, 0, 1, 1], [], []>} : vector<128x32xf32>, vector<32x32xf32>, vector<128x32xf32> -> vector<128x32xf32>
    %c5_93 = arith.constant 5 : index
    %c0_94 = arith.constant 0 : index
    %c0_95 = arith.constant 0 : index
    %115 = vector.load %arg8[%c5_93, %c0_94, %c0_95] : memref<7x1x32xf32, #tpu.memory_space<vmem>>, vector<1x1x32xf32>
    %116 = vector.shape_cast %115 : vector<1x1x32xf32> to vector<1x32xf32>
    %117 = vector.broadcast %116 : vector<1x32xf32> to vector<128x32xf32>
    %118 = arith.addf %114, %117 : vector<128x32xf32>
    %119 = arith.addf %100, %118 : vector<128x32xf32>
    %cst_96 = arith.constant 0.000000e+00 : f32
    %120 = vector.broadcast %cst_96 : f32 to vector<128x32xf32>
    %121 = arith.maximumf %119, %120 : vector<128x32xf32>
    %c6 = arith.constant 6 : index
    %c0_97 = arith.constant 0 : index
    %c0_98 = arith.constant 0 : index
    %122 = vector.load %arg5[%c6, %c0_97, %c0_98] : memref<7x32x32xf32, #tpu.memory_space<vmem>>, vector<1x32x32xf32>
    %123 = vector.shape_cast %122 : vector<1x32x32xf32> to vector<32x32xf32>
    %cst_99 = arith.constant dense<0.000000e+00> : vector<128x32xf32>
    %124 = tpu.matmul %121, %123, %cst_99 {dimension_numbers = #tpu.dot_dimension_numbers<[1], [0], [0], [1], [0, 0, 1, 1], [], []>} : vector<128x32xf32>, vector<32x32xf32>, vector<128x32xf32> -> vector<128x32xf32>
    %c6_100 = arith.constant 6 : index
    %c0_101 = arith.constant 0 : index
    %c0_102 = arith.constant 0 : index
    %125 = vector.load %arg6[%c6_100, %c0_101, %c0_102] : memref<7x1x32xf32, #tpu.memory_space<vmem>>, vector<1x1x32xf32>
    %126 = vector.shape_cast %125 : vector<1x1x32xf32> to vector<1x32xf32>
    %127 = vector.broadcast %126 : vector<1x32xf32> to vector<128x32xf32>
    %128 = arith.addf %124, %127 : vector<128x32xf32>
    %cst_103 = arith.constant 0.000000e+00 : f32
    %129 = vector.broadcast %cst_103 : f32 to vector<128x32xf32>
    %130 = arith.maximumf %128, %129 : vector<128x32xf32>
    %c6_104 = arith.constant 6 : index
    %c0_105 = arith.constant 0 : index
    %c0_106 = arith.constant 0 : index
    %131 = vector.load %arg7[%c6_104, %c0_105, %c0_106] : memref<7x32x32xf32, #tpu.memory_space<vmem>>, vector<1x32x32xf32>
    %132 = vector.shape_cast %131 : vector<1x32x32xf32> to vector<32x32xf32>
    %cst_107 = arith.constant dense<0.000000e+00> : vector<128x32xf32>
    %133 = tpu.matmul %130, %132, %cst_107 {dimension_numbers = #tpu.dot_dimension_numbers<[1], [0], [0], [1], [0, 0, 1, 1], [], []>} : vector<128x32xf32>, vector<32x32xf32>, vector<128x32xf32> -> vector<128x32xf32>
    %c6_108 = arith.constant 6 : index
    %c0_109 = arith.constant 0 : index
    %c0_110 = arith.constant 0 : index
    %134 = vector.load %arg8[%c6_108, %c0_109, %c0_110] : memref<7x1x32xf32, #tpu.memory_space<vmem>>, vector<1x1x32xf32>
    %135 = vector.shape_cast %134 : vector<1x1x32xf32> to vector<1x32xf32>
    %136 = vector.broadcast %135 : vector<1x32xf32> to vector<128x32xf32>
    %137 = arith.addf %133, %136 : vector<128x32xf32>
    %138 = arith.addf %119, %137 : vector<128x32xf32>
    %cst_111 = arith.constant 0.000000e+00 : f32
    %139 = vector.broadcast %cst_111 : f32 to vector<128x32xf32>
    %140 = arith.maximumf %138, %139 : vector<128x32xf32>
    %c0_112 = arith.constant 0 : index
    %c0_113 = arith.constant 0 : index
    %141 = vector.load %arg9[%c0_112, %c0_113] : memref<32x384xf32, #tpu.memory_space<vmem>>, vector<32x384xf32>
    %cst_114 = arith.constant dense<0.000000e+00> : vector<128x384xf32>
    %142 = tpu.matmul %140, %141, %cst_114 {dimension_numbers = #tpu.dot_dimension_numbers<[1], [0], [0], [1], [0, 0, 1, 1], [], []>} : vector<128x32xf32>, vector<32x384xf32>, vector<128x384xf32> -> vector<128x384xf32>
    %c0_115 = arith.constant 0 : index
    %c0_116 = arith.constant 0 : index
    %143 = vector.load %arg10[%c0_115, %c0_116] : memref<1x384xf32, #tpu.memory_space<vmem>>, vector<1x384xf32>
    %144 = vector.broadcast %143 : vector<1x384xf32> to vector<128x384xf32>
    %145 = arith.addf %142, %144 : vector<128x384xf32>
    %146 = vector.extract_strided_slice %145 {offsets = [0, 0], sizes = [128, 128], strides = [1, 1]} : vector<128x384xf32> to vector<128x128xf32>
    %147 = vector.extract_strided_slice %145 {offsets = [0, 128], sizes = [128, 128], strides = [1, 1]} : vector<128x384xf32> to vector<128x128xf32>
    %148 = vector.extract_strided_slice %145 {offsets = [0, 256], sizes = [128, 128], strides = [1, 1]} : vector<128x384xf32> to vector<128x128xf32>
    %149 = arith.negf %148 : vector<128x128xf32>
    %150 = math.exp %149 : vector<128x128xf32>
    %cst_117 = arith.constant 1.000000e+00 : f32
    %151 = vector.broadcast %cst_117 : f32 to vector<128x128xf32>
    %152 = arith.addf %151, %150 : vector<128x128xf32>
    %153 = arith.divf %151, %152 : vector<128x128xf32>
    %c0_118 = arith.constant 0 : index
    %c0_119 = arith.constant 0 : index
    %154 = vector.load %arg2[%c0_118, %c0_119] : memref<128x1xi32, #tpu.memory_space<vmem>>, vector<128x1xi32>
    %155 = tpu.iota {dimensions = array<i32: 1>} : vector<128x128xi32>
    %156 = vector.broadcast %154 : vector<128x1xi32> to vector<128x128xi32>
    %157 = arith.cmpi sle, %155, %156 : vector<128x128xi32>
    %cst_120 = arith.constant 0.000000e+00 : f32
    %158 = vector.broadcast %cst_120 : f32 to vector<128x128xf32>
    %159 = arith.select %157, %146, %158 : vector<128x128xi1>, vector<128x128xf32>
    %c1_i32 = arith.constant 1 : i32
    %160 = vector.broadcast %c1_i32 : i32 to vector<128x1xi32>
    %161 = arith.addi %154, %160 : vector<128x1xi32>
    %c127_i32 = arith.constant 127 : i32
    %162 = vector.broadcast %c127_i32 : i32 to vector<128x1xi32>
    %163 = arith.andi %161, %162 : vector<128x1xi32>
    %c1_i32_121 = arith.constant 1 : i32
    %164 = tpu.dynamic_rotate %155 by %c1_i32_121 dim 1 : vector<128x128xi32>, i32 -> vector<128x128xi32>
    %165 = vector.extract_strided_slice %164 {offsets = [0, 0], sizes = [128, 1], strides = [1, 1]} : vector<128x128xi32> to vector<128x1xi32>
    %c127_i32_122 = arith.constant 127 : i32
    %166 = vector.broadcast %c127_i32_122 : i32 to vector<128x1xi32>
    %167 = arith.cmpi eq, %165, %166 : vector<128x1xi32>
    %c128_i32 = arith.constant 128 : i32
    %168 = vector.broadcast %c128_i32 : i32 to vector<128x1xi32>
    %169 = arith.subi %168, %163 : vector<128x1xi32>
    %c127_i32_123 = arith.constant 127 : i32
    %170 = vector.broadcast %c127_i32_123 : i32 to vector<128x1xi32>
    %171 = arith.andi %169, %170 : vector<128x1xi32>
    %172 = arith.select %167, %163, %171 : vector<128x1xi1>, vector<128x1xi32>
    %c1_i32_124 = arith.constant 1 : i32
    %173 = tpu.dynamic_rotate %147 by %c1_i32_124 dim 1 : vector<128x128xf32>, i32 -> vector<128x128xf32>
    %c1_i32_125 = arith.constant 1 : i32
    %174 = vector.broadcast %c1_i32_125 : i32 to vector<128x1xi32>
    %175 = arith.andi %172, %174 : vector<128x1xi32>
    %c0_i32 = arith.constant 0 : i32
    %176 = vector.broadcast %c0_i32 : i32 to vector<128x1xi32>
    %177 = arith.cmpi ne, %175, %176 : vector<128x1xi32>
    %178 = vector.shape_cast %177 : vector<128x1xi1> to vector<128x1xi1>
    %179 = vector.broadcast %178 : vector<128x1xi1> to vector<128x128xi1>
    %180 = arith.select %179, %173, %147 : vector<128x128xi1>, vector<128x128xf32>
    %c2_i32 = arith.constant 2 : i32
    %181 = tpu.dynamic_rotate %180 by %c2_i32 dim 1 : vector<128x128xf32>, i32 -> vector<128x128xf32>
    %c2_i32_126 = arith.constant 2 : i32
    %182 = vector.broadcast %c2_i32_126 : i32 to vector<128x1xi32>
    %183 = arith.andi %172, %182 : vector<128x1xi32>
    %c0_i32_127 = arith.constant 0 : i32
    %184 = vector.broadcast %c0_i32_127 : i32 to vector<128x1xi32>
    %185 = arith.cmpi ne, %183, %184 : vector<128x1xi32>
    %186 = vector.shape_cast %185 : vector<128x1xi1> to vector<128x1xi1>
    %187 = vector.broadcast %186 : vector<128x1xi1> to vector<128x128xi1>
    %188 = arith.select %187, %181, %180 : vector<128x128xi1>, vector<128x128xf32>
    %c4_i32 = arith.constant 4 : i32
    %189 = tpu.dynamic_rotate %188 by %c4_i32 dim 1 : vector<128x128xf32>, i32 -> vector<128x128xf32>
    %c4_i32_128 = arith.constant 4 : i32
    %190 = vector.broadcast %c4_i32_128 : i32 to vector<128x1xi32>
    %191 = arith.andi %172, %190 : vector<128x1xi32>
    %c0_i32_129 = arith.constant 0 : i32
    %192 = vector.broadcast %c0_i32_129 : i32 to vector<128x1xi32>
    %193 = arith.cmpi ne, %191, %192 : vector<128x1xi32>
    %194 = vector.shape_cast %193 : vector<128x1xi1> to vector<128x1xi1>
    %195 = vector.broadcast %194 : vector<128x1xi1> to vector<128x128xi1>
    %196 = arith.select %195, %189, %188 : vector<128x128xi1>, vector<128x128xf32>
    %c8_i32 = arith.constant 8 : i32
    %197 = tpu.dynamic_rotate %196 by %c8_i32 dim 1 : vector<128x128xf32>, i32 -> vector<128x128xf32>
    %c8_i32_130 = arith.constant 8 : i32
    %198 = vector.broadcast %c8_i32_130 : i32 to vector<128x1xi32>
    %199 = arith.andi %172, %198 : vector<128x1xi32>
    %c0_i32_131 = arith.constant 0 : i32
    %200 = vector.broadcast %c0_i32_131 : i32 to vector<128x1xi32>
    %201 = arith.cmpi ne, %199, %200 : vector<128x1xi32>
    %202 = vector.shape_cast %201 : vector<128x1xi1> to vector<128x1xi1>
    %203 = vector.broadcast %202 : vector<128x1xi1> to vector<128x128xi1>
    %204 = arith.select %203, %197, %196 : vector<128x128xi1>, vector<128x128xf32>
    %c16_i32 = arith.constant 16 : i32
    %205 = tpu.dynamic_rotate %204 by %c16_i32 dim 1 : vector<128x128xf32>, i32 -> vector<128x128xf32>
    %c16_i32_132 = arith.constant 16 : i32
    %206 = vector.broadcast %c16_i32_132 : i32 to vector<128x1xi32>
    %207 = arith.andi %172, %206 : vector<128x1xi32>
    %c0_i32_133 = arith.constant 0 : i32
    %208 = vector.broadcast %c0_i32_133 : i32 to vector<128x1xi32>
    %209 = arith.cmpi ne, %207, %208 : vector<128x1xi32>
    %210 = vector.shape_cast %209 : vector<128x1xi1> to vector<128x1xi1>
    %211 = vector.broadcast %210 : vector<128x1xi1> to vector<128x128xi1>
    %212 = arith.select %211, %205, %204 : vector<128x128xi1>, vector<128x128xf32>
    %c32_i32 = arith.constant 32 : i32
    %213 = tpu.dynamic_rotate %212 by %c32_i32 dim 1 : vector<128x128xf32>, i32 -> vector<128x128xf32>
    %c32_i32_134 = arith.constant 32 : i32
    %214 = vector.broadcast %c32_i32_134 : i32 to vector<128x1xi32>
    %215 = arith.andi %172, %214 : vector<128x1xi32>
    %c0_i32_135 = arith.constant 0 : i32
    %216 = vector.broadcast %c0_i32_135 : i32 to vector<128x1xi32>
    %217 = arith.cmpi ne, %215, %216 : vector<128x1xi32>
    %218 = vector.shape_cast %217 : vector<128x1xi1> to vector<128x1xi1>
    %219 = vector.broadcast %218 : vector<128x1xi1> to vector<128x128xi1>
    %220 = arith.select %219, %213, %212 : vector<128x128xi1>, vector<128x128xf32>
    %c64_i32 = arith.constant 64 : i32
    %221 = tpu.dynamic_rotate %220 by %c64_i32 dim 1 : vector<128x128xf32>, i32 -> vector<128x128xf32>
    %c64_i32_136 = arith.constant 64 : i32
    %222 = vector.broadcast %c64_i32_136 : i32 to vector<128x1xi32>
    %223 = arith.andi %172, %222 : vector<128x1xi32>
    %c0_i32_137 = arith.constant 0 : i32
    %224 = vector.broadcast %c0_i32_137 : i32 to vector<128x1xi32>
    %225 = arith.cmpi ne, %223, %224 : vector<128x1xi32>
    %226 = vector.shape_cast %225 : vector<128x1xi1> to vector<128x1xi1>
    %227 = vector.broadcast %226 : vector<128x1xi1> to vector<128x128xi1>
    %228 = arith.select %227, %221, %220 : vector<128x128xi1>, vector<128x128xf32>
    %c128_i32_138 = arith.constant 128 : i32
    %229 = vector.broadcast %c128_i32_138 : i32 to vector<128x1xi32>
    %230 = arith.subi %154, %229 : vector<128x1xi32>
    %231 = vector.broadcast %230 : vector<128x1xi32> to vector<128x128xi32>
    %232 = arith.cmpi sgt, %155, %231 : vector<128x128xi32>
    %233 = arith.andi %157, %232 : vector<128x128xi1>
    %cst_139 = arith.constant 0.000000e+00 : f32
    %234 = vector.broadcast %cst_139 : f32 to vector<128x128xf32>
    %235 = arith.select %233, %228, %234 : vector<128x128xi1>, vector<128x128xf32>
    %236 = arith.mulf %153, %159 : vector<128x128xf32>
    %cst_140 = arith.constant 1.000000e+00 : f32
    %237 = vector.broadcast %cst_140 : f32 to vector<128x128xf32>
    %238 = arith.subf %237, %153 : vector<128x128xf32>
    %239 = arith.mulf %238, %235 : vector<128x128xf32>
    %240 = arith.addf %236, %239 : vector<128x128xf32>
    %cst_141 = arith.constant 0.000000e+00 : f32
    %241 = vector.broadcast %cst_141 : f32 to vector<128x128xf32>
    %242 = arith.maximumf %240, %241 : vector<128x128xf32>
    %c0_142 = arith.constant 0 : index
    %c0_143 = arith.constant 0 : index
    %243 = vector.load %arg11[%c0_142, %c0_143] : memref<128x128xf32, #tpu.memory_space<vmem>>, vector<128x128xf32>
    tpu.vector_store %arg11[%c0_142, %c0_143], %242 {strides = array<i32>} : memref<128x128xf32, #tpu.memory_space<vmem>>, vector<128x128xf32>,
    return
  }
  func.func @transform_0(%arg0: i32) -> (i32, i32) {
    %c0_i32 = arith.constant 0 : i32
    %c0_i32_0 = arith.constant 0 : i32
    return %arg0, %c0_i32 : i32, i32
  }
  func.func @transform_1(%arg0: i32) -> (i32, i32) {
    %c0_i32 = arith.constant 0 : i32
    %c0_i32_0 = arith.constant 0 : i32
    return %arg0, %c0_i32 : i32, i32
  }
  func.func @transform_2(%arg0: i32) -> (i32, i32) {
    %c0_i32 = arith.constant 0 : i32
    %c0_i32_0 = arith.constant 0 : i32
    %c0_i32_1 = arith.constant 0 : i32
    return %c0_i32, %c0_i32_0 : i32, i32
  }
  func.func @transform_3(%arg0: i32) -> (i32, i32) {
    %c0_i32 = arith.constant 0 : i32
    %c0_i32_0 = arith.constant 0 : i32
    %c0_i32_1 = arith.constant 0 : i32
    return %c0_i32, %c0_i32_0 : i32, i32
  }
  func.func @transform_4(%arg0: i32) -> (i32, i32, i32) {
    %c0_i32 = arith.constant 0 : i32
    %c0_i32_0 = arith.constant 0 : i32
    %c0_i32_1 = arith.constant 0 : i32
    %c0_i32_2 = arith.constant 0 : i32
    return %c0_i32, %c0_i32_0, %c0_i32_1 : i32, i32, i32
  }
  func.func @transform_5(%arg0: i32) -> (i32, i32, i32) {
    %c0_i32 = arith.constant 0 : i32
    %c0_i32_0 = arith.constant 0 : i32
    %c0_i32_1 = arith.constant 0 : i32
    %c0_i32_2 = arith.constant 0 : i32
    return %c0_i32, %c0_i32_0, %c0_i32_1 : i32, i32, i32
  }
  func.func @transform_6(%arg0: i32) -> (i32, i32, i32) {
    %c0_i32 = arith.constant 0 : i32
    %c0_i32_0 = arith.constant 0 : i32
    %c0_i32_1 = arith.constant 0 : i32
    %c0_i32_2 = arith.constant 0 : i32
    return %c0_i32, %c0_i32_0, %c0_i32_1 : i32, i32, i32
  }
  func.func @transform_7(%arg0: i32) -> (i32, i32, i32) {
    %c0_i32 = arith.constant 0 : i32
    %c0_i32_0 = arith.constant 0 : i32
    %c0_i32_1 = arith.constant 0 : i32
    %c0_i32_2 = arith.constant 0 : i32
    return %c0_i32, %c0_i32_0, %c0_i32_1 : i32, i32, i32
  }
  func.func @transform_8(%arg0: i32) -> (i32, i32) {
    %c0_i32 = arith.constant 0 : i32
    %c0_i32_0 = arith.constant 0 : i32
    %c0_i32_1 = arith.constant 0 : i32
    return %c0_i32, %c0_i32_0 : i32, i32
  }
  func.func @transform_9(%arg0: i32) -> (i32, i32) {
    %c0_i32 = arith.constant 0 : i32
    %c0_i32_0 = arith.constant 0 : i32
    %c0_i32_1 = arith.constant 0 : i32
    return %c0_i32, %c0_i32_0 : i32, i32
  }
  func.func @transform_10(%arg0: i32) -> (i32, i32) {
    %c0_i32 = arith.constant 0 : i32
    %c0_i32_0 = arith.constant 0 : i32
    return %arg0, %c0_i32 : i32, i32
  }
}

</mosaic_0001>

<bundles_post_ra>
// kernel: tpu_custom_call.1
= control target key start
LH: loop header
LB: loop body
LE: loop exit
PB: predicated region body
PF: predicated region fallthrough
CT: control target
= control target key end

     0   :  { %15 = vsyncpa [#allocation3], 0  ;;  %s9677_s0 = inlined_call_operand.vmem [shape: f32[128,32], index: 0, kind: input, shape index: {}]   ;;  %s9678_s1 = inlined_call_operand.vmem [shape: s32[128,1], index: 1, kind: input, shape index: {}]   ;;  %s9679_s2 = inlined_call_operand.vmem [shape: f32[32,32], index: 2, kind: input, shape index: {}]   ;;  %s9680_s3 = inlined_call_operand.vmem [shape: f32[1,32], index: 3, kind: input, shape index: {}]   ;;  %s9681_s4 = inlined_call_operand.vmem [shape: f32[7,32,32], index: 4, kind: input, shape index: {}]   ;;  %s9682_s5 = inlined_call_operand.vmem [shape: f32[7,1,32], index: 5, kind: input, shape index: {}]   ;;  %s9683_s6 = inlined_call_operand.hbm [shape: f32[7,32,32], index: 6, kind: input, shape index: {}]   ;;  %s9684_s7 = inlined_call_operand.vmem [shape: f32[7,1,32], index: 7, kind: input, shape index: {}]   ;;  %s9685_s8 = inlined_call_operand.hbm [shape: f32[32,384], index: 8, kind: input, shape index: {}]   ;;  %s9686_s9 = inlined_call_operand.vmem [shape: f32[1,384], index: 9, kind: input, shape index: {}]   ;;  %s9687_s10 = inlined_call_operand.hbm [shape: f32[128,128], index: 10, kind: output, shape index: {}]  }
   0x1   :  { %16 = vsyncpa [#allocation6], 0 }
   0x2   :  { %17 = vsyncpa [#allocation4], 0  ;;  %s6873_s13 = smov [#allocation2]  }
   0x3   :  { %s35_s14 = sshll.u32 %s6873_s13, 4  ;;  %s36_s14 = int_to_ptr.vmem [resolvable:$true] %s35_s14 }
   0x4   :  { %s6815_s15 = scalar_lea.vmem %s36_s14, 3584  ;;  %p6820_p1 = scmp.lt.s32.totalorder %s36_s14, %s36_s14 }
   0x5   :  { %p6816_p0 = scmp.ne.s32.totalorder %s36_s14, %s6815_s15  ;;  %p6821_p2 = scmp.lt.s32.totalorder %s6815_s15, %s6815_s15 }
   0x7   :  { %p6822_p3 = por %p6821_p2, %p6820_p1 }
   0x9   :  { %p6823_p4 = pnand %p6822_p3, %p6816_p0 }
   0xb   :  { %6826 = shalt.err (!%p6823_p4)
}
   0xc   :  { %s6874_s16 = smov 128   ;;  %s6875_s17 = smov 8  }
   0xd   :  { %41 = dma.hbm_to_vmem [thread:$0]  %s9683_s6, 3584, %s36_s14, [#allocation3], %s6874_s16, %s6874_s16, %s6875_s17  }
   0xe   :  { %s6876_s20 = smov [#allocation5]  }
   0xf   :  { %s49_s21 = sshll.u32 %s6876_s20, 4  ;;  %s50_s21 = int_to_ptr.vmem [resolvable:$true] %s49_s21 }
  0x10   :  { %s6835_s22 = scalar_lea.vmem %s50_s21, 1536  ;;  %p6840_p6 = scmp.lt.s32.totalorder %s50_s21, %s50_s21 }
  0x11   :  { %p6836_p5 = scmp.ne.s32.totalorder %s50_s21, %s6835_s22  ;;  %p6841_p7 = scmp.lt.s32.totalorder %s6835_s22, %s6835_s22 }
  0x13   :  { %p6842_p8 = por %p6841_p7, %p6840_p6 }
  0x15   :  { %p6843_p9 = pnand %p6842_p8, %p6836_p5 }
  0x17   :  { %6846 = shalt.err (!%p6843_p9)
}
  0x18   :  { %s6877_s23 = smov 384   ;;  %s6878_s24 = smov 24  }
  0x19   :  { %55 = dma.hbm_to_vmem [thread:$0]  %s9685_s8, 1536, %s50_s21, [#allocation6], %s6877_s23, %s6877_s23, %s6878_s24  }
  0x1a   :  { %6867 = dma.done.wait [#allocation3], 3584  }
  0x1b   :  { %6868 = vsyncadd [#allocation3], 4294963712 }
  0x1c   :  { %6869 = dma.done.wait [#allocation6], 1536  }
  0x1d   :  { %6870 = vsyncadd [#allocation6], 4294965760  ;;  %vm91_vm0 = vcmask 261120   ;;  %v83_v0 = vld [vmem:[%s9679_s2 + $0x18] sm:$0xff]  ;;  %v82_v1 = vld [vmem:[%s9679_s2 + $0x10] sm:$0xff]  ;;  %s6880_s27 = smov 1  }
  0x1e   :  { %6198 = vmatprep.subr.mxu0 %v83_v0  ;;  %v64_v2 = vld [vmem:[%s9677_s0] sm:$0xff]  ;;  %v81_v3 = vld [vmem:[%s9679_s2 + $0x8] sm:$0xff]  ;;  %v66_v6 = vld [vmem:[%s9677_s0 + $0x10] sm:$0xff]  ;;  %s6883_s6 = smov 4   ;;  %s6885_s13 = smov 32  }
  0x1f   :  { %6199 = vmatpush3.msra.mxu0 %v83_v0  ;;  %6206 = vmatprep.mubr.msk.f32.mxu0 %vm91_vm0, %v64_v2  ;;  %v80_v4 = vld [vmem:[%s9679_s2] sm:$0xff]  ;;  %v65_v5 = vld [vmem:[%s9677_s0 + $0x8] sm:$0xff]  ;;  %v67_v7 = vld [vmem:[%s9677_s0 + $0x18] sm:$0xff] }
  0x20   :  { %6200 = vmatprep.subr.mxu0 %v82_v1  ;;  %v68_v8 = vld [vmem:[%s9677_s0 + $0x20] sm:$0xff]  ;;  %v69_v9 = vld [vmem:[%s9677_s0 + $0x28] sm:$0xff]  ;;  %v70_v10 = vld [vmem:[%s9677_s0 + $0x30] sm:$0xff] }
  0x21   :  { %6201 = vmatpush3.msra.mxu0 %v82_v1  ;;  %v71_v11 = vld [vmem:[%s9677_s0 + $0x38] sm:$0xff]  ;;  %v72_v12 = vld [vmem:[%s9677_s0 + $0x40] sm:$0xff]  ;;  %v73_v13 = vld [vmem:[%s9677_s0 + $0x48] sm:$0xff] }
  0x22   :  { %6202 = vmatprep.subr.mxu0 %v81_v3  ;;  %v74_v14 = vld [vmem:[%s9677_s0 + $0x50] sm:$0xff]  ;;  %v75_v15 = vld [vmem:[%s9677_s0 + $0x58] sm:$0xff]  ;;  %v76_v16 = vld [vmem:[%s9677_s0 + $0x60] sm:$0xff] }
  0x23   :  { %6203 = vmatpush3.msra.mxu0 %v81_v3  ;;  %v77_v17 = vld [vmem:[%s9677_s0 + $0x68] sm:$0xff]  ;;  %v78_v18 = vld [vmem:[%s9677_s0 + $0x70] sm:$0xff]  ;;  %v79_v19 = vld [vmem:[%s9677_s0 + $0x78] sm:$0xff]  ;;  %s6886_s0 = smov 64  }
  0x24   :  { %6204 = vmatprep.subr.mxu0 %v80_v4  ;;  %v304_v20 = vld [vmem:[%s9681_s4 + $0x18] sm:$0xff]  ;;  %v303_v21 = vld [vmem:[%s9681_s4 + $0x10] sm:$0xff]  ;;  %v302_v22 = vld [vmem:[%s9681_s4 + $0x8] sm:$0xff] }
  0x25   :  { %6205 = vmatpush3.msra.mxu0 %v80_v4  ;;  %6230 = vmatprep.subr.mxu1 %v304_v20  ;;  %v301_v23 = vld [vmem:[%s9681_s4] sm:$0xff]  ;;  %v524_v24 = vld [vmem:[#allocation2 + $0x18] sm:$0xff]  ;;  %v523_v25 = vld [vmem:[#allocation2 + $0x10] sm:$0xff] }
  0x26   :  { %6207 = vmatmul.mubr.msk.f32.vlgmr.msra.gmra.mxu0 %vm91_vm0, %v65_v5  ;;  %6231 = vmatpush3.msra.mxu1 %v304_v20  ;;  %v522_v26 = vld [vmem:[#allocation2 + $0x8] sm:$0xff]  ;;  %v521_v27 = vld [vmem:[#allocation2] sm:$0xff] }
  0x27   :  { %6209 = vmatprep.mubr.msk.f32.mxu0 %vm91_vm0, %v66_v6  ;;  %6232 = vmatprep.subr.mxu1 %v303_v21  ;;  %v5523_v28 = vld [vmem:[%s9680_s3] ss:$0 sm:$0xff] }
  0x28   :  { %6233 = vmatpush3.msra.mxu1 %v303_v21  ;;  %6262 = vmatprep.subr.mxu0 %v524_v24 }
  0x29   :  { %6234 = vmatprep.subr.mxu1 %v302_v22  ;;  %6263 = vmatpush3.msra.mxu0 %v524_v24 }
  0x2a   :  { %6210 = vmatmul.mubr.msk.f32.gmra.mxu0 %vm91_vm0, %v67_v7  ;;  %6235 = vmatpush3.msra.mxu1 %v302_v22 }
  0x2b   :  { %6212 = vmatprep.mubr.msk.f32.mxu0 %vm91_vm0, %v68_v8  ;;  %6236 = vmatprep.subr.mxu1 %v301_v23 }
  0x2c   :  { %6237 = vmatpush3.msra.mxu1 %v301_v23  ;;  %6264 = vmatprep.subr.mxu0 %v523_v25 }
  0x2d   :  { %6265 = vmatpush3.msra.mxu0 %v523_v25 }
  0x2e   :  { %6213 = vmatmul.mubr.msk.f32.gmra.mxu0 %vm91_vm0, %v69_v9  ;;  %6266 = vmatprep.subr.mxu0 %v522_v26 }
  0x2f   :  { %6215 = vmatprep.mubr.msk.f32.mxu0 %vm91_vm0, %v70_v10  ;;  %6267 = vmatpush3.msra.mxu0 %v522_v26 }
  0x30   :  { %6268 = vmatprep.subr.mxu0 %v521_v27 }
  0x31   :  { %6269 = vmatpush3.msra.mxu0 %v521_v27 }
  0x32   :  { %6216 = vmatmul.mubr.msk.f32.gmra.mxu0 %vm91_vm0, %v71_v11 }
  0x33   :  { %6218 = vmatprep.mubr.msk.f32.mxu0 %vm91_vm0, %v72_v12 }
  0x36   :  { %6219 = vmatmul.mubr.msk.f32.gmra.mxu0 %vm91_vm0, %v73_v13  ;;  %v5577_v13 = vld [vmem:[%s9681_s4 + $0x38] sm:$0xff] }
  0x37   :  { %6221 = vmatprep.mubr.msk.f32.mxu0 %vm91_vm0, %v74_v14  ;;  %v5576_v14 = vld [vmem:[%s9681_s4 + $0x30] sm:$0xff]  ;;  %6294 = vmatprep.subr.mxu1 %v5577_v13 }
  0x3a   :  { %6222 = vmatmul.mubr.msk.f32.gmra.mxu0 %vm91_vm0, %v75_v15  ;;  %v5575_v15 = vld [vmem:[%s9681_s4 + $0x28] sm:$0xff] }
  0x3b   :  { %6224 = vmatprep.mubr.msk.f32.mxu0 %vm91_vm0, %v76_v16  ;;  %v5540_v16 = vld [vmem:[%s9682_s5] ss:$0 sm:$0xff] }
  0x3e   :  { %6225 = vmatmul.mubr.msk.f32.gmra.mxu0 %vm91_vm0, %v77_v17 }
  0x3f   :  { %6227 = vmatprep.mubr.msk.f32.mxu0 %vm91_vm0, %v78_v18 }
  0x42   :  { %6228 = vmatmul.mubr.msk.f32.gmra.mxu0 %vm91_vm0, %v79_v19 }
  0xe6   :  { %v6208_v29 = vpop.f32.mrf.mxu0 }
  0xe7   :  { %v7043_v30 = vadd.f32 %v6208_v29, %v5523_v28 }
  0xe8   :  { %v206_v31 = vpop.f32.mrf.mxu0 }
  0xe9   :  { %v7045_v32 = vadd.f32 %v5523_v28, %v206_v31  ;;  %v286_v36 = vmax.f32 %v7043_v30, 0.0 }
  0xea   :  { %v6211_v33 = vpop.f32.mrf.mxu0 }
  0xeb   :  { %v7047_v34 = vadd.f32 %v6211_v33, %v5523_v28  ;;  %v285_v35 = vmax.f32 %v7045_v32, 0.0 }
  0xec   :  { %v216_v37 = vpop.f32.mrf.mxu0 }
  0xed   :  { %v7051_v38 = vadd.f32 %v5523_v28, %v216_v37  ;;  %6238 = vmatprep.mubr.msk.f32.mxu1 %vm91_vm0, %v285_v35  ;;  %v288_v39 = vmax.f32 %v7047_v34, 0.0 }
  0xee   :  { %v6214_v40 = vpop.f32.mrf.mxu0  ;;  %6239 = vmatmul.mubr.msk.f32.vlgmr.msra.gmra.mxu1 %vm91_vm0, %v286_v36 }
  0xef   :  { %v287_v41 = vmax.f32 %v7051_v38, 0.0  ;;  %v7057_v42 = vadd.f32 %v6214_v40, %v5523_v28  ;;  %6295 = vmatpush3.msra.mxu1 %v5577_v13 }
  0xf0   :  { %v226_v43 = vpop.f32.mrf.mxu0  ;;  %6296 = vmatprep.subr.mxu1 %v5576_v14 }
  0xf1   :  { %v7059_v44 = vadd.f32 %v5523_v28, %v226_v43  ;;  %6241 = vmatprep.mubr.msk.f32.mxu1 %vm91_vm0, %v287_v41  ;;  %v290_v45 = vmax.f32 %v7057_v42, 0.0  ;;  %6297 = vmatpush3.msra.mxu1 %v5576_v14 }
  0xf2   :  { %v6217_v46 = vpop.f32.mrf.mxu0  ;;  %6242 = vmatmul.mubr.msk.f32.gmra.mxu1 %vm91_vm0, %v288_v39  ;;  %6298 = vmatprep.subr.mxu1 %v5575_v15 }
  0xf3   :  { %v289_v47 = vmax.f32 %v7059_v44, 0.0  ;;  %v7065_v48 = vadd.f32 %v6217_v46, %v5523_v28  ;;  %6299 = vmatpush3.msra.mxu1 %v5575_v15 }
  0xf4   :  { %v236_v49 = vpop.f32.mrf.mxu0 }
  0xf5   :  { %v7067_v50 = vadd.f32 %v5523_v28, %v236_v49  ;;  %6244 = vmatprep.mubr.msk.f32.mxu1 %vm91_vm0, %v289_v47  ;;  %v292_v51 = vmax.f32 %v7065_v48, 0.0 }
  0xf6   :  { %v6220_v52 = vpop.f32.mrf.mxu0  ;;  %6245 = vmatmul.mubr.msk.f32.gmra.mxu1 %vm91_vm0, %v290_v45 }
  0xf7   :  { %v291_v53 = vmax.f32 %v7067_v50, 0.0  ;;  %v7073_v54 = vadd.f32 %v6220_v52, %v5523_v28 }
  0xf8   :  { %v246_v55 = vpop.f32.mrf.mxu0 }
  0xf9   :  { %v7075_v56 = vadd.f32 %v5523_v28, %v246_v55  ;;  %6247 = vmatprep.mubr.msk.f32.mxu1 %vm91_vm0, %v291_v53  ;;  %v294_v57 = vmax.f32 %v7073_v54, 0.0 }
  0xfa   :  { %v6223_v58 = vpop.f32.mrf.mxu0  ;;  %6248 = vmatmul.mubr.msk.f32.gmra.mxu1 %vm91_vm0, %v292_v51 }
  0xfb   :  { %v293_v59 = vmax.f32 %v7075_v56, 0.0  ;;  %v7081_v60 = vadd.f32 %v6223_v58, %v5523_v28 }
  0xfc   :  { %v256_v61 = vpop.f32.mrf.mxu0 }
  0xfd   :  { %v7083_v62 = vadd.f32 %v5523_v28, %v256_v61  ;;  %6250 = vmatprep.mubr.msk.f32.mxu1 %vm91_vm0, %v293_v59  ;;  %v296_v63 = vmax.f32 %v7081_v60, 0.0 }
  0xfe   :  { %v6226_v0 = vpop.f32.mrf.mxu0  ;;  %6251 = vmatmul.mubr.msk.f32.gmra.mxu1 %vm91_vm0, %v294_v57 }
  0xff   :  { %v295_v1 = vmax.f32 %v7083_v62, 0.0  ;;  %v7089_v2 = vadd.f32 %v6226_v0, %v5523_v28 }
 0x100   :  { %v266_v3 = vpop.f32.mrf.mxu0 }
 0x101   :  { %v7091_v4 = vadd.f32 %v5523_v28, %v266_v3  ;;  %6253 = vmatprep.mubr.msk.f32.mxu1 %vm91_vm0, %v295_v1  ;;  %v298_v5 = vmax.f32 %v7089_v2, 0.0 }
 0x102   :  { %v6229_v6 = vpop.f32.mrf.mxu0  ;;  %6254 = vmatmul.mubr.msk.f32.gmra.mxu1 %vm91_vm0, %v296_v63 }
 0x103   :  { %v297_v7 = vmax.f32 %v7091_v4, 0.0  ;;  %v7097_v8 = vadd.f32 %v6229_v6, %v5523_v28 }
 0x104   :  { %v276_v9 = vpop.f32.mrf.mxu0 }
 0x105   :  { %v7099_v10 = vadd.f32 %v5523_v28, %v276_v9  ;;  %6256 = vmatprep.mubr.msk.f32.mxu1 %vm91_vm0, %v297_v7  ;;  %v300_v11 = vmax.f32 %v7097_v8, 0.0 }
 0x106   :  { %6257 = vmatmul.mubr.msk.f32.gmra.mxu1 %vm91_vm0, %v298_v5 }
 0x107   :  { %v299_v12 = vmax.f32 %v7099_v10, 0.0 }
 0x109   :  { %6259 = vmatprep.mubr.msk.f32.mxu1 %vm91_vm0, %v299_v12 }
 0x10a   :  { %6260 = vmatmul.mubr.msk.f32.gmra.mxu1 %vm91_vm0, %v300_v11 }
 0x1ae   :  { %v6240_v17 = vpop.f32.mrf.mxu1 }
 0x1af   :  { %v432_v18 = vadd.f32 %v6240_v17, %v5540_v16 }
 0x1b0   :  { %v426_v19 = vpop.f32.mrf.mxu1 }
 0x1b1   :  { %v427_v20 = vadd.f32 %v5540_v16, %v426_v19  ;;  %v506_v23 = vmax.f32 %v432_v18, 0.0  ;;  %v5574_v18 = vld [vmem:[%s9681_s4 + $0x20] sm:$0xff]  ;;  %v983_v19 = vld [vmem:[#allocation2 + $0x38] sm:$0xff] }
 0x1b2   :  { %v6243_v21 = vpop.f32.mrf.mxu1  ;;  %6300 = vmatprep.subr.mxu1 %v5574_v18  ;;  %6326 = vmatprep.subr.mxu0 %v983_v19 }
 0x1b3   :  { %v505_v22 = vmax.f32 %v427_v20, 0.0  ;;  %v442_v24 = vadd.f32 %v6243_v21, %v5540_v16  ;;  %6301 = vmatpush3.msra.mxu1 %v5574_v18  ;;  %v982_v20 = vld [vmem:[#allocation2 + $0x30] sm:$0xff]  ;;  %v980_v21 = vld [vmem:[#allocation2 + $0x20] sm:$0xff] }
 0x1b4   :  { %v436_v25 = vpop.f32.mrf.mxu1 }
 0x1b5   :  { %v437_v26 = vadd.f32 %v5540_v16, %v436_v25  ;;  %6270 = vmatprep.mubr.msk.f32.mxu0 %vm91_vm0, %v505_v22  ;;  %v508_v31 = vmax.f32 %v442_v24, 0.0  ;;  %v7141_v22 = vld [vmem:[%s9684_s7] ss:$0 sm:$0xff] }
 0x1b6   :  { %v6246_v27 = vpop.f32.mrf.mxu1  ;;  %6271 = vmatmul.mubr.msk.f32.vlgmr.msra.gmra.mxu0 %vm91_vm0, %v506_v23 }
 0x1b7   :  { %v507_v28 = vmax.f32 %v437_v26, 0.0  ;;  %v452_v29 = vadd.f32 %v6246_v27, %v5540_v16  ;;  %6327 = vmatpush3.msra.mxu0 %v983_v19 }
 0x1b8   :  { %v446_v33 = vpop.f32.mrf.mxu1  ;;  %6328 = vmatprep.subr.mxu0 %v982_v20 }
 0x1b9   :  { %v447_v35 = vadd.f32 %v5540_v16, %v446_v33  ;;  %6273 = vmatprep.mubr.msk.f32.mxu0 %vm91_vm0, %v507_v28  ;;  %v510_v36 = vmax.f32 %v452_v29, 0.0  ;;  %6329 = vmatpush3.msra.mxu0 %v982_v20 }
 0x1ba   :  { %v6249_v37 = vpop.f32.mrf.mxu1  ;;  %6274 = vmatmul.mubr.msk.f32.gmra.mxu0 %vm91_vm0, %v508_v31 }
 0x1bb   :  { %v509_v39 = vmax.f32 %v447_v35, 0.0  ;;  %v462_v40 = vadd.f32 %v6249_v37, %v5540_v16 }
 0x1bc   :  { %v456_v41 = vpop.f32.mrf.mxu1 }
 0x1bd   :  { %v457_v43 = vadd.f32 %v5540_v16, %v456_v41  ;;  %6276 = vmatprep.mubr.msk.f32.mxu0 %vm91_vm0, %v509_v39  ;;  %v512_v45 = vmax.f32 %v462_v40, 0.0 }
 0x1be   :  { %v6252_v46 = vpop.f32.mrf.mxu1  ;;  %6277 = vmatmul.mubr.msk.f32.gmra.mxu0 %vm91_vm0, %v510_v36 }
 0x1bf   :  { %v511_v47 = vmax.f32 %v457_v43, 0.0  ;;  %v472_v49 = vadd.f32 %v6252_v46, %v5540_v16 }
 0x1c0   :  { %v466_v51 = vpop.f32.mrf.mxu1 }
 0x1c1   :  { %v467_v52 = vadd.f32 %v5540_v16, %v466_v51  ;;  %6279 = vmatprep.mubr.msk.f32.mxu0 %vm91_vm0, %v511_v47  ;;  %v514_v53 = vmax.f32 %v472_v49, 0.0 }
 0x1c2   :  { %v6255_v55 = vpop.f32.mrf.mxu1  ;;  %6280 = vmatmul.mubr.msk.f32.gmra.mxu0 %vm91_vm0, %v512_v45 }
 0x1c3   :  { %v513_v57 = vmax.f32 %v467_v52, 0.0  ;;  %v482_v58 = vadd.f32 %v6255_v55, %v5540_v16 }
 0x1c4   :  { %v476_v59 = vpop.f32.mrf.mxu1 }
 0x1c5   :  { %v477_v61 = vadd.f32 %v5540_v16, %v476_v59  ;;  %6282 = vmatprep.mubr.msk.f32.mxu0 %vm91_vm0, %v513_v57  ;;  %v516_v63 = vmax.f32 %v482_v58, 0.0 }
 0x1c6   :  { %v6258_v0 = vpop.f32.mrf.mxu1  ;;  %6283 = vmatmul.mubr.msk.f32.gmra.mxu0 %vm91_vm0, %v514_v53 }
 0x1c7   :  { %v515_v1 = vmax.f32 %v477_v61, 0.0  ;;  %v492_v3 = vadd.f32 %v6258_v0, %v5540_v16 }
 0x1c8   :  { %v486_v5 = vpop.f32.mrf.mxu1 }
 0x1c9   :  { %v487_v6 = vadd.f32 %v5540_v16, %v486_v5  ;;  %6285 = vmatprep.mubr.msk.f32.mxu0 %vm91_vm0, %v515_v1  ;;  %v518_v7 = vmax.f32 %v492_v3, 0.0 }
 0x1ca   :  { %v6261_v9 = vpop.f32.mrf.mxu1  ;;  %6286 = vmatmul.mubr.msk.f32.gmra.mxu0 %vm91_vm0, %v516_v63 }
 0x1cb   :  { %v517_v11 = vmax.f32 %v487_v6, 0.0  ;;  %v502_v12 = vadd.f32 %v6261_v9, %v5540_v16 }
 0x1cc   :  { %v496_v13 = vpop.f32.mrf.mxu1 }
 0x1cd   :  { %v497_v14 = vadd.f32 %v5540_v16, %v496_v13  ;;  %6288 = vmatprep.mubr.msk.f32.mxu0 %vm91_vm0, %v517_v11  ;;  %v520_v15 = vmax.f32 %v502_v12, 0.0  ;;  %v981_v16 = vld [vmem:[#allocation2 + $0x28] sm:$0xff] }
 0x1ce   :  { %6289 = vmatmul.mubr.msk.f32.gmra.mxu0 %vm91_vm0, %v518_v7  ;;  %6330 = vmatprep.subr.mxu0 %v981_v16 }
 0x1cf   :  { %v519_v17 = vmax.f32 %v497_v14, 0.0  ;;  %6331 = vmatpush3.msra.mxu0 %v981_v16 }
 0x1d0   :  { %6332 = vmatprep.subr.mxu0 %v980_v21 }
 0x1d1   :  { %6291 = vmatprep.mubr.msk.f32.mxu0 %vm91_vm0, %v519_v17  ;;  %6333 = vmatpush3.msra.mxu0 %v980_v21 }
 0x1d2   :  { %6292 = vmatmul.mubr.msk.f32.gmra.mxu0 %vm91_vm0, %v520_v15 }
 0x276   :  { %v6272_v23 = vpop.f32.mrf.mxu0 }
 0x277   :  { %v652_v24 = vadd.f32 %v6272_v23, %v7141_v22 }
 0x278   :  { %v646_v25 = vpop.f32.mrf.mxu0 }
 0x279   :  { %v647_v26 = vadd.f32 %v7141_v22, %v646_v25  ;;  %v7146_v27 = vadd.f32 %v652_v24, %v7043_v30 }
 0x27a   :  { %v6275_v28 = vpop.f32.mrf.mxu0 }
 0x27b   :  { %v7149_v29 = vadd.f32 %v647_v26, %v7045_v32  ;;  %v662_v31 = vadd.f32 %v6275_v28, %v7141_v22  ;;  %v742_v37 = vmax.f32 %v7146_v27, 0.0  ;;  %v5579_v26 = vld [vmem:[%s9682_s5 + $0x1] ss:$0 sm:$0xff] }
 0x27c   :  { %v656_v33 = vpop.f32.mrf.mxu0 }
 0x27d   :  { %v741_v35 = vmax.f32 %v7149_v29, 0.0  ;;  %v657_v36 = vadd.f32 %v7141_v22, %v656_v33  ;;  %v7156_v39 = vadd.f32 %v662_v31, %v7047_v34 }
 0x27e   :  { %v6278_v40 = vpop.f32.mrf.mxu0 }
 0x27f   :  { %v7159_v30 = vadd.f32 %v657_v36, %v7051_v38  ;;  %v672_v41 = vadd.f32 %v6278_v40, %v7141_v22  ;;  %6302 = vmatprep.mubr.msk.f32.mxu1 %vm91_vm0, %v741_v35  ;;  %v744_v46 = vmax.f32 %v7156_v39, 0.0 }
 0x280   :  { %v666_v32 = vpop.f32.mrf.mxu0  ;;  %6303 = vmatmul.mubr.msk.f32.vlgmr.msra.gmra.mxu1 %vm91_vm0, %v742_v37 }
 0x281   :  { %v743_v43 = vmax.f32 %v7159_v30, 0.0  ;;  %v667_v45 = vadd.f32 %v7141_v22, %v666_v32  ;;  %v7168_v34 = vadd.f32 %v672_v41, %v7057_v42 }
 0x282   :  { %v6281_v47 = vpop.f32.mrf.mxu0 }
 0x283   :  { %v7171_v38 = vadd.f32 %v667_v45, %v7059_v44  ;;  %v682_v49 = vadd.f32 %v6281_v47, %v7141_v22  ;;  %6305 = vmatprep.mubr.msk.f32.mxu1 %vm91_vm0, %v743_v43  ;;  %v746_v55 = vmax.f32 %v7168_v34, 0.0 }
 0x284   :  { %v676_v51 = vpop.f32.mrf.mxu0  ;;  %6306 = vmatmul.mubr.msk.f32.gmra.mxu1 %vm91_vm0, %v744_v46 }
 0x285   :  { %v745_v52 = vmax.f32 %v7171_v38, 0.0  ;;  %v677_v53 = vadd.f32 %v7141_v22, %v676_v51  ;;  %v7180_v42 = vadd.f32 %v682_v49, %v7065_v48 }
 0x286   :  { %v6284_v57 = vpop.f32.mrf.mxu0 }
 0x287   :  { %v7183_v44 = vadd.f32 %v677_v53, %v7067_v50  ;;  %v692_v58 = vadd.f32 %v6284_v57, %v7141_v22  ;;  %6308 = vmatprep.mubr.msk.f32.mxu1 %vm91_vm0, %v745_v52  ;;  %v748_v0 = vmax.f32 %v7180_v42, 0.0 }
 0x288   :  { %v686_v59 = vpop.f32.mrf.mxu0  ;;  %6309 = vmatmul.mubr.msk.f32.gmra.mxu1 %vm91_vm0, %v746_v55 }
 0x289   :  { %v747_v61 = vmax.f32 %v7183_v44, 0.0  ;;  %v687_v63 = vadd.f32 %v7141_v22, %v686_v59  ;;  %v7192_v48 = vadd.f32 %v692_v58, %v7073_v54 }
 0x28a   :  { %v6287_v1 = vpop.f32.mrf.mxu0 }
 0x28b   :  { %v7195_v50 = vadd.f32 %v687_v63, %v7075_v56  ;;  %v702_v3 = vadd.f32 %v6287_v1, %v7141_v22  ;;  %6311 = vmatprep.mubr.msk.f32.mxu1 %vm91_vm0, %v747_v61  ;;  %v750_v9 = vmax.f32 %v7192_v48, 0.0 }
 0x28c   :  { %v696_v5 = vpop.f32.mrf.mxu0  ;;  %6312 = vmatmul.mubr.msk.f32.gmra.mxu1 %vm91_vm0, %v748_v0 }
 0x28d   :  { %v749_v6 = vmax.f32 %v7195_v50, 0.0  ;;  %v697_v7 = vadd.f32 %v7141_v22, %v696_v5  ;;  %v7204_v54 = vadd.f32 %v702_v3, %v7081_v60 }
 0x28e   :  { %v6290_v11 = vpop.f32.mrf.mxu0 }
 0x28f   :  { %v7207_v56 = vadd.f32 %v697_v7, %v7083_v62  ;;  %v712_v12 = vadd.f32 %v6290_v11, %v7141_v22  ;;  %6314 = vmatprep.mubr.msk.f32.mxu1 %vm91_vm0, %v749_v6  ;;  %v752_v17 = vmax.f32 %v7204_v54, 0.0 }
 0x290   :  { %v706_v13 = vpop.f32.mrf.mxu0  ;;  %6315 = vmatmul.mubr.msk.f32.gmra.mxu1 %vm91_vm0, %v750_v9 }
 0x291   :  { %v751_v14 = vmax.f32 %v7207_v56, 0.0  ;;  %v707_v15 = vadd.f32 %v7141_v22, %v706_v13  ;;  %v7216_v60 = vadd.f32 %v712_v12, %v7089_v2 }
 0x292   :  { %v6293_v18 = vpop.f32.mrf.mxu0 }
 0x293   :  { %v7219_v62 = vadd.f32 %v707_v15, %v7091_v4  ;;  %v722_v19 = vadd.f32 %v6293_v18, %v7141_v22  ;;  %6317 = vmatprep.mubr.msk.f32.mxu1 %vm91_vm0, %v751_v14  ;;  %v754_v23 = vmax.f32 %v7216_v60, 0.0 }
 0x294   :  { %v716_v20 = vpop.f32.mrf.mxu0  ;;  %6318 = vmatmul.mubr.msk.f32.gmra.mxu1 %vm91_vm0, %v752_v17 }
 0x295   :  { %v753_v16 = vmax.f32 %v7219_v62, 0.0  ;;  %v717_v21 = vadd.f32 %v7141_v22, %v716_v20  ;;  %v7228_v2 = vadd.f32 %v722_v19, %v7097_v8  ;;  %v5617_v8 = vld [vmem:[%s9681_s4 + $0x58] sm:$0xff]  ;;  %v5615_v22 = vld [vmem:[%s9681_s4 + $0x48] sm:$0xff] }
 0x296   :  { %6358 = vmatprep.subr.mxu1 %v5617_v8 }
 0x297   :  { %v7231_v24 = vadd.f32 %v717_v21, %v7099_v10  ;;  %6320 = vmatprep.mubr.msk.f32.mxu1 %vm91_vm0, %v753_v16  ;;  %v756_v25 = vmax.f32 %v7228_v2, 0.0  ;;  %v5616_v10 = vld [vmem:[%s9681_s4 + $0x50] sm:$0xff]  ;;  %6359 = vmatpush3.msra.mxu1 %v5617_v8 }
 0x298   :  { %6321 = vmatmul.mubr.msk.f32.gmra.mxu1 %vm91_vm0, %v754_v23  ;;  %6360 = vmatprep.subr.mxu1 %v5616_v10 }
 0x299   :  { %v755_v4 = vmax.f32 %v7231_v24, 0.0  ;;  %6361 = vmatpush3.msra.mxu1 %v5616_v10 }
 0x29a   :  { %6362 = vmatprep.subr.mxu1 %v5615_v22 }
 0x29b   :  { %6323 = vmatprep.mubr.msk.f32.mxu1 %vm91_vm0, %v755_v4  ;;  %6363 = vmatpush3.msra.mxu1 %v5615_v22 }
 0x29c   :  { %6324 = vmatmul.mubr.msk.f32.gmra.mxu1 %vm91_vm0, %v756_v25 }
 0x340   :  { %v6304_v28 = vpop.f32.mrf.mxu1 }
 0x341   :  { %v890_v31 = vadd.f32 %v6304_v28, %v5579_v26 }
 0x342   :  { %v884_v33 = vpop.f32.mrf.mxu1 }
 0x343   :  { %v885_v35 = vadd.f32 %v5579_v26, %v884_v33  ;;  %v964_v40 = vmax.f32 %v890_v31, 0.0  ;;  %v5614_v31 = vld [vmem:[%s9681_s4 + $0x40] sm:$0xff]  ;;  %v1443_v33 = vld [vmem:[#allocation2 + $0x58] sm:$0xff] }
 0x344   :  { %v6307_v36 = vpop.f32.mrf.mxu1  ;;  %6364 = vmatprep.subr.mxu1 %v5614_v31  ;;  %6390 = vmatprep.subr.mxu0 %v1443_v33 }
 0x345   :  { %v963_v37 = vmax.f32 %v885_v35, 0.0  ;;  %v900_v41 = vadd.f32 %v6307_v36, %v5579_v26  ;;  %6365 = vmatpush3.msra.mxu1 %v5614_v31  ;;  %v1442_v35 = vld [vmem:[#allocation2 + $0x50] sm:$0xff]  ;;  %v1440_v36 = vld [vmem:[#allocation2 + $0x40] sm:$0xff] }
 0x346   :  { %v894_v32 = vpop.f32.mrf.mxu1 }
 0x347   :  { %v895_v43 = vadd.f32 %v5579_v26, %v894_v32  ;;  %6334 = vmatprep.mubr.msk.f32.mxu0 %vm91_vm0, %v963_v37  ;;  %v966_v47 = vmax.f32 %v900_v41, 0.0  ;;  %v7273_v37 = vld [vmem:[%s9684_s7 + $0x1] ss:$0 sm:$0xff] }
 0x348   :  { %v6310_v45 = vpop.f32.mrf.mxu1  ;;  %6335 = vmatmul.mubr.msk.f32.vlgmr.msra.gmra.mxu0 %vm91_vm0, %v964_v40 }
 0x349   :  { %v965_v46 = vmax.f32 %v895_v43, 0.0  ;;  %v910_v49 = vadd.f32 %v6310_v45, %v5579_v26  ;;  %6391 = vmatpush3.msra.mxu0 %v1443_v33 }
 0x34a   :  { %v904_v51 = vpop.f32.mrf.mxu1  ;;  %6392 = vmatprep.subr.mxu0 %v1442_v35 }
 0x34b   :  { %v905_v52 = vadd.f32 %v5579_v26, %v904_v51  ;;  %6337 = vmatprep.mubr.msk.f32.mxu0 %vm91_vm0, %v965_v46  ;;  %v968_v57 = vmax.f32 %v910_v49, 0.0  ;;  %6393 = vmatpush3.msra.mxu0 %v1442_v35 }
 0x34c   :  { %v6313_v53 = vpop.f32.mrf.mxu1  ;;  %6338 = vmatmul.mubr.msk.f32.gmra.mxu0 %vm91_vm0, %v966_v47 }
 0x34d   :  { %v967_v55 = vmax.f32 %v905_v52, 0.0  ;;  %v920_v58 = vadd.f32 %v6313_v53, %v5579_v26 }
 0x34e   :  { %v914_v59 = vpop.f32.mrf.mxu1 }
 0x34f   :  { %v915_v61 = vadd.f32 %v5579_v26, %v914_v59  ;;  %6340 = vmatprep.mubr.msk.f32.mxu0 %vm91_vm0, %v967_v55  ;;  %v970_v1 = vmax.f32 %v920_v58, 0.0 }
 0x350   :  { %v6316_v63 = vpop.f32.mrf.mxu1  ;;  %6341 = vmatmul.mubr.msk.f32.gmra.mxu0 %vm91_vm0, %v968_v57 }
 0x351   :  { %v969_v0 = vmax.f32 %v915_v61, 0.0  ;;  %v930_v3 = vadd.f32 %v6316_v63, %v5579_v26 }
 0x352   :  { %v924_v5 = vpop.f32.mrf.mxu1 }
 0x353   :  { %v925_v6 = vadd.f32 %v5579_v26, %v924_v5  ;;  %6343 = vmatprep.mubr.msk.f32.mxu0 %vm91_vm0, %v969_v0  ;;  %v972_v11 = vmax.f32 %v930_v3, 0.0 }
 0x354   :  { %v6319_v7 = vpop.f32.mrf.mxu1  ;;  %6344 = vmatmul.mubr.msk.f32.gmra.mxu0 %vm91_vm0, %v970_v1 }
 0x355   :  { %v971_v9 = vmax.f32 %v925_v6, 0.0  ;;  %v940_v12 = vadd.f32 %v6319_v7, %v5579_v26 }
 0x356   :  { %v934_v13 = vpop.f32.mrf.mxu1 }
 0x357   :  { %v935_v14 = vadd.f32 %v5579_v26, %v934_v13  ;;  %6346 = vmatprep.mubr.msk.f32.mxu0 %vm91_vm0, %v971_v9  ;;  %v974_v18 = vmax.f32 %v940_v12, 0.0 }
 0x358   :  { %v6322_v15 = vpop.f32.mrf.mxu1  ;;  %6347 = vmatmul.mubr.msk.f32.gmra.mxu0 %vm91_vm0, %v972_v11 }
 0x359   :  { %v973_v17 = vmax.f32 %v935_v14, 0.0  ;;  %v950_v19 = vadd.f32 %v6322_v15, %v5579_v26 }
 0x35a   :  { %v944_v20 = vpop.f32.mrf.mxu1 }
 0x35b   :  { %v945_v16 = vadd.f32 %v5579_v26, %v944_v20  ;;  %6349 = vmatprep.mubr.msk.f32.mxu0 %vm91_vm0, %v973_v17  ;;  %v976_v4 = vmax.f32 %v950_v19, 0.0 }
 0x35c   :  { %v6325_v21 = vpop.f32.mrf.mxu1  ;;  %6350 = vmatmul.mubr.msk.f32.gmra.mxu0 %vm91_vm0, %v974_v18 }
 0x35d   :  { %v975_v23 = vmax.f32 %v945_v16, 0.0  ;;  %v960_v25 = vadd.f32 %v6325_v21, %v5579_v26 }
 0x35e   :  { %v954_v8 = vpop.f32.mrf.mxu1 }
 0x35f   :  { %v955_v10 = vadd.f32 %v5579_v26, %v954_v8  ;;  %6352 = vmatprep.mubr.msk.f32.mxu0 %vm91_vm0, %v975_v23  ;;  %v978_v28 = vmax.f32 %v960_v25, 0.0  ;;  %v1441_v26 = vld [vmem:[#allocation2 + $0x48] sm:$0xff] }
 0x360   :  { %6353 = vmatmul.mubr.msk.f32.gmra.mxu0 %vm91_vm0, %v976_v4  ;;  %6394 = vmatprep.subr.mxu0 %v1441_v26 }
 0x361   :  { %v977_v22 = vmax.f32 %v955_v10, 0.0  ;;  %6395 = vmatpush3.msra.mxu0 %v1441_v26 }
 0x362   :  { %6396 = vmatprep.subr.mxu0 %v1440_v36 }
 0x363   :  { %6355 = vmatprep.mubr.msk.f32.mxu0 %vm91_vm0, %v977_v22  ;;  %6397 = vmatpush3.msra.mxu0 %v1440_v36 }
 0x364   :  { %6356 = vmatmul.mubr.msk.f32.gmra.mxu0 %vm91_vm0, %v978_v28 }
 0x408   :  { %v6336_v40 = vpop.f32.mrf.mxu0 }
 0x409   :  { %v1112_v41 = vadd.f32 %v6336_v40, %v7273_v37 }
 0x40a   :  { %v1106_v32 = vpop.f32.mrf.mxu0 }
 0x40b   :  { %v1107_v43 = vadd.f32 %v7273_v37, %v1106_v32  ;;  %v7278_v45 = vadd.f32 %v1112_v41, %v7146_v27 }
 0x40c   :  { %v6339_v46 = vpop.f32.mrf.mxu0 }
 0x40d   :  { %v7281_v47 = vadd.f32 %v1107_v43, %v7149_v29  ;;  %v1122_v49 = vadd.f32 %v6339_v46, %v7273_v37  ;;  %v1202_v55 = vmax.f32 %v7278_v45, 0.0  ;;  %v5619_v43 = vld [vmem:[%s9682_s5 + $0x2] ss:$0 sm:$0xff] }
 0x40e   :  { %v1116_v51 = vpop.f32.mrf.mxu0 }
 0x40f   :  { %v1201_v52 = vmax.f32 %v7281_v47, 0.0  ;;  %v1117_v53 = vadd.f32 %v7273_v37, %v1116_v51  ;;  %v7288_v57 = vadd.f32 %v1122_v49, %v7156_v39 }
 0x410   :  { %v6342_v58 = vpop.f32.mrf.mxu0 }
 0x411   :  { %v7291_v27 = vadd.f32 %v1117_v53, %v7159_v30  ;;  %v1132_v59 = vadd.f32 %v6342_v58, %v7273_v37  ;;  %6366 = vmatprep.mubr.msk.f32.mxu1 %vm91_vm0, %v1201_v52  ;;  %v1204_v0 = vmax.f32 %v7288_v57, 0.0 }
 0x412   :  { %v1126_v29 = vpop.f32.mrf.mxu0  ;;  %6367 = vmatmul.mubr.msk.f32.vlgmr.msra.gmra.mxu1 %vm91_vm0, %v1202_v55 }
 0x413   :  { %v1203_v61 = vmax.f32 %v7291_v27, 0.0  ;;  %v1127_v63 = vadd.f32 %v7273_v37, %v1126_v29  ;;  %v7300_v39 = vadd.f32 %v1132_v59, %v7168_v34 }
 0x414   :  { %v6345_v1 = vpop.f32.mrf.mxu0 }
 0x415   :  { %v7303_v30 = vadd.f32 %v1127_v63, %v7171_v38  ;;  %v1142_v3 = vadd.f32 %v6345_v1, %v7273_v37  ;;  %6369 = vmatprep.mubr.msk.f32.mxu1 %vm91_vm0, %v1203_v61  ;;  %v1206_v9 = vmax.f32 %v7300_v39, 0.0 }
 0x416   :  { %v1136_v5 = vpop.f32.mrf.mxu0  ;;  %6370 = vmatmul.mubr.msk.f32.gmra.mxu1 %vm91_vm0, %v1204_v0 }
 0x417   :  { %v1205_v6 = vmax.f32 %v7303_v30, 0.0  ;;  %v1137_v7 = vadd.f32 %v7273_v37, %v1136_v5  ;;  %v7312_v34 = vadd.f32 %v1142_v3, %v7180_v42 }
 0x418   :  { %v6348_v11 = vpop.f32.mrf.mxu0 }
 0x419   :  { %v7315_v38 = vadd.f32 %v1137_v7, %v7183_v44  ;;  %v1152_v12 = vadd.f32 %v6348_v11, %v7273_v37  ;;  %6372 = vmatprep.mubr.msk.f32.mxu1 %vm91_vm0, %v1205_v6  ;;  %v1208_v17 = vmax.f32 %v7312_v34, 0.0 }
 0x41a   :  { %v1146_v13 = vpop.f32.mrf.mxu0  ;;  %6373 = vmatmul.mubr.msk.f32.gmra.mxu1 %vm91_vm0, %v1206_v9 }
 0x41b   :  { %v1207_v14 = vmax.f32 %v7315_v38, 0.0  ;;  %v1147_v15 = vadd.f32 %v7273_v37, %v1146_v13  ;;  %v7324_v42 = vadd.f32 %v1152_v12, %v7192_v48 }
 0x41c   :  { %v6351_v18 = vpop.f32.mrf.mxu0 }
 0x41d   :  { %v7327_v44 = vadd.f32 %v1147_v15, %v7195_v50  ;;  %v1162_v19 = vadd.f32 %v6351_v18, %v7273_v37  ;;  %6375 = vmatprep.mubr.msk.f32.mxu1 %vm91_vm0, %v1207_v14  ;;  %v1210_v23 = vmax.f32 %v7324_v42, 0.0 }
 0x41e   :  { %v1156_v20 = vpop.f32.mrf.mxu0  ;;  %6376 = vmatmul.mubr.msk.f32.gmra.mxu1 %vm91_vm0, %v1208_v17 }
 0x41f   :  { %v1209_v16 = vmax.f32 %v7327_v44, 0.0  ;;  %v1157_v21 = vadd.f32 %v7273_v37, %v1156_v20  ;;  %v7336_v48 = vadd.f32 %v1162_v19, %v7204_v54 }
 0x420   :  { %v6354_v4 = vpop.f32.mrf.mxu0 }
 0x421   :  { %v7339_v50 = vadd.f32 %v1157_v21, %v7207_v56  ;;  %v1172_v25 = vadd.f32 %v6354_v4, %v7273_v37  ;;  %6378 = vmatprep.mubr.msk.f32.mxu1 %vm91_vm0, %v1209_v16  ;;  %v1212_v28 = vmax.f32 %v7336_v48, 0.0 }
 0x422   :  { %v1166_v8 = vpop.f32.mrf.mxu0  ;;  %6379 = vmatmul.mubr.msk.f32.gmra.mxu1 %vm91_vm0, %v1210_v23 }
 0x423   :  { %v1211_v10 = vmax.f32 %v7339_v50, 0.0  ;;  %v1167_v22 = vadd.f32 %v7273_v37, %v1166_v8  ;;  %v7348_v54 = vadd.f32 %v1172_v25, %v7216_v60 }
 0x424   :  { %v6357_v31 = vpop.f32.mrf.mxu0 }
 0x425   :  { %v7351_v56 = vadd.f32 %v1167_v22, %v7219_v62  ;;  %v1182_v33 = vadd.f32 %v6357_v31, %v7273_v37  ;;  %6381 = vmatprep.mubr.msk.f32.mxu1 %vm91_vm0, %v1211_v10  ;;  %v1214_v40 = vmax.f32 %v7348_v54, 0.0 }
 0x426   :  { %v1176_v35 = vpop.f32.mrf.mxu0  ;;  %6382 = vmatmul.mubr.msk.f32.gmra.mxu1 %vm91_vm0, %v1212_v28 }
 0x427   :  { %v1213_v26 = vmax.f32 %v7351_v56, 0.0  ;;  %v1177_v36 = vadd.f32 %v7273_v37, %v1176_v35  ;;  %v7360_v60 = vadd.f32 %v1182_v33, %v7228_v2  ;;  %v5657_v2 = vld [vmem:[%s9681_s4 + $0x78] sm:$0xff]  ;;  %v5655_v37 = vld [vmem:[%s9681_s4 + $0x68] sm:$0xff] }
 0x428   :  { %6422 = vmatprep.subr.mxu1 %v5657_v2 }
 0x429   :  { %v7363_v41 = vadd.f32 %v1177_v36, %v7231_v24  ;;  %6384 = vmatprep.mubr.msk.f32.mxu1 %vm91_vm0, %v1213_v26  ;;  %v1216_v32 = vmax.f32 %v7360_v60, 0.0  ;;  %v5656_v24 = vld [vmem:[%s9681_s4 + $0x70] sm:$0xff]  ;;  %6423 = vmatpush3.msra.mxu1 %v5657_v2 }
 0x42a   :  { %6385 = vmatmul.mubr.msk.f32.gmra.mxu1 %vm91_vm0, %v1214_v40  ;;  %6424 = vmatprep.subr.mxu1 %v5656_v24 }
 0x42b   :  { %v1215_v62 = vmax.f32 %v7363_v41, 0.0  ;;  %6425 = vmatpush3.msra.mxu1 %v5656_v24 }
 0x42c   :  { %6426 = vmatprep.subr.mxu1 %v5655_v37 }
 0x42d   :  { %6387 = vmatprep.mubr.msk.f32.mxu1 %vm91_vm0, %v1215_v62  ;;  %6427 = vmatpush3.msra.mxu1 %v5655_v37 }
 0x42e   :  { %6388 = vmatmul.mubr.msk.f32.gmra.mxu1 %vm91_vm0, %v1216_v32 }
 0x4d2   :  { %v6368_v46 = vpop.f32.mrf.mxu1 }
 0x4d3   :  { %v1350_v49 = vadd.f32 %v6368_v46, %v5619_v43 }
 0x4d4   :  { %v1344_v51 = vpop.f32.mrf.mxu1 }
 0x4d5   :  { %v1345_v52 = vadd.f32 %v5619_v43, %v1344_v51  ;;  %v1424_v58 = vmax.f32 %v1350_v49, 0.0  ;;  %v5654_v49 = vld [vmem:[%s9681_s4 + $0x60] sm:$0xff]  ;;  %v1903_v51 = vld [vmem:[#allocation2 + $0x78] sm:$0xff] }
 0x4d6   :  { %v6371_v53 = vpop.f32.mrf.mxu1  ;;  %6428 = vmatprep.subr.mxu1 %v5654_v49  ;;  %6454 = vmatprep.subr.mxu0 %v1903_v51 }
 0x4d7   :  { %v1423_v55 = vmax.f32 %v1345_v52, 0.0  ;;  %v1360_v59 = vadd.f32 %v6371_v53, %v5619_v43  ;;  %6429 = vmatpush3.msra.mxu1 %v5654_v49  ;;  %v1902_v52 = vld [vmem:[#allocation2 + $0x70] sm:$0xff]  ;;  %v1900_v53 = vld [vmem:[#allocation2 + $0x60] sm:$0xff] }
 0x4d8   :  { %v1354_v29 = vpop.f32.mrf.mxu1 }
 0x4d9   :  { %v1355_v61 = vadd.f32 %v5619_v43, %v1354_v29  ;;  %6398 = vmatprep.mubr.msk.f32.mxu0 %vm91_vm0, %v1423_v55  ;;  %v1426_v1 = vmax.f32 %v1360_v59, 0.0  ;;  %v7405_v55 = vld [vmem:[%s9684_s7 + $0x2] ss:$0 sm:$0xff] }
 0x4da   :  { %v6374_v63 = vpop.f32.mrf.mxu1  ;;  %6399 = vmatmul.mubr.msk.f32.vlgmr.msra.gmra.mxu0 %vm91_vm0, %v1424_v58 }
 0x4db   :  { %v1425_v0 = vmax.f32 %v1355_v61, 0.0  ;;  %v1370_v3 = vadd.f32 %v6374_v63, %v5619_v43  ;;  %6455 = vmatpush3.msra.mxu0 %v1903_v51 }
 0x4dc   :  { %v1364_v5 = vpop.f32.mrf.mxu1  ;;  %6456 = vmatprep.subr.mxu0 %v1902_v52 }
 0x4dd   :  { %v1365_v6 = vadd.f32 %v5619_v43, %v1364_v5  ;;  %6401 = vmatprep.mubr.msk.f32.mxu0 %vm91_vm0, %v1425_v0  ;;  %v1428_v11 = vmax.f32 %v1370_v3, 0.0  ;;  %6457 = vmatpush3.msra.mxu0 %v1902_v52 }
 0x4de   :  { %v6377_v7 = vpop.f32.mrf.mxu1  ;;  %6402 = vmatmul.mubr.msk.f32.gmra.mxu0 %vm91_vm0, %v1426_v1 }
 0x4df   :  { %v1427_v9 = vmax.f32 %v1365_v6, 0.0  ;;  %v1380_v12 = vadd.f32 %v6377_v7, %v5619_v43 }
 0x4e0   :  { %v1374_v13 = vpop.f32.mrf.mxu1 }
 0x4e1   :  { %v1375_v14 = vadd.f32 %v5619_v43, %v1374_v13  ;;  %6404 = vmatprep.mubr.msk.f32.mxu0 %vm91_vm0, %v1427_v9  ;;  %v1430_v18 = vmax.f32 %v1380_v12, 0.0 }
 0x4e2   :  { %v6380_v15 = vpop.f32.mrf.mxu1  ;;  %6405 = vmatmul.mubr.msk.f32.gmra.mxu0 %vm91_vm0, %v1428_v11 }
 0x4e3   :  { %v1429_v17 = vmax.f32 %v1375_v14, 0.0  ;;  %v1390_v19 = vadd.f32 %v6380_v15, %v5619_v43 }
 0x4e4   :  { %v1384_v20 = vpop.f32.mrf.mxu1 }
 0x4e5   :  { %v1385_v16 = vadd.f32 %v5619_v43, %v1384_v20  ;;  %6407 = vmatprep.mubr.msk.f32.mxu0 %vm91_vm0, %v1429_v17  ;;  %v1432_v4 = vmax.f32 %v1390_v19, 0.0 }
 0x4e6   :  { %v6383_v21 = vpop.f32.mrf.mxu1  ;;  %6408 = vmatmul.mubr.msk.f32.gmra.mxu0 %vm91_vm0, %v1430_v18 }
 0x4e7   :  { %v1431_v23 = vmax.f32 %v1385_v16, 0.0  ;;  %v1400_v25 = vadd.f32 %v6383_v21, %v5619_v43 }
 0x4e8   :  { %v1394_v8 = vpop.f32.mrf.mxu1 }
 0x4e9   :  { %v1395_v10 = vadd.f32 %v5619_v43, %v1394_v8  ;;  %6410 = vmatprep.mubr.msk.f32.mxu0 %vm91_vm0, %v1431_v23  ;;  %v1434_v31 = vmax.f32 %v1400_v25, 0.0 }
 0x4ea   :  { %v6386_v22 = vpop.f32.mrf.mxu1  ;;  %6411 = vmatmul.mubr.msk.f32.gmra.mxu0 %vm91_vm0, %v1432_v4 }
 0x4eb   :  { %v1433_v28 = vmax.f32 %v1395_v10, 0.0  ;;  %v1410_v33 = vadd.f32 %v6386_v22, %v5619_v43 }
 0x4ec   :  { %v1404_v35 = vpop.f32.mrf.mxu1 }
 0x4ed   :  { %v1405_v26 = vadd.f32 %v5619_v43, %v1404_v35  ;;  %6413 = vmatprep.mubr.msk.f32.mxu0 %vm91_vm0, %v1433_v28  ;;  %v1436_v62 = vmax.f32 %v1410_v33, 0.0 }
 0x4ee   :  { %v6389_v36 = vpop.f32.mrf.mxu1  ;;  %6414 = vmatmul.mubr.msk.f32.gmra.mxu0 %vm91_vm0, %v1434_v31 }
 0x4ef   :  { %v1435_v40 = vmax.f32 %v1405_v26, 0.0  ;;  %v1420_v32 = vadd.f32 %v6389_v36, %v5619_v43 }
 0x4f0   :  { %v1414_v2 = vpop.f32.mrf.mxu1 }
 0x4f1   :  { %v1415_v24 = vadd.f32 %v5619_v43, %v1414_v2  ;;  %6416 = vmatprep.mubr.msk.f32.mxu0 %vm91_vm0, %v1435_v40  ;;  %v1438_v46 = vmax.f32 %v1420_v32, 0.0  ;;  %v1901_v43 = vld [vmem:[#allocation2 + $0x68] sm:$0xff] }
 0x4f2   :  { %6417 = vmatmul.mubr.msk.f32.gmra.mxu0 %vm91_vm0, %v1436_v62  ;;  %6458 = vmatprep.subr.mxu0 %v1901_v43 }
 0x4f3   :  { %v1437_v37 = vmax.f32 %v1415_v24, 0.0  ;;  %6459 = vmatpush3.msra.mxu0 %v1901_v43 }
 0x4f4   :  { %6460 = vmatprep.subr.mxu0 %v1900_v53 }
 0x4f5   :  { %6419 = vmatprep.mubr.msk.f32.mxu0 %vm91_vm0, %v1437_v37  ;;  %6461 = vmatpush3.msra.mxu0 %v1900_v53 }
 0x4f6   :  { %6420 = vmatmul.mubr.msk.f32.gmra.mxu0 %vm91_vm0, %v1438_v46 }
 0x59a   :  { %v6400_v58 = vpop.f32.mrf.mxu0 }
 0x59b   :  { %v1572_v59 = vadd.f32 %v6400_v58, %v7405_v55 }
 0x59c   :  { %v1566_v29 = vpop.f32.mrf.mxu0 }
 0x59d   :  { %v1567_v61 = vadd.f32 %v7405_v55, %v1566_v29  ;;  %v7410_v63 = vadd.f32 %v1572_v59, %v7278_v45 }
 0x59e   :  { %v6403_v0 = vpop.f32.mrf.mxu0 }
 0x59f   :  { %v7413_v1 = vadd.f32 %v1567_v61, %v7281_v47  ;;  %v1582_v3 = vadd.f32 %v6403_v0, %v7405_v55  ;;  %v1662_v9 = vmax.f32 %v7410_v63, 0.0  ;;  %v5659_v61 = vld [vmem:[%s9682_s5 + $0x3] ss:$0 sm:$0xff] }
 0x5a0   :  { %v1576_v5 = vpop.f32.mrf.mxu0 }
 0x5a1   :  { %v1661_v6 = vmax.f32 %v7413_v1, 0.0  ;;  %v1577_v7 = vadd.f32 %v7405_v55, %v1576_v5  ;;  %v7420_v11 = vadd.f32 %v1582_v3, %v7288_v57 }
 0x5a2   :  { %v6406_v12 = vpop.f32.mrf.mxu0 }
 0x5a3   :  { %v7423_v45 = vadd.f32 %v1577_v7, %v7291_v27  ;;  %v1592_v13 = vadd.f32 %v6406_v12, %v7405_v55  ;;  %6430 = vmatprep.mubr.msk.f32.mxu1 %vm91_vm0, %v1661_v6  ;;  %v1664_v17 = vmax.f32 %v7420_v11, 0.0 }
 0x5a4   :  { %v1586_v47 = vpop.f32.mrf.mxu0  ;;  %6431 = vmatmul.mubr.msk.f32.vlgmr.msra.gmra.mxu1 %vm91_vm0, %v1662_v9 }
 0x5a5   :  { %v1663_v14 = vmax.f32 %v7423_v45, 0.0  ;;  %v1587_v15 = vadd.f32 %v7405_v55, %v1586_v47  ;;  %v7432_v57 = vadd.f32 %v1592_v13, %v7300_v39 }
 0x5a6   :  { %v6409_v18 = vpop.f32.mrf.mxu0 }
 0x5a7   :  { %v7435_v27 = vadd.f32 %v1587_v15, %v7303_v30  ;;  %v1602_v19 = vadd.f32 %v6409_v18, %v7405_v55  ;;  %6433 = vmatprep.mubr.msk.f32.mxu1 %vm91_vm0, %v1663_v14  ;;  %v1666_v23 = vmax.f32 %v7432_v57, 0.0 }
 0x5a8   :  { %v1596_v20 = vpop.f32.mrf.mxu0  ;;  %6434 = vmatmul.mubr.msk.f32.gmra.mxu1 %vm91_vm0, %v1664_v17 }
 0x5a9   :  { %v1665_v16 = vmax.f32 %v7435_v27, 0.0  ;;  %v1597_v21 = vadd.f32 %v7405_v55, %v1596_v20  ;;  %v7444_v39 = vadd.f32 %v1602_v19, %v7312_v34 }
 0x5aa   :  { %v6412_v4 = vpop.f32.mrf.mxu0 }
 0x5ab   :  { %v7447_v30 = vadd.f32 %v1597_v21, %v7315_v38  ;;  %v1612_v25 = vadd.f32 %v6412_v4, %v7405_v55  ;;  %6436 = vmatprep.mubr.msk.f32.mxu1 %vm91_vm0, %v1665_v16  ;;  %v1668_v28 = vmax.f32 %v7444_v39, 0.0 }
 0x5ac   :  { %v1606_v8 = vpop.f32.mrf.mxu0  ;;  %6437 = vmatmul.mubr.msk.f32.gmra.mxu1 %vm91_vm0, %v1666_v23 }
 0x5ad   :  { %v1667_v10 = vmax.f32 %v7447_v30, 0.0  ;;  %v1607_v22 = vadd.f32 %v7405_v55, %v1606_v8  ;;  %v7456_v34 = vadd.f32 %v1612_v25, %v7324_v42 }
 0x5ae   :  { %v6415_v31 = vpop.f32.mrf.mxu0 }
 0x5af   :  { %v7459_v38 = vadd.f32 %v1607_v22, %v7327_v44  ;;  %v1622_v33 = vadd.f32 %v6415_v31, %v7405_v55  ;;  %6439 = vmatprep.mubr.msk.f32.mxu1 %vm91_vm0, %v1667_v10  ;;  %v1670_v40 = vmax.f32 %v7456_v34, 0.0 }
 0x5b0   :  { %v1616_v35 = vpop.f32.mrf.mxu0  ;;  %6440 = vmatmul.mubr.msk.f32.gmra.mxu1 %vm91_vm0, %v1668_v28 }
 0x5b1   :  { %v1669_v26 = vmax.f32 %v7459_v38, 0.0  ;;  %v1617_v36 = vadd.f32 %v7405_v55, %v1616_v35  ;;  %v7468_v42 = vadd.f32 %v1622_v33, %v7336_v48 }
 0x5b2   :  { %v6418_v62 = vpop.f32.mrf.mxu0 }
 0x5b3   :  { %v7471_v44 = vadd.f32 %v1617_v36, %v7339_v50  ;;  %v1632_v32 = vadd.f32 %v6418_v62, %v7405_v55  ;;  %6442 = vmatprep.mubr.msk.f32.mxu1 %vm91_vm0, %v1669_v26  ;;  %v1672_v46 = vmax.f32 %v7468_v42, 0.0 }
 0x5b4   :  { %v1626_v2 = vpop.f32.mrf.mxu0  ;;  %6443 = vmatmul.mubr.msk.f32.gmra.mxu1 %vm91_vm0, %v1670_v40 }
 0x5b5   :  { %v1671_v24 = vmax.f32 %v7471_v44, 0.0  ;;  %v1627_v37 = vadd.f32 %v7405_v55, %v1626_v2  ;;  %v7480_v48 = vadd.f32 %v1632_v32, %v7348_v54 }
 0x5b6   :  { %v6421_v49 = vpop.f32.mrf.mxu0 }
 0x5b7   :  { %v7483_v50 = vadd.f32 %v1627_v37, %v7351_v56  ;;  %v1642_v51 = vadd.f32 %v6421_v49, %v7405_v55  ;;  %6445 = vmatprep.mubr.msk.f32.mxu1 %vm91_vm0, %v1671_v24  ;;  %v1674_v58 = vmax.f32 %v7480_v48, 0.0 }
 0x5b8   :  { %v1636_v52 = vpop.f32.mrf.mxu0  ;;  %6446 = vmatmul.mubr.msk.f32.gmra.mxu1 %vm91_vm0, %v1672_v46 }
 0x5b9   :  { %v1673_v43 = vmax.f32 %v7483_v50, 0.0  ;;  %v1637_v53 = vadd.f32 %v7405_v55, %v1636_v52  ;;  %v7492_v54 = vadd.f32 %v1642_v51, %v7360_v60  ;;  %v5697_v60 = vld [vmem:[%s9681_s4 + $0x98] sm:$0xff]  ;;  %v5695_v55 = vld [vmem:[%s9681_s4 + $0x88] sm:$0xff] }
 0x5ba   :  { %6486 = vmatprep.subr.mxu1 %v5697_v60 }
 0x5bb   :  { %v7495_v59 = vadd.f32 %v1637_v53, %v7363_v41  ;;  %6448 = vmatprep.mubr.msk.f32.mxu1 %vm91_vm0, %v1673_v43  ;;  %v1676_v29 = vmax.f32 %v7492_v54, 0.0  ;;  %v5696_v41 = vld [vmem:[%s9681_s4 + $0x90] sm:$0xff]  ;;  %6487 = vmatpush3.msra.mxu1 %v5697_v60 }
 0x5bc   :  { %6449 = vmatmul.mubr.msk.f32.gmra.mxu1 %vm91_vm0, %v1674_v58  ;;  %6488 = vmatprep.subr.mxu1 %v5696_v41 }
 0x5bd   :  { %v1675_v56 = vmax.f32 %v7495_v59, 0.0  ;;  %6489 = vmatpush3.msra.mxu1 %v5696_v41 }
 0x5be   :  { %6490 = vmatprep.subr.mxu1 %v5695_v55 }
 0x5bf   :  { %6451 = vmatprep.mubr.msk.f32.mxu1 %vm91_vm0, %v1675_v56  ;;  %6491 = vmatpush3.msra.mxu1 %v5695_v55 }
 0x5c0   :  { %6452 = vmatmul.mubr.msk.f32.gmra.mxu1 %vm91_vm0, %v1676_v29 }
 0x664   :  { %v6432_v0 = vpop.f32.mrf.mxu1 }
 0x665   :  { %v1810_v3 = vadd.f32 %v6432_v0, %v5659_v61 }
 0x666   :  { %v1804_v5 = vpop.f32.mrf.mxu1 }
 0x667   :  { %v1805_v6 = vadd.f32 %v5659_v61, %v1804_v5  ;;  %v1884_v12 = vmax.f32 %v1810_v3, 0.0  ;;  %v5694_v3 = vld [vmem:[%s9681_s4 + $0x80] sm:$0xff]  ;;  %v2363_v5 = vld [vmem:[#allocation2 + $0x98] sm:$0xff] }
 0x668   :  { %v6435_v7 = vpop.f32.mrf.mxu1  ;;  %6492 = vmatprep.subr.mxu1 %v5694_v3  ;;  %6518 = vmatprep.subr.mxu0 %v2363_v5 }
 0x669   :  { %v1883_v9 = vmax.f32 %v1805_v6, 0.0  ;;  %v1820_v13 = vadd.f32 %v6435_v7, %v5659_v61  ;;  %6493 = vmatpush3.msra.mxu1 %v5694_v3  ;;  %v2362_v6 = vld [vmem:[#allocation2 + $0x90] sm:$0xff]  ;;  %v2360_v7 = vld [vmem:[#allocation2 + $0x80] sm:$0xff] }
 0x66a   :  { %v1814_v47 = vpop.f32.mrf.mxu1 }
 0x66b   :  { %v1815_v14 = vadd.f32 %v5659_v61, %v1814_v47  ;;  %6462 = vmatprep.mubr.msk.f32.mxu0 %vm91_vm0, %v1883_v9  ;;  %v1886_v18 = vmax.f32 %v1820_v13, 0.0  ;;  %v7537_v9 = vld [vmem:[%s9684_s7 + $0x3] ss:$0 sm:$0xff] }
 0x66c   :  { %v6438_v15 = vpop.f32.mrf.mxu1  ;;  %6463 = vmatmul.mubr.msk.f32.vlgmr.msra.gmra.mxu0 %vm91_vm0, %v1884_v12 }
 0x66d   :  { %v1885_v17 = vmax.f32 %v1815_v14, 0.0  ;;  %v1830_v19 = vadd.f32 %v6438_v15, %v5659_v61  ;;  %6519 = vmatpush3.msra.mxu0 %v2363_v5 }
 0x66e   :  { %v1824_v20 = vpop.f32.mrf.mxu1  ;;  %6520 = vmatprep.subr.mxu0 %v2362_v6 }
 0x66f   :  { %v1825_v16 = vadd.f32 %v5659_v61, %v1824_v20  ;;  %6465 = vmatprep.mubr.msk.f32.mxu0 %vm91_vm0, %v1885_v17  ;;  %v1888_v4 = vmax.f32 %v1830_v19, 0.0  ;;  %6521 = vmatpush3.msra.mxu0 %v2362_v6 }
 0x670   :  { %v6441_v21 = vpop.f32.mrf.mxu1  ;;  %6466 = vmatmul.mubr.msk.f32.gmra.mxu0 %vm91_vm0, %v1886_v18 }
 0x671   :  { %v1887_v23 = vmax.f32 %v1825_v16, 0.0  ;;  %v1840_v25 = vadd.f32 %v6441_v21, %v5659_v61 }
 0x672   :  { %v1834_v8 = vpop.f32.mrf.mxu1 }
 0x673   :  { %v1835_v10 = vadd.f32 %v5659_v61, %v1834_v8  ;;  %6468 = vmatprep.mubr.msk.f32.mxu0 %vm91_vm0, %v1887_v23  ;;  %v1890_v31 = vmax.f32 %v1840_v25, 0.0 }
 0x674   :  { %v6444_v22 = vpop.f32.mrf.mxu1  ;;  %6469 = vmatmul.mubr.msk.f32.gmra.mxu0 %vm91_vm0, %v1888_v4 }
 0x675   :  { %v1889_v28 = vmax.f32 %v1835_v10, 0.0  ;;  %v1850_v33 = vadd.f32 %v6444_v22, %v5659_v61 }
 0x676   :  { %v1844_v35 = vpop.f32.mrf.mxu1 }
 0x677   :  { %v1845_v26 = vadd.f32 %v5659_v61, %v1844_v35  ;;  %6471 = vmatprep.mubr.msk.f32.mxu0 %vm91_vm0, %v1889_v28  ;;  %v1892_v62 = vmax.f32 %v1850_v33, 0.0 }
 0x678   :  { %v6447_v36 = vpop.f32.mrf.mxu1  ;;  %6472 = vmatmul.mubr.msk.f32.gmra.mxu0 %vm91_vm0, %v1890_v31 }
 0x679   :  { %v1891_v40 = vmax.f32 %v1845_v26, 0.0  ;;  %v1860_v32 = vadd.f32 %v6447_v36, %v5659_v61 }
 0x67a   :  { %v1854_v2 = vpop.f32.mrf.mxu1 }
 0x67b   :  { %v1855_v24 = vadd.f32 %v5659_v61, %v1854_v2  ;;  %6474 = vmatprep.mubr.msk.f32.mxu0 %vm91_vm0, %v1891_v40  ;;  %v1894_v49 = vmax.f32 %v1860_v32, 0.0 }
 0x67c   :  { %v6450_v37 = vpop.f32.mrf.mxu1  ;;  %6475 = vmatmul.mubr.msk.f32.gmra.mxu0 %vm91_vm0, %v1892_v62 }
 0x67d   :  { %v1893_v46 = vmax.f32 %v1855_v24, 0.0  ;;  %v1870_v51 = vadd.f32 %v6450_v37, %v5659_v61 }
 0x67e   :  { %v1864_v52 = vpop.f32.mrf.mxu1 }
 0x67f   :  { %v1865_v43 = vadd.f32 %v5659_v61, %v1864_v52  ;;  %6477 = vmatprep.mubr.msk.f32.mxu0 %vm91_vm0, %v1893_v46  ;;  %v1896_v56 = vmax.f32 %v1870_v51, 0.0 }
 0x680   :  { %v6453_v53 = vpop.f32.mrf.mxu1  ;;  %6478 = vmatmul.mubr.msk.f32.gmra.mxu0 %vm91_vm0, %v1894_v49 }
 0x681   :  { %v1895_v58 = vmax.f32 %v1865_v43, 0.0  ;;  %v1880_v29 = vadd.f32 %v6453_v53, %v5659_v61 }
 0x682   :  { %v1874_v60 = vpop.f32.mrf.mxu1 }
 0x683   :  { %v1875_v41 = vadd.f32 %v5659_v61, %v1874_v60  ;;  %6480 = vmatprep.mubr.msk.f32.mxu0 %vm91_vm0, %v1895_v58  ;;  %v1898_v0 = vmax.f32 %v1880_v29, 0.0  ;;  %v2361_v61 = vld [vmem:[#allocation2 + $0x88] sm:$0xff] }
 0x684   :  { %6481 = vmatmul.mubr.msk.f32.gmra.mxu0 %vm91_vm0, %v1896_v56  ;;  %6522 = vmatprep.subr.mxu0 %v2361_v61 }
 0x685   :  { %v1897_v55 = vmax.f32 %v1875_v41, 0.0  ;;  %6523 = vmatpush3.msra.mxu0 %v2361_v61 }
 0x686   :  { %6524 = vmatprep.subr.mxu0 %v2360_v7 }
 0x687   :  { %6483 = vmatprep.mubr.msk.f32.mxu0 %vm91_vm0, %v1897_v55  ;;  %6525 = vmatpush3.msra.mxu0 %v2360_v7 }
 0x688   :  { %6484 = vmatmul.mubr.msk.f32.gmra.mxu0 %vm91_vm0, %v1898_v0 }
 0x72c   :  { %v6464_v12 = vpop.f32.mrf.mxu0 }
 0x72d   :  { %v2032_v13 = vadd.f32 %v6464_v12, %v7537_v9 }
 0x72e   :  { %v2026_v47 = vpop.f32.mrf.mxu0 }
 0x72f   :  { %v2027_v14 = vadd.f32 %v7537_v9, %v2026_v47  ;;  %v7542_v15 = vadd.f32 %v2032_v13, %v7410_v63 }
 0x730   :  { %v6467_v17 = vpop.f32.mrf.mxu0 }
 0x731   :  { %v7545_v18 = vadd.f32 %v2027_v14, %v7413_v1  ;;  %v2042_v19 = vadd.f32 %v6467_v17, %v7537_v9  ;;  %v2122_v23 = vmax.f32 %v7542_v15, 0.0  ;;  %v5699_v14 = vld [vmem:[%s9682_s5 + $0x4] ss:$0 sm:$0xff] }
 0x732   :  { %v2036_v20 = vpop.f32.mrf.mxu0 }
 0x733   :  { %v2121_v16 = vmax.f32 %v7545_v18, 0.0  ;;  %v2037_v21 = vadd.f32 %v7537_v9, %v2036_v20  ;;  %v7552_v4 = vadd.f32 %v2042_v19, %v7420_v11 }
 0x734   :  { %v6470_v25 = vpop.f32.mrf.mxu0 }
 0x735   :  { %v7555_v63 = vadd.f32 %v2037_v21, %v7423_v45  ;;  %v2052_v8 = vadd.f32 %v6470_v25, %v7537_v9  ;;  %6494 = vmatprep.mubr.msk.f32.mxu1 %vm91_vm0, %v2121_v16  ;;  %v2124_v28 = vmax.f32 %v7552_v4, 0.0 }
 0x736   :  { %v2046_v1 = vpop.f32.mrf.mxu0  ;;  %6495 = vmatmul.mubr.msk.f32.vlgmr.msra.gmra.mxu1 %vm91_vm0, %v2122_v23 }
 0x737   :  { %v2123_v10 = vmax.f32 %v7555_v63, 0.0  ;;  %v2047_v22 = vadd.f32 %v7537_v9, %v2046_v1  ;;  %v7564_v11 = vadd.f32 %v2052_v8, %v7432_v57 }
 0x738   :  { %v6473_v31 = vpop.f32.mrf.mxu0 }
 0x739   :  { %v7567_v45 = vadd.f32 %v2047_v22, %v7435_v27  ;;  %v2062_v33 = vadd.f32 %v6473_v31, %v7537_v9  ;;  %6497 = vmatprep.mubr.msk.f32.mxu1 %vm91_vm0, %v2123_v10  ;;  %v2126_v40 = vmax.f32 %v7564_v11, 0.0 }
 0x73a   :  { %v2056_v35 = vpop.f32.mrf.mxu0  ;;  %6498 = vmatmul.mubr.msk.f32.gmra.mxu1 %vm91_vm0, %v2124_v28 }
 0x73b   :  { %v2125_v26 = vmax.f32 %v7567_v45, 0.0  ;;  %v2057_v36 = vadd.f32 %v7537_v9, %v2056_v35  ;;  %v7576_v57 = vadd.f32 %v2062_v33, %v7444_v39 }
 0x73c   :  { %v6476_v62 = vpop.f32.mrf.mxu0 }
 0x73d   :  { %v7579_v27 = vadd.f32 %v2057_v36, %v7447_v30  ;;  %v2072_v32 = vadd.f32 %v6476_v62, %v7537_v9  ;;  %6500 = vmatprep.mubr.msk.f32.mxu1 %vm91_vm0, %v2125_v26  ;;  %v2128_v46 = vmax.f32 %v7576_v57, 0.0 }
 0x73e   :  { %v2066_v2 = vpop.f32.mrf.mxu0  ;;  %6501 = vmatmul.mubr.msk.f32.gmra.mxu1 %vm91_vm0, %v2126_v40 }
 0x73f   :  { %v2127_v24 = vmax.f32 %v7579_v27, 0.0  ;;  %v2067_v37 = vadd.f32 %v7537_v9, %v2066_v2  ;;  %v7588_v39 = vadd.f32 %v2072_v32, %v7456_v34 }
 0x740   :  { %v6479_v49 = vpop.f32.mrf.mxu0 }
 0x741   :  { %v7591_v30 = vadd.f32 %v2067_v37, %v7459_v38  ;;  %v2082_v51 = vadd.f32 %v6479_v49, %v7537_v9  ;;  %6503 = vmatprep.mubr.msk.f32.mxu1 %vm91_vm0, %v2127_v24  ;;  %v2130_v58 = vmax.f32 %v7588_v39, 0.0 }
 0x742   :  { %v2076_v52 = vpop.f32.mrf.mxu0  ;;  %6504 = vmatmul.mubr.msk.f32.gmra.mxu1 %vm91_vm0, %v2128_v46 }
 0x743   :  { %v2129_v43 = vmax.f32 %v7591_v30, 0.0  ;;  %v2077_v53 = vadd.f32 %v7537_v9, %v2076_v52  ;;  %v7600_v34 = vadd.f32 %v2082_v51, %v7468_v42 }
 0x744   :  { %v6482_v56 = vpop.f32.mrf.mxu0 }
 0x745   :  { %v7603_v38 = vadd.f32 %v2077_v53, %v7471_v44  ;;  %v2092_v29 = vadd.f32 %v6482_v56, %v7537_v9  ;;  %6506 = vmatprep.mubr.msk.f32.mxu1 %vm91_vm0, %v2129_v43  ;;  %v2132_v0 = vmax.f32 %v7600_v34, 0.0 }
 0x746   :  { %v2086_v60 = vpop.f32.mrf.mxu0  ;;  %6507 = vmatmul.mubr.msk.f32.gmra.mxu1 %vm91_vm0, %v2130_v58 }
 0x747   :  { %v2131_v41 = vmax.f32 %v7603_v38, 0.0  ;;  %v2087_v55 = vadd.f32 %v7537_v9, %v2086_v60  ;;  %v7612_v42 = vadd.f32 %v2092_v29, %v7480_v48 }
 0x748   :  { %v6485_v3 = vpop.f32.mrf.mxu0 }
 0x749   :  { %v7615_v44 = vadd.f32 %v2087_v55, %v7483_v50  ;;  %v2102_v5 = vadd.f32 %v6485_v3, %v7537_v9  ;;  %6509 = vmatprep.mubr.msk.f32.mxu1 %vm91_vm0, %v2131_v41  ;;  %v2134_v12 = vmax.f32 %v7612_v42, 0.0 }
 0x74a   :  { %v2096_v6 = vpop.f32.mrf.mxu0  ;;  %6510 = vmatmul.mubr.msk.f32.gmra.mxu1 %vm91_vm0, %v2132_v0 }
 0x74b   :  { %v2133_v61 = vmax.f32 %v7615_v44, 0.0  ;;  %v2097_v7 = vadd.f32 %v7537_v9, %v2096_v6  ;;  %v7624_v48 = vadd.f32 %v2102_v5, %v7492_v54  ;;  %v5737_v54 = vld [vmem:[%s9681_s4 + $0xb8] sm:$0xff]  ;;  %v5735_v9 = vld [vmem:[%s9681_s4 + $0xa8] sm:$0xff] }
 0x74c   :  { %6550 = vmatprep.subr.mxu1 %v5737_v54 }
 0x74d   :  { %v7627_v13 = vadd.f32 %v2097_v7, %v7495_v59  ;;  %6512 = vmatprep.mubr.msk.f32.mxu1 %vm91_vm0, %v2133_v61  ;;  %v2136_v47 = vmax.f32 %v7624_v48, 0.0  ;;  %v5736_v59 = vld [vmem:[%s9681_s4 + $0xb0] sm:$0xff]  ;;  %6551 = vmatpush3.msra.mxu1 %v5737_v54 }
 0x74e   :  { %6513 = vmatmul.mubr.msk.f32.gmra.mxu1 %vm91_vm0, %v2134_v12  ;;  %6552 = vmatprep.subr.mxu1 %v5736_v59 }
 0x74f   :  { %v2135_v50 = vmax.f32 %v7627_v13, 0.0  ;;  %6553 = vmatpush3.msra.mxu1 %v5736_v59 }
 0x750   :  { %6554 = vmatprep.subr.mxu1 %v5735_v9 }
 0x751   :  { %6515 = vmatprep.mubr.msk.f32.mxu1 %vm91_vm0, %v2135_v50  ;;  %6555 = vmatpush3.msra.mxu1 %v5735_v9 }
 0x752   :  { %6516 = vmatmul.mubr.msk.f32.gmra.mxu1 %vm91_vm0, %v2136_v47 }
 0x7f6   :  { %v6496_v17 = vpop.f32.mrf.mxu1 }
 0x7f7   :  { %v2270_v19 = vadd.f32 %v6496_v17, %v5699_v14 }
 0x7f8   :  { %v2264_v20 = vpop.f32.mrf.mxu1 }
 0x7f9   :  { %v2265_v16 = vadd.f32 %v5699_v14, %v2264_v20  ;;  %v2344_v25 = vmax.f32 %v2270_v19, 0.0  ;;  %v5734_v19 = vld [vmem:[%s9681_s4 + $0xa0] sm:$0xff]  ;;  %v2823_v20 = vld [vmem:[#allocation2 + $0xb8] sm:$0xff] }
 0x7fa   :  { %v6499_v21 = vpop.f32.mrf.mxu1  ;;  %6556 = vmatprep.subr.mxu1 %v5734_v19  ;;  %6582 = vmatprep.subr.mxu0 %v2823_v20 }
 0x7fb   :  { %v2343_v23 = vmax.f32 %v2265_v16, 0.0  ;;  %v2280_v8 = vadd.f32 %v6499_v21, %v5699_v14  ;;  %6557 = vmatpush3.msra.mxu1 %v5734_v19  ;;  %v2822_v16 = vld [vmem:[#allocation2 + $0xb0] sm:$0xff]  ;;  %v2820_v21 = vld [vmem:[#allocation2 + $0xa0] sm:$0xff] }
 0x7fc   :  { %v2274_v1 = vpop.f32.mrf.mxu1 }
 0x7fd   :  { %v2275_v10 = vadd.f32 %v5699_v14, %v2274_v1  ;;  %6526 = vmatprep.mubr.msk.f32.mxu0 %vm91_vm0, %v2343_v23  ;;  %v2346_v31 = vmax.f32 %v2280_v8, 0.0  ;;  %v7669_v23 = vld [vmem:[%s9684_s7 + $0x4] ss:$0 sm:$0xff] }
 0x7fe   :  { %v6502_v22 = vpop.f32.mrf.mxu1  ;;  %6527 = vmatmul.mubr.msk.f32.vlgmr.msra.gmra.mxu0 %vm91_vm0, %v2344_v25 }
 0x7ff   :  { %v2345_v28 = vmax.f32 %v2275_v10, 0.0  ;;  %v2290_v33 = vadd.f32 %v6502_v22, %v5699_v14  ;;  %6583 = vmatpush3.msra.mxu0 %v2823_v20 }
 0x800   :  { %v2284_v35 = vpop.f32.mrf.mxu1  ;;  %6584 = vmatprep.subr.mxu0 %v2822_v16 }
 0x801   :  { %v2285_v26 = vadd.f32 %v5699_v14, %v2284_v35  ;;  %6529 = vmatprep.mubr.msk.f32.mxu0 %vm91_vm0, %v2345_v28  ;;  %v2348_v62 = vmax.f32 %v2290_v33, 0.0  ;;  %6585 = vmatpush3.msra.mxu0 %v2822_v16 }
 0x802   :  { %v6505_v36 = vpop.f32.mrf.mxu1  ;;  %6530 = vmatmul.mubr.msk.f32.gmra.mxu0 %vm91_vm0, %v2346_v31 }
 0x803   :  { %v2347_v40 = vmax.f32 %v2285_v26, 0.0  ;;  %v2300_v32 = vadd.f32 %v6505_v36, %v5699_v14 }
 0x804   :  { %v2294_v2 = vpop.f32.mrf.mxu1 }
 0x805   :  { %v2295_v24 = vadd.f32 %v5699_v14, %v2294_v2  ;;  %6532 = vmatprep.mubr.msk.f32.mxu0 %vm91_vm0, %v2347_v40  ;;  %v2350_v49 = vmax.f32 %v2300_v32, 0.0 }
 0x806   :  { %v6508_v37 = vpop.f32.mrf.mxu1  ;;  %6533 = vmatmul.mubr.msk.f32.gmra.mxu0 %vm91_vm0, %v2348_v62 }
 0x807   :  { %v2349_v46 = vmax.f32 %v2295_v24, 0.0  ;;  %v2310_v51 = vadd.f32 %v6508_v37, %v5699_v14 }
 0x808   :  { %v2304_v52 = vpop.f32.mrf.mxu1 }
 0x809   :  { %v2305_v43 = vadd.f32 %v5699_v14, %v2304_v52  ;;  %6535 = vmatprep.mubr.msk.f32.mxu0 %vm91_vm0, %v2349_v46  ;;  %v2352_v56 = vmax.f32 %v2310_v51, 0.0 }
 0x80a   :  { %v6511_v53 = vpop.f32.mrf.mxu1  ;;  %6536 = vmatmul.mubr.msk.f32.gmra.mxu0 %vm91_vm0, %v2350_v49 }
 0x80b   :  { %v2351_v58 = vmax.f32 %v2305_v43, 0.0  ;;  %v2320_v29 = vadd.f32 %v6511_v53, %v5699_v14 }
 0x80c   :  { %v2314_v60 = vpop.f32.mrf.mxu1 }
 0x80d   :  { %v2315_v41 = vadd.f32 %v5699_v14, %v2314_v60  ;;  %6538 = vmatprep.mubr.msk.f32.mxu0 %vm91_vm0, %v2351_v58  ;;  %v2354_v3 = vmax.f32 %v2320_v29, 0.0 }
 0x80e   :  { %v6514_v55 = vpop.f32.mrf.mxu1  ;;  %6539 = vmatmul.mubr.msk.f32.gmra.mxu0 %vm91_vm0, %v2352_v56 }
 0x80f   :  { %v2353_v0 = vmax.f32 %v2315_v41, 0.0  ;;  %v2330_v5 = vadd.f32 %v6514_v55, %v5699_v14 }
 0x810   :  { %v2324_v6 = vpop.f32.mrf.mxu1 }
 0x811   :  { %v2325_v61 = vadd.f32 %v5699_v14, %v2324_v6  ;;  %6541 = vmatprep.mubr.msk.f32.mxu0 %vm91_vm0, %v2353_v0  ;;  %v2356_v50 = vmax.f32 %v2330_v5, 0.0 }
 0x812   :  { %v6517_v7 = vpop.f32.mrf.mxu1  ;;  %6542 = vmatmul.mubr.msk.f32.gmra.mxu0 %vm91_vm0, %v2354_v3 }
 0x813   :  { %v2355_v12 = vmax.f32 %v2325_v61, 0.0  ;;  %v2340_v47 = vadd.f32 %v6517_v7, %v5699_v14 }
 0x814   :  { %v2334_v54 = vpop.f32.mrf.mxu1 }
 0x815   :  { %v2335_v59 = vadd.f32 %v5699_v14, %v2334_v54  ;;  %6544 = vmatprep.mubr.msk.f32.mxu0 %vm91_vm0, %v2355_v12  ;;  %v2358_v17 = vmax.f32 %v2340_v47, 0.0  ;;  %v2821_v14 = vld [vmem:[#allocation2 + $0xa8] sm:$0xff] }
 0x816   :  { %6545 = vmatmul.mubr.msk.f32.gmra.mxu0 %vm91_vm0, %v2356_v50  ;;  %6586 = vmatprep.subr.mxu0 %v2821_v14 }
 0x817   :  { %v2357_v9 = vmax.f32 %v2335_v59, 0.0  ;;  %6587 = vmatpush3.msra.mxu0 %v2821_v14 }
 0x818   :  { %6588 = vmatprep.subr.mxu0 %v2820_v21 }
 0x819   :  { %6547 = vmatprep.mubr.msk.f32.mxu0 %vm91_vm0, %v2357_v9  ;;  %6589 = vmatpush3.msra.mxu0 %v2820_v21 }
 0x81a   :  { %6548 = vmatmul.mubr.msk.f32.gmra.mxu0 %vm91_vm0, %v2358_v17 }
 0x8be   :  { %v6528_v25 = vpop.f32.mrf.mxu0 }
 0x8bf   :  { %v2492_v8 = vadd.f32 %v6528_v25, %v7669_v23 }
 0x8c0   :  { %v2486_v1 = vpop.f32.mrf.mxu0 }
 0x8c1   :  { %v2487_v10 = vadd.f32 %v7669_v23, %v2486_v1  ;;  %v7674_v22 = vadd.f32 %v2492_v8, %v7542_v15 }
 0x8c2   :  { %v6531_v28 = vpop.f32.mrf.mxu0 }
 0x8c3   :  { %v7677_v31 = vadd.f32 %v2487_v10, %v7545_v18  ;;  %v2502_v33 = vadd.f32 %v6531_v28, %v7669_v23  ;;  %v2582_v40 = vmax.f32 %v7674_v22, 0.0  ;;  %v5739_v10 = vld [vmem:[%s9682_s5 + $0x5] ss:$0 sm:$0xff] }
 0x8c4   :  { %v2496_v35 = vpop.f32.mrf.mxu0 }
 0x8c5   :  { %v2581_v26 = vmax.f32 %v7677_v31, 0.0  ;;  %v2497_v36 = vadd.f32 %v7669_v23, %v2496_v35  ;;  %v7684_v62 = vadd.f32 %v2502_v33, %v7552_v4 }
 0x8c6   :  { %v6534_v32 = vpop.f32.mrf.mxu0 }
 0x8c7   :  { %v7687_v15 = vadd.f32 %v2497_v36, %v7555_v63  ;;  %v2512_v2 = vadd.f32 %v6534_v32, %v7669_v23  ;;  %6558 = vmatprep.mubr.msk.f32.mxu1 %vm91_vm0, %v2581_v26  ;;  %v2584_v46 = vmax.f32 %v7684_v62, 0.0 }
 0x8c8   :  { %v2506_v18 = vpop.f32.mrf.mxu0  ;;  %6559 = vmatmul.mubr.msk.f32.vlgmr.msra.gmra.mxu1 %vm91_vm0, %v2582_v40 }
 0x8c9   :  { %v2583_v24 = vmax.f32 %v7687_v15, 0.0  ;;  %v2507_v37 = vadd.f32 %v7669_v23, %v2506_v18  ;;  %v7696_v4 = vadd.f32 %v2512_v2, %v7564_v11 }
 0x8ca   :  { %v6537_v49 = vpop.f32.mrf.mxu0 }
 0x8cb   :  { %v7699_v63 = vadd.f32 %v2507_v37, %v7567_v45  ;;  %v2522_v51 = vadd.f32 %v6537_v49, %v7669_v23  ;;  %6561 = vmatprep.mubr.msk.f32.mxu1 %vm91_vm0, %v2583_v24  ;;  %v2586_v58 = vmax.f32 %v7696_v4, 0.0 }
 0x8cc   :  { %v2516_v52 = vpop.f32.mrf.mxu0  ;;  %6562 = vmatmul.mubr.msk.f32.gmra.mxu1 %vm91_vm0, %v2584_v46 }
 0x8cd   :  { %v2585_v43 = vmax.f32 %v7699_v63, 0.0  ;;  %v2517_v53 = vadd.f32 %v7669_v23, %v2516_v52  ;;  %v7708_v11 = vadd.f32 %v2522_v51, %v7576_v57 }
 0x8ce   :  { %v6540_v56 = vpop.f32.mrf.mxu0 }
 0x8cf   :  { %v7711_v45 = vadd.f32 %v2517_v53, %v7579_v27  ;;  %v2532_v29 = vadd.f32 %v6540_v56, %v7669_v23  ;;  %6564 = vmatprep.mubr.msk.f32.mxu1 %vm91_vm0, %v2585_v43  ;;  %v2588_v0 = vmax.f32 %v7708_v11, 0.0 }
 0x8d0   :  { %v2526_v60 = vpop.f32.mrf.mxu0  ;;  %6565 = vmatmul.mubr.msk.f32.gmra.mxu1 %vm91_vm0, %v2586_v58 }
 0x8d1   :  { %v2587_v41 = vmax.f32 %v7711_v45, 0.0  ;;  %v2527_v55 = vadd.f32 %v7669_v23, %v2526_v60  ;;  %v7720_v57 = vadd.f32 %v2532_v29, %v7588_v39 }
 0x8d2   :  { %v6543_v3 = vpop.f32.mrf.mxu0 }
 0x8d3   :  { %v7723_v27 = vadd.f32 %v2527_v55, %v7591_v30  ;;  %v2542_v5 = vadd.f32 %v6543_v3, %v7669_v23  ;;  %6567 = vmatprep.mubr.msk.f32.mxu1 %vm91_vm0, %v2587_v41  ;;  %v2590_v12 = vmax.f32 %v7720_v57, 0.0 }
 0x8d4   :  { %v2536_v6 = vpop.f32.mrf.mxu0  ;;  %6568 = vmatmul.mubr.msk.f32.gmra.mxu1 %vm91_vm0, %v2588_v0 }
 0x8d5   :  { %v2589_v61 = vmax.f32 %v7723_v27, 0.0  ;;  %v2537_v7 = vadd.f32 %v7669_v23, %v2536_v6  ;;  %v7732_v39 = vadd.f32 %v2542_v5, %v7600_v34 }
 0x8d6   :  { %v6546_v50 = vpop.f32.mrf.mxu0 }
 0x8d7   :  { %v7735_v30 = vadd.f32 %v2537_v7, %v7603_v38  ;;  %v2552_v47 = vadd.f32 %v6546_v50, %v7669_v23  ;;  %6570 = vmatprep.mubr.msk.f32.mxu1 %vm91_vm0, %v2589_v61  ;;  %v2592_v17 = vmax.f32 %v7732_v39, 0.0 }
 0x8d8   :  { %v2546_v54 = vpop.f32.mrf.mxu0  ;;  %6571 = vmatmul.mubr.msk.f32.gmra.mxu1 %vm91_vm0, %v2590_v12 }
 0x8d9   :  { %v2591_v59 = vmax.f32 %v7735_v30, 0.0  ;;  %v2547_v9 = vadd.f32 %v7669_v23, %v2546_v54  ;;  %v7744_v34 = vadd.f32 %v2552_v47, %v7612_v42 }
 0x8da   :  { %v6549_v19 = vpop.f32.mrf.mxu0 }
 0x8db   :  { %v7747_v38 = vadd.f32 %v2547_v9, %v7615_v44  ;;  %v2562_v20 = vadd.f32 %v6549_v19, %v7669_v23  ;;  %6573 = vmatprep.mubr.msk.f32.mxu1 %vm91_vm0, %v2591_v59  ;;  %v2594_v25 = vmax.f32 %v7744_v34, 0.0 }
 0x8dc   :  { %v2556_v16 = vpop.f32.mrf.mxu0  ;;  %6574 = vmatmul.mubr.msk.f32.gmra.mxu1 %vm91_vm0, %v2592_v17 }
 0x8dd   :  { %v2593_v14 = vmax.f32 %v7747_v38, 0.0  ;;  %v2557_v21 = vadd.f32 %v7669_v23, %v2556_v16  ;;  %v7756_v42 = vadd.f32 %v2562_v20, %v7624_v48  ;;  %v5777_v48 = vld [vmem:[%s9681_s4 + $0xd8] sm:$0xff]  ;;  %v5775_v23 = vld [vmem:[%s9681_s4 + $0xc8] sm:$0xff] }
 0x8de   :  { %6614 = vmatprep.subr.mxu1 %v5777_v48 }
 0x8df   :  { %v7759_v8 = vadd.f32 %v2557_v21, %v7627_v13  ;;  %6576 = vmatprep.mubr.msk.f32.mxu1 %vm91_vm0, %v2593_v14  ;;  %v2596_v1 = vmax.f32 %v7756_v42, 0.0  ;;  %v5776_v13 = vld [vmem:[%s9681_s4 + $0xd0] sm:$0xff]  ;;  %6615 = vmatpush3.msra.mxu1 %v5777_v48 }
 0x8e0   :  { %6577 = vmatmul.mubr.msk.f32.gmra.mxu1 %vm91_vm0, %v2594_v25  ;;  %6616 = vmatprep.subr.mxu1 %v5776_v13 }
 0x8e1   :  { %v2595_v44 = vmax.f32 %v7759_v8, 0.0  ;;  %6617 = vmatpush3.msra.mxu1 %v5776_v13 }
 0x8e2   :  { %6618 = vmatprep.subr.mxu1 %v5775_v23 }
 0x8e3   :  { %6579 = vmatprep.mubr.msk.f32.mxu1 %vm91_vm0, %v2595_v44  ;;  %6619 = vmatpush3.msra.mxu1 %v5775_v23 }
 0x8e4   :  { %6580 = vmatmul.mubr.msk.f32.gmra.mxu1 %vm91_vm0, %v2596_v1 }
 0x988   :  { %v6560_v28 = vpop.f32.mrf.mxu1 }
 0x989   :  { %v2730_v33 = vadd.f32 %v6560_v28, %v5739_v10 }
 0x98a   :  { %v2724_v35 = vpop.f32.mrf.mxu1 }
 0x98b   :  { %v2725_v26 = vadd.f32 %v5739_v10, %v2724_v35  ;;  %v2804_v32 = vmax.f32 %v2730_v33, 0.0  ;;  %v5774_v33 = vld [vmem:[%s9681_s4 + $0xc0] sm:$0xff]  ;;  %v9688_v35 = vmov 0  }
 0x98c   :  { %v6563_v36 = vpop.f32.mrf.mxu1  ;;  %6620 = vmatprep.subr.mxu1 %v5774_v33  ;;  %6725 = vset.pattern.permute.xlu0 %v9688_v35 }
 0x98d   :  { %v2803_v40 = vmax.f32 %v2725_v26, 0.0  ;;  %v2740_v2 = vadd.f32 %v6563_v36, %v5739_v10  ;;  %6621 = vmatpush3.msra.mxu1 %v5774_v33  ;;  %6726 = vset.pattern.permute.xlu1 %v9688_v35  ;;  %v7809_v26 = vld [vmem:[%s9678_s1 + $0x8] sm:$0xff]  ;;  %v3283_v36 = vld [vmem:[#allocation2 + $0xd8] sm:$0xff] }
 0x98e   :  { %v2734_v18 = vpop.f32.mrf.mxu1  ;;  %6646 = vmatprep.subr.mxu0 %v3283_v36 }
 0x98f   :  { %v2735_v24 = vadd.f32 %v5739_v10, %v2734_v18  ;;  %6590 = vmatprep.mubr.msk.f32.mxu0 %vm91_vm0, %v2803_v40  ;;  %v2806_v49 = vmax.f32 %v2740_v2, 0.0  ;;  %v3282_v40 = vld [vmem:[#allocation2 + $0xd0] sm:$0xff]  ;;  %v7815_v2 = vld [vmem:[%s9678_s1 + $0x20] sm:$0xff] }
 0x990   :  { %v6566_v37 = vpop.f32.mrf.mxu1  ;;  %6591 = vmatmul.mubr.msk.f32.vlgmr.msra.gmra.mxu0 %vm91_vm0, %v2804_v32  ;;  %v3281_v32 = vld [vmem:[#allocation2 + $0xc8] sm:$0xff]  ;;  %v3280_v18 = vld [vmem:[#allocation2 + $0xc0] sm:$0xff] }
 0x991   :  { %v2805_v46 = vmax.f32 %v2735_v24, 0.0  ;;  %v2750_v51 = vadd.f32 %v6566_v37, %v5739_v10  ;;  %6647 = vmatpush3.msra.mxu0 %v3283_v36  ;;  %v7821_v24 = vld [vmem:[%s9678_s1 + $0x30] sm:$0xff]  ;;  %v7827_v37 = vld [vmem:[%s9678_s1 + $0x40] sm:$0xff] }
 0x992   :  { %v2744_v52 = vpop.f32.mrf.mxu1  ;;  %6648 = vmatprep.subr.mxu0 %v3282_v40 }
 0x993   :  { %v2745_v43 = vadd.f32 %v5739_v10, %v2744_v52  ;;  %6593 = vmatprep.mubr.msk.f32.mxu0 %vm91_vm0, %v2805_v46  ;;  %v2808_v56 = vmax.f32 %v2750_v51, 0.0  ;;  %6649 = vmatpush3.msra.mxu0 %v3282_v40  ;;  %v7833_v46 = vld [vmem:[%s9678_s1 + $0x50] sm:$0xff]  ;;  %v3531_v51 = vlaneseq }
 0x994   :  { %v6569_v53 = vpop.f32.mrf.mxu1  ;;  %6594 = vmatmul.mubr.msk.f32.gmra.mxu0 %vm91_vm0, %v2806_v49  ;;  %6650 = vmatprep.subr.mxu0 %v3281_v32  ;;  %v7839_v49 = vld [vmem:[%s9678_s1 + $0x60] sm:$0xff]  ;;  %v7845_v52 = vld [vmem:[%s9678_s1 + $0x70] sm:$0xff] }
 0x995   :  { %v2807_v58 = vmax.f32 %v2745_v43, 0.0  ;;  %v2760_v29 = vadd.f32 %v6569_v53, %v5739_v10  ;;  %6651 = vmatpush3.msra.mxu0 %v3281_v32  ;;  %v7849_v43 = vand.u32 127, %v3531_v51  ;;  %v7856_v53 = vld [vmem:[%s9684_s7 + $0x5] ss:$0 sm:$0xff] }
 0x996   :  { %v2754_v60 = vpop.f32.mrf.mxu1  ;;  %6652 = vmatprep.subr.mxu0 %v3280_v18 }
 0x997   :  { %v2755_v41 = vadd.f32 %v5739_v10, %v2754_v60  ;;  %6596 = vmatprep.mubr.msk.f32.mxu0 %vm91_vm0, %v2807_v58  ;;  %v2810_v3 = vmax.f32 %v2760_v29, 0.0  ;;  %6653 = vmatpush3.msra.mxu0 %v3280_v18  ;;  %9708 = vst [vmem:[#allocation11_spill] sm:$0xff] %v7849_v43 }
 0x998   :  { %v6572_v55 = vpop.f32.mrf.mxu1  ;;  %6597 = vmatmul.mubr.msk.f32.gmra.mxu0 %vm91_vm0, %v2808_v56 }
 0x999   :  { %v2809_v0 = vmax.f32 %v2755_v41, 0.0  ;;  %v2770_v5 = vadd.f32 %v6572_v55, %v5739_v10 }
 0x99a   :  { %v2764_v6 = vpop.f32.mrf.mxu1 }
 0x99b   :  { %v2765_v61 = vadd.f32 %v5739_v10, %v2764_v6  ;;  %6599 = vmatprep.mubr.msk.f32.mxu0 %vm91_vm0, %v2809_v0  ;;  %v2812_v50 = vmax.f32 %v2770_v5, 0.0 }
 0x99c   :  { %v6575_v7 = vpop.f32.mrf.mxu1  ;;  %6600 = vmatmul.mubr.msk.f32.gmra.mxu0 %vm91_vm0, %v2810_v3 }
 0x99d   :  { %v2811_v12 = vmax.f32 %v2765_v61, 0.0  ;;  %v2780_v47 = vadd.f32 %v6575_v7, %v5739_v10 }
 0x99e   :  { %v2774_v54 = vpop.f32.mrf.mxu1 }
 0x99f   :  { %v2775_v59 = vadd.f32 %v5739_v10, %v2774_v54  ;;  %6602 = vmatprep.mubr.msk.f32.mxu0 %vm91_vm0, %v2811_v12  ;;  %v2814_v19 = vmax.f32 %v2780_v47, 0.0 }
 0x9a0   :  { %v6578_v9 = vpop.f32.mrf.mxu1  ;;  %6603 = vmatmul.mubr.msk.f32.gmra.mxu0 %vm91_vm0, %v2812_v50 }
 0x9a1   :  { %v2813_v17 = vmax.f32 %v2775_v59, 0.0  ;;  %v2790_v20 = vadd.f32 %v6578_v9, %v5739_v10 }
 0x9a2   :  { %v2784_v16 = vpop.f32.mrf.mxu1 }
 0x9a3   :  { %v2785_v14 = vadd.f32 %v5739_v10, %v2784_v16  ;;  %6605 = vmatprep.mubr.msk.f32.mxu0 %vm91_vm0, %v2813_v17  ;;  %v2816_v44 = vmax.f32 %v2790_v20, 0.0 }
 0x9a4   :  { %v6581_v21 = vpop.f32.mrf.mxu1  ;;  %6606 = vmatmul.mubr.msk.f32.gmra.mxu0 %vm91_vm0, %v2814_v19 }
 0x9a5   :  { %v2815_v25 = vmax.f32 %v2785_v14, 0.0  ;;  %v2800_v1 = vadd.f32 %v6581_v21, %v5739_v10 }
 0x9a6   :  { %v2794_v48 = vpop.f32.mrf.mxu1 }
 0x9a7   :  { %v2795_v13 = vadd.f32 %v5739_v10, %v2794_v48  ;;  %6608 = vmatprep.mubr.msk.f32.mxu0 %vm91_vm0, %v2815_v25  ;;  %v2818_v28 = vmax.f32 %v2800_v1, 0.0  ;;  %v7801_v10 = vld [vmem:[%s9678_s1] sm:$0xff] }
 0x9a8   :  { %6609 = vmatmul.mubr.msk.f32.gmra.mxu0 %vm91_vm0, %v2816_v44  ;;  %4015 = vperm.xlu0 %6725, %v7801_v10  }
 0x9a9   :  { %v2817_v23 = vmax.f32 %v2795_v13, 0.0 }
 0x9ab   :  { %6611 = vmatprep.mubr.msk.f32.mxu0 %vm91_vm0, %v2817_v23 }
 0x9ac   :  { %6612 = vmatmul.mubr.msk.f32.gmra.mxu0 %vm91_vm0, %v2818_v28  ;;  %4018 = vperm.xlu0 %6725, %v7809_v26  }
 0x9b0   :  { %4027 = vperm.xlu0 %6725, %v7815_v2  }
 0x9b4   :  { %4033 = vperm.xlu0 %6725, %v7821_v24  }
 0x9b8   :  { %4039 = vperm.xlu0 %6725, %v7827_v37  }
 0x9bc   :  { %4045 = vperm.xlu0 %6725, %v7833_v46  }
 0x9c0   :  { %4051 = vperm.xlu0 %6725, %v7839_v49  }
 0x9c4   :  { %4057 = vperm.xlu0 %6725, %v7845_v52  }
 0x9c8   :  { %4126 = vrot.lane.b32.xlu0 %v7849_v43, %s6880_s27 }
 0xa50   :  { %v6592_v58 = vpop.f32.mrf.mxu0 }
 0xa51   :  { %v2952_v56 = vadd.f32 %v6592_v58, %v7856_v53 }
 0xa52   :  { %v2946_v29 = vpop.f32.mrf.mxu0 }
 0xa53   :  { %v2947_v60 = vadd.f32 %v7856_v53, %v2946_v29  ;;  %v7861_v41 = vadd.f32 %v2952_v56, %v7674_v22 }
 0xa54   :  { %v6595_v55 = vpop.f32.mrf.mxu0 }
 0xa55   :  { %v7864_v0 = vadd.f32 %v2947_v60, %v7677_v31  ;;  %v2962_v3 = vadd.f32 %v6595_v55, %v7856_v53  ;;  %v3042_v7 = vmax.f32 %v7861_v41, 0.0 }
 0xa56   :  { %v2956_v5 = vpop.f32.mrf.mxu0 }
 0xa57   :  { %v3041_v6 = vmax.f32 %v7864_v0, 0.0  ;;  %v2957_v61 = vadd.f32 %v7856_v53, %v2956_v5  ;;  %v7871_v12 = vadd.f32 %v2962_v3, %v7684_v62 }
 0xa58   :  { %v6598_v50 = vpop.f32.mrf.mxu0 }
 0xa59   :  { %v7874_v22 = vadd.f32 %v2957_v61, %v7687_v15  ;;  %v2972_v47 = vadd.f32 %v6598_v50, %v7856_v53  ;;  %6622 = vmatprep.mubr.msk.f32.mxu1 %vm91_vm0, %v3041_v6  ;;  %v3044_v9 = vmax.f32 %v7871_v12, 0.0 }
 0xa5a   :  { %v2966_v31 = vpop.f32.mrf.mxu0  ;;  %6623 = vmatmul.mubr.msk.f32.vlgmr.msra.gmra.mxu1 %vm91_vm0, %v3042_v7 }
 0xa5b   :  { %v3043_v54 = vmax.f32 %v7874_v22, 0.0  ;;  %v2967_v59 = vadd.f32 %v7856_v53, %v2966_v31  ;;  %v7883_v62 = vadd.f32 %v2972_v47, %v7696_v4 }
 0xa5c   :  { %v6601_v17 = vpop.f32.mrf.mxu0 }
 0xa5d   :  { %v7886_v15 = vadd.f32 %v2967_v59, %v7699_v63  ;;  %v2982_v19 = vadd.f32 %v6601_v17, %v7856_v53  ;;  %6625 = vmatprep.mubr.msk.f32.mxu1 %vm91_vm0, %v3043_v54  ;;  %v3046_v21 = vmax.f32 %v7883_v62, 0.0  ;;  %v3526_v17 = vld [vmem:[#allocation5 + $0x48] sm:$0xff] }
 0xa5e   :  { %v2976_v20 = vpop.f32.mrf.mxu0  ;;  %6626 = vmatmul.mubr.msk.f32.gmra.mxu1 %vm91_vm0, %v3044_v9 }
 0xa5f   :  { %v3045_v16 = vmax.f32 %v7886_v15, 0.0  ;;  %v2977_v14 = vadd.f32 %v7856_v53, %v2976_v20  ;;  %v7895_v4 = vadd.f32 %v2982_v19, %v7708_v11  ;;  %v3524_v19 = vld [vmem:[#allocation5 + $0x38] sm:$0xff]  ;;  %v3523_v20 = vld [vmem:[#allocation5 + $0x30] sm:$0xff] }
 0xa60   :  { %v6604_v25 = vpop.f32.mrf.mxu0 }
 0xa61   :  { %v7898_v63 = vadd.f32 %v2977_v14, %v7711_v45  ;;  %v2992_v44 = vadd.f32 %v6604_v25, %v7856_v53  ;;  %6628 = vmatprep.mubr.msk.f32.mxu1 %vm91_vm0, %v3045_v16  ;;  %v3048_v23 = vmax.f32 %v7895_v4, 0.0  ;;  %v3521_v16 = vld [vmem:[#allocation5 + $0x20] sm:$0xff]  ;;  %v3520_v14 = vld [vmem:[#allocation5 + $0x18] sm:$0xff] }
 0xa62   :  { %v2986_v1 = vpop.f32.mrf.mxu0  ;;  %6629 = vmatmul.mubr.msk.f32.gmra.mxu1 %vm91_vm0, %v3046_v21  ;;  %v3999_v21 = vld [vmem:[%s9678_s1 + $0x18] sm:$0xff] }
 0xa63   :  { %v3047_v48 = vmax.f32 %v7898_v63, 0.0  ;;  %v2987_v13 = vadd.f32 %v7856_v53, %v2986_v1  ;;  %v7907_v11 = vadd.f32 %v2992_v44, %v7720_v57  ;;  %v4001_v44 = vld [vmem:[%s9678_s1 + $0x28] sm:$0xff] }
 0xa64   :  { %v6607_v28 = vpop.f32.mrf.mxu0 }
 0xa65   :  { %v7910_v45 = vadd.f32 %v2987_v13, %v7723_v27  ;;  %v3002_v33 = vadd.f32 %v6607_v28, %v7856_v53  ;;  %6631 = vmatprep.mubr.msk.f32.mxu1 %vm91_vm0, %v3047_v48  ;;  %v3050_v18 = vmax.f32 %v7907_v11, 0.0  ;;  %v4095_v48 = vadd.s32 1, %v7809_v26  ;;  %v4003_v28 = vld [vmem:[%s9678_s1 + $0x38] sm:$0xff] }
 0xa66   :  { %v2996_v36 = vpop.f32.mrf.mxu0  ;;  %6632 = vmatmul.mubr.msk.f32.gmra.mxu1 %vm91_vm0, %v3048_v23  ;;  %v4097_v13 = vadd.s32 1, %v3999_v21  ;;  %v4099_v23 = vadd.s32 1, %v4001_v44 }
 0xa67   :  { %v3049_v40 = vmax.f32 %v7910_v45, 0.0  ;;  %v2997_v32 = vadd.f32 %v7856_v53, %v2996_v36  ;;  %v7919_v57 = vadd.f32 %v3002_v33, %v7732_v39  ;;  %v4111_v36 = vand.u32 127, %v4095_v48 }
 0xa68   :  { %v6610_v58 = vpop.f32.mrf.mxu0 }
 0xa69   :  { %v7922_v27 = vadd.f32 %v2997_v32, %v7735_v30  ;;  %v3012_v56 = vadd.f32 %v6610_v58, %v7856_v53  ;;  %6634 = vmatprep.mubr.msk.f32.mxu1 %vm91_vm0, %v3049_v40  ;;  %v3052_v3 = vmax.f32 %v7919_v57, 0.0  ;;  %v4113_v40 = vand.u32 127, %v4097_v13  ;;  %v4005_v58 = vld [vmem:[%s9678_s1 + $0x48] sm:$0xff] }
 0xa6a   :  { %v3006_v29 = vpop.f32.mrf.mxu0  ;;  %6635 = vmatmul.mubr.msk.f32.gmra.mxu1 %vm91_vm0, %v3050_v18  ;;  %v4115_v32 = vand.u32 127, %v4099_v23  ;;  %v4101_v18 = vadd.s32 1, %v4003_v28  ;;  %v4103_v26 = vadd.s32 1, %v4005_v58 }
 0xa6b   :  { %v3051_v60 = vmax.f32 %v7922_v27, 0.0  ;;  %v3007_v55 = vadd.f32 %v7856_v53, %v3006_v29  ;;  %v7931_v39 = vadd.f32 %v3012_v56, %v7744_v34  ;;  %v4130_v29 = vsub.s32 128, %v4111_v36 }
 0xa6c   :  { %v6613_v5 = vpop.f32.mrf.mxu0 }
 0xa6d   :  { %v7934_v30 = vadd.f32 %v3007_v55, %v7747_v38  ;;  %v3022_v6 = vadd.f32 %v6613_v5, %v7856_v53  ;;  %6637 = vmatprep.mubr.msk.f32.mxu1 %vm91_vm0, %v3051_v60  ;;  %v3054_v47 = vmax.f32 %v7931_v39, 0.0  ;;  %v4132_v60 = vsub.s32 128, %v4113_v40  ;;  %v4007_v5 = vld [vmem:[%s9678_s1 + $0x58] sm:$0xff] }
 0xa6e   :  { %v3016_v61 = vpop.f32.mrf.mxu0  ;;  %6638 = vmatmul.mubr.msk.f32.gmra.mxu1 %vm91_vm0, %v3052_v3  ;;  %v4134_v55 = vsub.s32 128, %v4115_v32  ;;  %v4117_v3 = vand.u32 127, %v4101_v18 }
 0xa6f   :  { %v3053_v7 = vmax.f32 %v7934_v30, 0.0  ;;  %v3017_v50 = vadd.f32 %v7856_v53, %v3016_v61  ;;  %v7943_v34 = vadd.f32 %v3022_v6, %v7756_v42  ;;  %v7954_v53 = vpop.permute.xlu0 %4015  ;;  %v7961_v42 = vld [vmem:[%s9678_s1 + $0x10] sm:$0xff]  ;;  %v4119_v61 = vand.u32 127, %v4103_v26 }
 0xa70   :  { %9709 = vst [vmem:[#allocation12_spill] sm:$0xff] %v7954_v53  ;;  %4021 = vperm.xlu1 %6726, %v7961_v42  }
 0xa71   :  { %v7946_v31 = vadd.f32 %v3017_v50, %v7759_v8  ;;  %6640 = vmatprep.mubr.msk.f32.mxu1 %vm91_vm0, %v3053_v7  ;;  %v3056_v54 = vmax.f32 %v7943_v34, 0.0  ;;  %v3527_v8 = vld [vmem:[#allocation5 + $0x50] sm:$0xff]  ;;  %v4105_v7 = vadd.s32 1, %v4007_v5  ;;  %v4146_v50 = vand.u32 127, %v4130_v29 }
 0xa72   :  { %6641 = vmatmul.mubr.msk.f32.gmra.mxu1 %vm91_vm0, %v3054_v47  ;;  %3618 = vmatprep.subr.mxu1 %v3527_v8  ;;  %v4148_v47 = vand.u32 127, %v4132_v60  ;;  %v4009_v8 = vld [vmem:[%s9678_s1 + $0x68] sm:$0xff] }
 0xa73   :  { %v3055_v38 = vmax.f32 %v7946_v31, 0.0  ;;  %v7956_v59 = vpop.permute.xlu0 %4018  ;;  %3619 = vmatpush1.msra.mxu1 %v3526_v17 }
 0xa74   :  { %9710 = vst [vmem:[#allocation13_spill] sm:$0xff] %v7956_v59  ;;  %3620 = vmatprep.subr.mxu1 %v3524_v19  ;;  %4024 = vperm.xlu1 %6726, %v3999_v21   ;;  %v4138_v19 = vsub.s32 128, %v4119_v61 }
 0xa75   :  { %6643 = vmatprep.mubr.msk.f32.mxu1 %vm91_vm0, %v3055_v38  ;;  %3621 = vmatpush1.msra.mxu1 %v3523_v20  ;;  %v4150_v38 = vand.u32 127, %v4134_v55  ;;  %v4121_v20 = vand.u32 127, %v4105_v7 }
 0xa76   :  { %6644 = vmatmul.mubr.msk.f32.gmra.mxu1 %vm91_vm0, %v3056_v54  ;;  %3622 = vmatprep.subr.mxu1 %v3521_v16  ;;  %v4136_v54 = vsub.s32 128, %v4117_v3  ;;  %v4107_v16 = vadd.s32 1, %v4009_v8 }
 0xa77   :  { %v7963_v9 = vpop.permute.xlu0 %4027  ;;  %3623 = vmatpush1.msra.mxu1 %v3520_v14  ;;  %v4011_v14 = vld [vmem:[%s9678_s1 + $0x78] sm:$0xff]  ;;  %v4140_v29 = vsub.s32 128, %v4121_v20 }
 0xa78   :  { %9711 = vst [vmem:[#allocation14_spill] sm:$0xff] %v7963_v9  ;;  %4030 = vperm.xlu1 %6726, %v4001_v44   ;;  %v4152_v13 = vand.u32 127, %v4136_v54  ;;  %v4109_v18 = vadd.s32 1, %v4011_v14 }
 0xa79   :  { %v4156_v7 = vand.u32 127, %v4140_v29 }
 0xa7b   :  { %v7969_v25 = vpop.permute.xlu0 %4033 }
 0xa7c   :  { %9712 = vst [vmem:[#allocation15_spill] sm:$0xff] %v7969_v25  ;;  %4036 = vperm.xlu1 %6726, %v4003_v28  }
 0xa7f   :  { %v7974_v1 = vpop.permute.xlu0 %4039 }
 0xa80   :  { %9713 = vst [vmem:[#allocation16_spill] sm:$0xff] %v7974_v1  ;;  %4042 = vperm.xlu1 %6726, %v4005_v58   ;;  %v4123_v58 = vand.u32 127, %v4107_v16 }
 0xa83   :  { %v7980_v33 = vpop.permute.xlu0 %4045 }
 0xa84   :  { %9714 = vst [vmem:[#allocation17_spill] sm:$0xff] %v7980_v33  ;;  %4048 = vperm.xlu1 %6726, %v4007_v5  }
 0xa87   :  { %v7985_v56 = vpop.permute.xlu0 %4051 }
 0xa88   :  { %9715 = vst [vmem:[#allocation18_spill] sm:$0xff] %v7985_v56  ;;  %4054 = vperm.xlu1 %6726, %v4009_v8  }
 0xa8b   :  { %v7990_v6 = vpop.permute.xlu0 %4057 }
 0xa8c   :  { %9716 = vst [vmem:[#allocation19_spill] sm:$0xff] %v7990_v6  ;;  %4060 = vperm.xlu1 %6726, %v4011_v14  }
 0xa8f   :  { %v7995_v17 = vpop.permute.xlu0 %4126 }
 0xa90   :  { %vm4128_vm1 = vcmp.eq.s32.totalorder %v7995_v17, 127 }
 0xa91   :  { %v8003_v21 = vsel %vm4128_vm1, %v4111_v36, %v4146_v50  ;;  %v8007_v44 = vsel %vm4128_vm1, %v4113_v40, %v4148_v47  ;;  %v8011_v48 = vsel %vm4128_vm1, %v4115_v32, %v4150_v38  ;;  %v8019_v40 = vsel %vm4128_vm1, %v4117_v3, %v4152_v13 }
 0xa92   :  { %v4210_v23 = vand.u32 1, %v8003_v21  ;;  %v4212_v28 = vand.u32 1, %v8007_v44  ;;  %v4214_v36 = vand.u32 1, %v8011_v48  ;;  %v4154_v32 = vand.u32 127, %v4138_v19 }
 0xa93   :  { %v4216_v55 = vand.u32 1, %v8019_v40  ;;  %v4142_v50 = vsub.s32 128, %v4123_v58  ;;  %v4125_v47 = vand.u32 127, %v4109_v18  ;;  %v8031_v54 = vsel %vm4128_vm1, %v4121_v20, %v4156_v7 }
 0xa94   :  { %vm4226_vm2 = vcmp.ne.s32.totalorder %v4210_v23, 0  ;;  %vm4228_vm3 = vcmp.ne.s32.totalorder %v4212_v28, 0  ;;  %vm4230_vm4 = vcmp.ne.s32.totalorder %v4214_v36, 0  ;;  %v8025_v5 = vsel %vm4128_vm1, %v4119_v61, %v4154_v32 }
 0xa95   :  { %v4242_v26 = vsel %vm4226_vm2, 1, %v9688_v35  ;;  %v4244_v60 = vsel %vm4228_vm3, 1, %v9688_v35  ;;  %9717 = vst [vmem:[#allocation20_spill] sm:$0xff] %v8025_v5  ;;  %v4246_v38 = vsel %vm4230_vm4, 1, %v9688_v35  ;;  %vm4232_vm5 = vcmp.ne.s32.totalorder %v4216_v55, 0 }
 0xa96   :  { %4261 = vperm.xlu0 %6725, %v4242_v26   ;;  %v4218_v3 = vand.u32 1, %v8025_v5  ;;  %v4158_v8 = vand.u32 127, %v4142_v50  ;;  %v4144_v19 = vsub.s32 128, %v4125_v47  ;;  %v4248_v16 = vsel %vm4232_vm5, 1, %v9688_v35 }
 0xa97   :  { %v4220_v61 = vand.u32 1, %v8031_v54  ;;  %v4370_v26 = vand.u32 2, %v8003_v21  ;;  %v4372_v29 = vand.u32 2, %v8007_v44  ;;  %v4374_v55 = vand.u32 2, %v8011_v48 }
 0xa98   :  { %vm4234_vm6 = vcmp.ne.s32.totalorder %v4218_v3, 0  ;;  %v8037_v14 = vsel %vm4128_vm1, %v4123_v58, %v4158_v8  ;;  %v4160_v13 = vand.u32 127, %v4144_v19  ;;  %v4376_v50 = vand.u32 2, %v8019_v40 }
 0xa99   :  { %v4250_v23 = vsel %vm4234_vm6, 1, %v9688_v35  ;;  %vm4236_vm7 = vcmp.ne.s32.totalorder %v4220_v61, 0  ;;  %v4222_v20 = vand.u32 1, %v8037_v14  ;;  %vm4386_vm10 = vcmp.ne.s32.totalorder %v4370_v26, 0 }
 0xa9a   :  { %4267 = vperm.xlu0 %6725, %v4244_v60   ;;  %v8043_v28 = vsel %vm4128_vm1, %v4125_v47, %v4160_v13  ;;  %v4252_v18 = vsel %vm4236_vm7, 1, %v9688_v35  ;;  %v4402_v60 = vsel %vm4386_vm10, 1, %v9688_v35  ;;  %vm4388_vm11 = vcmp.ne.s32.totalorder %v4372_v29, 0 }
 0xa9b   :  { %vm4238_vm8 = vcmp.ne.s32.totalorder %v4222_v20, 0  ;;  %v4224_v36 = vand.u32 1, %v8043_v28  ;;  %v4404_v7 = vsel %vm4388_vm11, 1, %v9688_v35  ;;  %vm4390_vm12 = vcmp.ne.s32.totalorder %v4374_v55, 0 }
 0xa9c   :  { %v4254_v58 = vsel %vm4238_vm8, 1, %v9688_v35  ;;  %v4406_v47 = vsel %vm4390_vm12, 1, %v9688_v35  ;;  %vm4392_vm13 = vcmp.ne.s32.totalorder %v4376_v50, 0  ;;  %v4380_v8 = vand.u32 2, %v8031_v54 }
 0xa9d   :  { %vm4240_vm9 = vcmp.ne.s32.totalorder %v4224_v36, 0  ;;  %v4408_v3 = vsel %vm4392_vm13, 1, %v9688_v35  ;;  %v4384_v13 = vand.u32 2, %v8043_v28  ;;  %v4530_v20 = vand.u32 4, %v8003_v21 }
 0xa9e   :  { %4273 = vperm.xlu0 %6725, %v4246_v38   ;;  %v4256_v32 = vsel %vm4240_vm9, 1, %v9688_v35  ;;  %v4378_v38 = vand.u32 2, %v8025_v5  ;;  %vm4396_vm15 = vcmp.ne.s32.totalorder %v4380_v8, 0  ;;  %v4532_v26 = vand.u32 4, %v8007_v44 }
 0xa9f   :  { %v4412_v61 = vsel %vm4396_vm15, 1, %v9688_v35  ;;  %vm4400_vm3 = vcmp.ne.s32.totalorder %v4384_v13, 0  ;;  %vm4546_vm4 = vcmp.ne.s32.totalorder %v4530_v20, 0 }
 0xaa0   :  { %vm4394_vm14 = vcmp.ne.s32.totalorder %v4378_v38, 0  ;;  %vm4548_vm5 = vcmp.ne.s32.totalorder %v4532_v26, 0 }
 0xaa1   :  { %v4410_v19 = vsel %vm4394_vm14, 1, %v9688_v35 }
 0xaa2   :  { %4279 = vperm.xlu0 %6725, %v4248_v16   ;;  %v4382_v16 = vand.u32 2, %v8037_v14 }
 0xaa4   :  { %vm4398_vm2 = vcmp.ne.s32.totalorder %v4382_v16, 0 }
 0xaa6   :  { %4285 = vperm.xlu0 %6725, %v4250_v23   ;;  %v4414_v23 = vsel %vm4398_vm2, 1, %v9688_v35 }
 0xaaa   :  { %4291 = vperm.xlu0 %6725, %v4252_v18   ;;  %v8068_v18 = vld [vmem:[%s9682_s5 + $0x6] ss:$0 sm:$0xff] }
 0xaae   :  { %4297 = vperm.xlu0 %6725, %v4254_v58   ;;  %v4416_v58 = vsel %vm4400_vm3, 1, %v9688_v35 }
 0xab2   :  { %4303 = vperm.xlu0 %6725, %v4256_v32  }
 0xab6   :  { %4421 = vperm.xlu0 %6725, %v4402_v60  }
 0xaba   :  { %4427 = vperm.xlu0 %6725, %v4404_v7   ;;  %v4562_v7 = vsel %vm4546_vm4, 1, %v9688_v35 }
 0xabe   :  { %4433 = vperm.xlu0 %6725, %v4406_v47   ;;  %v4534_v47 = vand.u32 4, %v8011_v48 }
 0xac0   :  { %vm4550_vm6 = vcmp.ne.s32.totalorder %v4534_v47, 0 }
 0xac2   :  { %4439 = vperm.xlu0 %6725, %v4408_v3  }
 0xac6   :  { %4445 = vperm.xlu0 %6725, %v4410_v19  }
 0xaca   :  { %4451 = vperm.xlu0 %6725, %v4412_v61   ;;  %v4564_v61 = vsel %vm4548_vm5, 1, %v9688_v35 }
 0xace   :  { %4457 = vperm.xlu0 %6725, %v4414_v23   ;;  %v4536_v23 = vand.u32 4, %v8019_v40 }
 0xad0   :  { %vm4552_vm7 = vcmp.ne.s32.totalorder %v4536_v23, 0 }
 0xad2   :  { %4463 = vperm.xlu0 %6725, %v4416_v58  }
 0xad6   :  { %4581 = vperm.xlu0 %6725, %v4562_v7  }
 0xada   :  { %4587 = vperm.xlu0 %6725, %v4564_v61  }
 0xb1a   :  { %v6624_v36 = vpop.f32.mrf.mxu1 }
 0xb1b   :  { %v3190_v32 = vadd.f32 %v6624_v36, %v8068_v18 }
 0xb1c   :  { %v3184_v29 = vpop.f32.mrf.mxu1 }
 0xb1d   :  { %v3185_v60 = vadd.f32 %v8068_v18, %v3184_v29  ;;  %v3264_v38 = vmax.f32 %v3190_v32, 0.0  ;;  %v4566_v29 = vsel %vm4550_vm6, 1, %v9688_v35 }
 0xb1e   :  { %v6627_v55 = vpop.f32.mrf.mxu1  ;;  %4593 = vperm.xlu0 %6725, %v4566_v29  }
 0xb1f   :  { %v3263_v50 = vmax.f32 %v3185_v60, 0.0  ;;  %v3200_v3 = vadd.f32 %v6627_v55, %v8068_v18  ;;  %v4538_v55 = vand.u32 4, %v8025_v5 }
 0xb20   :  { %v3194_v8 = vpop.f32.mrf.mxu1 }
 0xb21   :  { %v3195_v19 = vadd.f32 %v8068_v18, %v3194_v8  ;;  %6654 = vmatprep.mubr.msk.f32.mxu0 %vm91_vm0, %v3263_v50  ;;  %v3266_v20 = vmax.f32 %v3200_v3, 0.0  ;;  %v4568_v8 = vsel %vm4552_vm7, 1, %v9688_v35  ;;  %vm4554_vm8 = vcmp.ne.s32.totalorder %v4538_v55, 0 }
 0xb22   :  { %v6630_v16 = vpop.f32.mrf.mxu1  ;;  %6655 = vmatmul.mubr.msk.f32.vlgmr.msra.gmra.mxu0 %vm91_vm0, %v3264_v38  ;;  %4599 = vperm.xlu0 %6725, %v4568_v8  }
 0xb23   :  { %v3265_v13 = vmax.f32 %v3195_v19, 0.0  ;;  %v3210_v36 = vadd.f32 %v6630_v16, %v8068_v18  ;;  %v4540_v16 = vand.u32 4, %v8031_v54 }
 0xb24   :  { %v3204_v58 = vpop.f32.mrf.mxu1 }
 0xb25   :  { %v3205_v26 = vadd.f32 %v8068_v18, %v3204_v58  ;;  %6657 = vmatprep.mubr.msk.f32.mxu0 %vm91_vm0, %v3265_v13  ;;  %v3268_v7 = vmax.f32 %v3210_v36, 0.0  ;;  %v4570_v58 = vsel %vm4554_vm8, 1, %v9688_v35  ;;  %vm4556_vm9 = vcmp.ne.s32.totalorder %v4540_v16, 0 }
 0xb26   :  { %v6633_v32 = vpop.f32.mrf.mxu1  ;;  %6658 = vmatmul.mubr.msk.f32.gmra.mxu0 %vm91_vm0, %v3266_v20  ;;  %4605 = vperm.xlu0 %6725, %v4570_v58  }
 0xb27   :  { %v3267_v60 = vmax.f32 %v3205_v26, 0.0  ;;  %v3220_v50 = vadd.f32 %v6633_v32, %v8068_v18  ;;  %v4542_v32 = vand.u32 4, %v8037_v14 }
 0xb28   :  { %v3214_v47 = vpop.f32.mrf.mxu1 }
 0xb29   :  { %v3215_v38 = vadd.f32 %v8068_v18, %v3214_v47  ;;  %6660 = vmatprep.mubr.msk.f32.mxu0 %vm91_vm0, %v3267_v60  ;;  %v3270_v61 = vmax.f32 %v3220_v50, 0.0  ;;  %v4572_v47 = vsel %vm4556_vm9, 1, %v9688_v35  ;;  %vm4558_vm10 = vcmp.ne.s32.totalorder %v4542_v32, 0 }
 0xb2a   :  { %v6636_v3 = vpop.f32.mrf.mxu1  ;;  %6661 = vmatmul.mubr.msk.f32.gmra.mxu0 %vm91_vm0, %v3268_v7  ;;  %4611 = vperm.xlu0 %6725, %v4572_v47   ;;  %v4096_v47 = vadd.s32 1, %v7961_v42 }
 0xb2b   :  { %v3269_v19 = vmax.f32 %v3215_v38, 0.0  ;;  %v3230_v13 = vadd.f32 %v6636_v3, %v8068_v18  ;;  %v4544_v3 = vand.u32 4, %v8043_v28 }
 0xb2c   :  { %v3224_v23 = vpop.f32.mrf.mxu1 }
 0xb2d   :  { %v3225_v20 = vadd.f32 %v8068_v18, %v3224_v23  ;;  %6663 = vmatprep.mubr.msk.f32.mxu0 %vm91_vm0, %v3269_v19  ;;  %v3272_v29 = vmax.f32 %v3230_v13, 0.0  ;;  %v4574_v23 = vsel %vm4558_vm10, 1, %v9688_v35  ;;  %vm4560_vm11 = vcmp.ne.s32.totalorder %v4544_v3, 0 }
 0xb2e   :  { %v6639_v36 = vpop.f32.mrf.mxu1  ;;  %6664 = vmatmul.mubr.msk.f32.gmra.mxu0 %vm91_vm0, %v3270_v61  ;;  %4617 = vperm.xlu0 %6725, %v4574_v23   ;;  %v4112_v3 = vand.u32 127, %v4096_v47  ;;  %v4100_v23 = vadd.s32 1, %v7821_v24  ;;  %v3525_v47 = vld [vmem:[#allocation5 + $0x40] sm:$0xff] }
 0xb2f   :  { %v3271_v26 = vmax.f32 %v3225_v20, 0.0  ;;  %v3240_v60 = vadd.f32 %v6639_v36, %v8068_v18  ;;  %v4690_v36 = vand.u32 8, %v8003_v21 }
 0xb30   :  { %v3234_v55 = vpop.f32.mrf.mxu1 }
 0xb31   :  { %v3235_v7 = vadd.f32 %v8068_v18, %v3234_v55  ;;  %6666 = vmatprep.mubr.msk.f32.mxu0 %vm91_vm0, %v3271_v26  ;;  %v3274_v8 = vmax.f32 %v3240_v60, 0.0  ;;  %v4576_v60 = vsel %vm4560_vm11, 1, %v9688_v35  ;;  %vm4706_vm12 = vcmp.ne.s32.totalorder %v4690_v36, 0 }
 0xb32   :  { %v6642_v50 = vpop.f32.mrf.mxu1  ;;  %6667 = vmatmul.mubr.msk.f32.gmra.mxu0 %vm91_vm0, %v3272_v29  ;;  %4623 = vperm.xlu0 %6725, %v4576_v60  }
 0xb33   :  { %v3273_v38 = vmax.f32 %v3235_v7, 0.0  ;;  %v3250_v19 = vadd.f32 %v6642_v50, %v8068_v18  ;;  %v4722_v50 = vsel %vm4706_vm12, 1, %v9688_v35 }
 0xb34   :  { %v3244_v16 = vpop.f32.mrf.mxu1 }
 0xb35   :  { %v3245_v61 = vadd.f32 %v8068_v18, %v3244_v16  ;;  %6669 = vmatprep.mubr.msk.f32.mxu0 %vm91_vm0, %v3273_v38  ;;  %v3276_v58 = vmax.f32 %v3250_v19, 0.0  ;;  %v4098_v19 = vadd.s32 1, %v7815_v2  ;;  %v4131_v16 = vsub.s32 128, %v4112_v3 }
 0xb36   :  { %v6645_v13 = vpop.f32.mrf.mxu1  ;;  %6670 = vmatmul.mubr.msk.f32.gmra.mxu0 %vm91_vm0, %v3274_v8  ;;  %4741 = vperm.xlu0 %6725, %v4722_v50   ;;  %v4104_v2 = vadd.s32 1, %v7833_v46 }
 0xb37   :  { %v3275_v20 = vmax.f32 %v3245_v61, 0.0  ;;  %v3260_v26 = vadd.f32 %v6645_v13, %v8068_v18  ;;  %v4114_v13 = vand.u32 127, %v4098_v19  ;;  %v3518_v19 = vld [vmem:[#allocation5 + $0x8] sm:$0xff] }
 0xb38   :  { %v3254_v32 = vpop.f32.mrf.mxu1  ;;  %v4120_v50 = vand.u32 127, %v4104_v2  ;;  %3624 = vmatprep.subr.mxu1 %v3518_v19 }
 0xb39   :  { %v3255_v29 = vadd.f32 %v8068_v18, %v3254_v32  ;;  %6672 = vmatprep.mubr.msk.f32.mxu0 %vm91_vm0, %v3275_v20  ;;  %v3278_v7 = vmax.f32 %v3260_v26, 0.0  ;;  %v4094_v18 = vadd.s32 1, %v7801_v10  ;;  %v4147_v20 = vand.u32 127, %v4131_v16  ;;  %v3517_v16 = vld [vmem:[#allocation5] sm:$0xff] }
 0xb3a   :  { %6673 = vmatmul.mubr.msk.f32.gmra.mxu0 %vm91_vm0, %v3276_v58  ;;  %v4133_v36 = vsub.s32 128, %v4114_v13  ;;  %v4116_v58 = vand.u32 127, %v4100_v23  ;;  %v4102_v26 = vadd.s32 1, %v7827_v37  ;;  %v3528_v37 = vld [vmem:[#allocation5 + $0x58] sm:$0xff]  ;;  %3625 = vmatpush1.msra.mxu1 %v3517_v16 }
 0xb3b   :  { %v3277_v55 = vmax.f32 %v3255_v29, 0.0  ;;  %v4110_v38 = vand.u32 127, %v4094_v18  ;;  %v8132_v32 = vsel %vm4128_vm1, %v4112_v3, %v4147_v20  ;;  %6678 = vmatprep.subr.mxu0 %v3528_v37  ;;  %v4106_v18 = vadd.s32 1, %v7839_v49 }
 0xb3c   :  { %v4149_v29 = vand.u32 127, %v4133_v36  ;;  %v4135_v24 = vsub.s32 128, %v4116_v58  ;;  %v4118_v60 = vand.u32 127, %v4102_v26  ;;  %6679 = vmatpush3.msra.mxu0 %v3528_v37  ;;  %v4139_v49 = vsub.s32 128, %v4120_v50  ;;  %v3519_v36 = vld [vmem:[#allocation5 + $0x10] sm:$0xff] }
 0xb3d   :  { %6675 = vmatprep.mubr.msk.f32.mxu0 %vm91_vm0, %v3277_v55  ;;  %v4129_v8 = vsub.s32 128, %v4110_v38  ;;  %6680 = vmatprep.subr.mxu0 %v3525_v47  ;;  %v4122_v20 = vand.u32 127, %v4106_v18 }
 0xb3e   :  { %6676 = vmatmul.mubr.msk.f32.gmra.mxu0 %vm91_vm0, %v3278_v7  ;;  %v4211_v7 = vand.u32 1, %v8132_v32  ;;  %v4137_v3 = vsub.s32 128, %v4118_v60  ;;  %v4155_v37 = vand.u32 127, %v4139_v49 }
 0xb3f   :  { %v4145_v61 = vand.u32 127, %v4129_v8  ;;  %v8141_v8 = vsel %vm4128_vm1, %v4114_v13, %v4149_v29  ;;  %6681 = vmatpush3.msra.mxu0 %v3525_v47  ;;  %v6881_v13 = vmov 0.0  }
 0xb40   :  { %vm4227_vm14 = vcmp.ne.s32.totalorder %v4211_v7, 0  ;;  %v4213_v23 = vand.u32 1, %v8141_v8  ;;  %v4153_v26 = vand.u32 127, %v4137_v3  ;;  %3658 = vmatprep.mubr.f32.mxu1 %v6881_v13 }
 0xb41   :  { %v8127_v10 = vsel %vm4128_vm1, %v4110_v38, %v4145_v61  ;;  %v4151_v38 = vand.u32 127, %v4135_v24  ;;  %v4243_v46 = vsel %vm4227_vm14, 1, %v9688_v35  ;;  %v3522_v61 = vld [vmem:[#allocation5 + $0x28] sm:$0xff] }
 0xb42   :  { %v4209_v42 = vand.u32 1, %v8127_v10  ;;  %6682 = vmatprep.subr.mxu0 %v3522_v61  ;;  %vm4229_vm15 = vcmp.ne.s32.totalorder %v4213_v23, 0  ;;  %v8155_v18 = vsel %vm4128_vm1, %v4118_v60, %v4153_v26 }
 0xb43   :  { %6683 = vmatpush3.msra.mxu0 %v3522_v61  ;;  %v4245_v2 = vsel %vm4229_vm15, 1, %v9688_v35  ;;  %v8149_v29 = vsel %vm4128_vm1, %v4116_v58, %v4151_v38  ;;  %v4217_v47 = vand.u32 1, %v8155_v18 }
 0xb44   :  { %vm4225_vm13 = vcmp.ne.s32.totalorder %v4209_v42, 0  ;;  %v4108_v42 = vadd.s32 1, %v7845_v52  ;;  %6684 = vmatprep.subr.mxu0 %v3519_v36  ;;  %v4215_v24 = vand.u32 1, %v8149_v29 }
 0xb45   :  { %v4241_v55 = vsel %vm4225_vm13, 1, %v9688_v35  ;;  %6685 = vmatpush3.msra.mxu0 %v3519_v36  ;;  %vm4233_vm3 = vcmp.ne.s32.totalorder %v4217_v47, 0 }
 0xb46   :  { %4258 = vperm.xlu1 %6726, %v4241_v55   ;;  %v4141_v55 = vsub.s32 128, %v4122_v20  ;;  %vm4231_vm2 = vcmp.ne.s32.totalorder %v4215_v24, 0  ;;  %v4124_v7 = vand.u32 127, %v4108_v42  ;;  %v4249_v3 = vsel %vm4233_vm3, 1, %v9688_v35 }
 0xb47   :  { %v4247_v52 = vsel %vm4231_vm2, 1, %v9688_v35  ;;  %v4373_v24 = vand.u32 2, %v8141_v8 }
 0xb48   :  { %v4157_v58 = vand.u32 127, %v4141_v55  ;;  %v4143_v38 = vsub.s32 128, %v4124_v7 }
 0xb4a   :  { %4264 = vperm.xlu1 %6726, %v4243_v46   ;;  %v8161_v46 = vsel %vm4128_vm1, %v4120_v50, %v4155_v37  ;;  %v4159_v16 = vand.u32 127, %v4143_v38  ;;  %v8167_v61 = vsel %vm4128_vm1, %v4122_v20, %v4157_v58  ;;  %v4369_v20 = vand.u32 2, %v8127_v10 }
 0xb4b   :  { %v4219_v19 = vand.u32 1, %v8161_v46  ;;  %v4221_v23 = vand.u32 1, %v8167_v61  ;;  %v4375_v37 = vand.u32 2, %v8149_v29  ;;  %v4379_v58 = vand.u32 2, %v8161_v46 }
 0xb4c   :  { %v8173_v50 = vsel %vm4128_vm1, %v4124_v7, %v4159_v16  ;;  %vm4385_vm7 = vcmp.ne.s32.totalorder %v4369_v20, 0  ;;  %vm4389_vm1 = vcmp.ne.s32.totalorder %v4373_v24, 0  ;;  %v4533_v20 = vand.u32 4, %v8141_v8 }
 0xb4d   :  { %vm4235_vm4 = vcmp.ne.s32.totalorder %v4219_v19, 0  ;;  %vm4237_vm5 = vcmp.ne.s32.totalorder %v4221_v23, 0  ;;  %v4223_v36 = vand.u32 1, %v8173_v50  ;;  %v4401_v42 = vsel %vm4385_vm7, 1, %v9688_v35 }
 0xb4e   :  { %4270 = vperm.xlu1 %6726, %v4245_v2   ;;  %v4251_v60 = vsel %vm4235_vm4, 1, %v9688_v35  ;;  %v4253_v49 = vsel %vm4237_vm5, 1, %v9688_v35  ;;  %v4371_v2 = vand.u32 2, %v8132_v32  ;;  %v4405_v55 = vsel %vm4389_vm1, 1, %v9688_v35 }
 0xb4f   :  { %vm4239_vm6 = vcmp.ne.s32.totalorder %v4223_v36, 0  ;;  %vm4391_vm9 = vcmp.ne.s32.totalorder %v4375_v37, 0  ;;  %vm4395_vm11 = vcmp.ne.s32.totalorder %v4379_v58, 0  ;;  %v4383_v16 = vand.u32 2, %v8173_v50 }
 0xb50   :  { %v4255_v26 = vsel %vm4239_vm6, 1, %v9688_v35  ;;  %vm4387_vm8 = vcmp.ne.s32.totalorder %v4371_v2, 0  ;;  %v4407_v7 = vsel %vm4391_vm9, 1, %v9688_v35  ;;  %v4411_v38 = vsel %vm4395_vm11, 1, %v9688_v35 }
 0xb51   :  { %v4403_v17 = vsel %vm4387_vm8, 1, %v9688_v35  ;;  %vm4399_vm13 = vcmp.ne.s32.totalorder %v4383_v16, 0  ;;  %v4529_v23 = vand.u32 4, %v8127_v10  ;;  %v4531_v36 = vand.u32 4, %v8132_v32  ;;  %v8214_v16 = vld [vmem:[%s9684_s7 + $0x6] ss:$0 sm:$0xff] }
 0xb52   :  { %4276 = vperm.xlu1 %6726, %v4247_v52   ;;  %v4377_v52 = vand.u32 2, %v8155_v18  ;;  %vm4549_vm2 = vcmp.ne.s32.totalorder %v4533_v20, 0  ;;  %v4537_v2 = vand.u32 4, %v8155_v18  ;;  %vm4076_vm9 = vcmp.le.s32.totalorder %v7849_v43, %v7990_v6 }
 0xb53   :  { %vm4545_vm14 = vcmp.ne.s32.totalorder %v4529_v23, 0  ;;  %vm4547_vm15 = vcmp.ne.s32.totalorder %v4531_v36, 0  ;;  %v4700_v6 = vand.u32 8, %v8031_v54 }
 0xb54   :  { %vm4393_vm10 = vcmp.ne.s32.totalorder %v4377_v52, 0  ;;  %vm4553_vm4 = vcmp.ne.s32.totalorder %v4537_v2, 0 }
 0xb55   :  { %v4409_v47 = vsel %vm4393_vm10, 1, %v9688_v35  ;;  %v4569_v37 = vsel %vm4553_vm4, 1, %v9688_v35  ;;  %vm4716_vm4 = vcmp.ne.s32.totalorder %v4700_v6, 0 }
 0xb56   :  { %4282 = vperm.xlu1 %6726, %v4249_v3   ;;  %v4381_v3 = vand.u32 2, %v8167_v61 }
 0xb58   :  { %vm4397_vm12 = vcmp.ne.s32.totalorder %v4381_v3, 0 }
 0xb59   :  { %v4413_v19 = vsel %vm4397_vm12, 1, %v9688_v35 }
 0xb5a   :  { %4288 = vperm.xlu1 %6726, %v4251_v60   ;;  %v4415_v60 = vsel %vm4399_vm13, 1, %v9688_v35 }
 0xb5e   :  { %4294 = vperm.xlu1 %6726, %v4253_v49   ;;  %v4561_v49 = vsel %vm4545_vm14, 1, %v9688_v35 }
 0xb62   :  { %4300 = vperm.xlu1 %6726, %v4255_v26   ;;  %v4563_v26 = vsel %vm4547_vm15, 1, %v9688_v35 }
 0xb66   :  { %4418 = vperm.xlu1 %6726, %v4401_v42   ;;  %v4535_v42 = vand.u32 4, %v8149_v29 }
 0xb68   :  { %vm4551_vm3 = vcmp.ne.s32.totalorder %v4535_v42, 0 }
 0xb69   :  { %v4567_v24 = vsel %vm4551_vm3, 1, %v9688_v35 }
 0xb6a   :  { %4424 = vperm.xlu1 %6726, %v4403_v17   ;;  %v4565_v17 = vsel %vm4549_vm2, 1, %v9688_v35 }
 0xb6e   :  { %4430 = vperm.xlu1 %6726, %v4405_v55   ;;  %v4539_v55 = vand.u32 4, %v8161_v46 }
 0xb70   :  { %vm4555_vm5 = vcmp.ne.s32.totalorder %v4539_v55, 0 }
 0xb71   :  { %v4571_v52 = vsel %vm4555_vm5, 1, %v9688_v35 }
 0xb72   :  { %4436 = vperm.xlu1 %6726, %v4407_v7   ;;  %v4541_v7 = vand.u32 4, %v8167_v61 }
 0xb74   :  { %vm4557_vm6 = vcmp.ne.s32.totalorder %v4541_v7, 0 }
 0xb75   :  { %v4573_v58 = vsel %vm4557_vm6, 1, %v9688_v35 }
 0xb76   :  { %4442 = vperm.xlu1 %6726, %v4409_v47   ;;  %v4543_v47 = vand.u32 4, %v8173_v50 }
 0xb78   :  { %vm4559_vm7 = vcmp.ne.s32.totalorder %v4543_v47, 0 }
 0xb79   :  { %v4575_v3 = vsel %vm4559_vm7, 1, %v9688_v35 }
 0xb7a   :  { %4448 = vperm.xlu1 %6726, %v4411_v38   ;;  %v4689_v38 = vand.u32 8, %v8127_v10 }
 0xb7c   :  { %vm4705_vm8 = vcmp.ne.s32.totalorder %v4689_v38, 0 }
 0xb7e   :  { %4454 = vperm.xlu1 %6726, %v4413_v19   ;;  %v4721_v19 = vsel %vm4705_vm8, 1, %v9688_v35 }
 0xb82   :  { %4460 = vperm.xlu1 %6726, %v4415_v60  }
 0xb86   :  { %4578 = vperm.xlu1 %6726, %v4561_v49  }
 0xb8a   :  { %4584 = vperm.xlu1 %6726, %v4563_v26  }
 0xb8e   :  { %4590 = vperm.xlu1 %6726, %v4565_v17  }
 0xb92   :  { %4596 = vperm.xlu1 %6726, %v4567_v24  }
 0xb96   :  { %4602 = vperm.xlu1 %6726, %v4569_v37  }
 0xb9a   :  { %4608 = vperm.xlu1 %6726, %v4571_v52  }
 0xb9e   :  { %4614 = vperm.xlu1 %6726, %v4573_v58  }
 0xba2   :  { %4620 = vperm.xlu1 %6726, %v4575_v3  }
 0xba6   :  { %4738 = vperm.xlu1 %6726, %v4721_v19  }
 0xbe2   :  { %v6656_v60 = vpop.f32.mrf.mxu0 }
 0xbe3   :  { %v3412_v23 = vadd.f32 %v6656_v60, %v8214_v16 }
 0xbe4   :  { %v3406_v49 = vpop.f32.mrf.mxu0 }
 0xbe5   :  { %v3407_v36 = vadd.f32 %v8214_v16, %v3406_v49  ;;  %v3486_v26 = vadd.f32 %v3412_v23, %v7861_v41 }
 0xbe6   :  { %v6659_v20 = vpop.f32.mrf.mxu0 }
 0xbe7   :  { %v3485_v42 = vadd.f32 %v3407_v36, %v7864_v0  ;;  %v3422_v2 = vadd.f32 %v6659_v20, %v8214_v16  ;;  %v3502_v37 = vmax.f32 %v3486_v26, 0.0 }
 0xbe8   :  { %v3416_v17 = vpop.f32.mrf.mxu0 }
 0xbe9   :  { %v3501_v24 = vmax.f32 %v3485_v42, 0.0  ;;  %v3417_v55 = vadd.f32 %v8214_v16, %v3416_v17  ;;  %v3488_v7 = vadd.f32 %v3422_v2, %v7871_v12 }
 0xbea   :  { %v6662_v52 = vpop.f32.mrf.mxu0 }
 0xbeb   :  { %v3487_v47 = vadd.f32 %v3417_v55, %v7874_v22  ;;  %v3432_v58 = vadd.f32 %v6662_v52, %v8214_v16  ;;  %5814 = vmatmul.mubr.msk.f32.vlgmr.msra.gmra.mxu1 %vm91_vm0, %v3501_v24  ;;  %6686 = vmatprep.mubr.msk.f32.mxu0 %vm91_vm0, %v3501_v24  ;;  %v3504_v3 = vmax.f32 %v3488_v7, 0.0 }
 0xbec   :  { %v3426_v41 = vpop.f32.mrf.mxu0  ;;  %6687 = vmatmul.mubr.msk.f32.vlgmr.msra.gmra.mxu0 %vm91_vm0, %v3502_v37  ;;  %3664 = vmatprep.mubr.f32.mxu1 %v6881_v13 }
 0xbed   :  { %v3503_v0 = vmax.f32 %v3487_v47, 0.0  ;;  %v3427_v38 = vadd.f32 %v8214_v16, %v3426_v41  ;;  %v3490_v12 = vadd.f32 %v3432_v58, %v7883_v62 }
 0xbee   :  { %v6665_v19 = vpop.f32.mrf.mxu0 }
 0xbef   :  { %v3489_v22 = vadd.f32 %v3427_v38, %v7886_v15  ;;  %v3442_v60 = vadd.f32 %v6665_v19, %v8214_v16  ;;  %5815 = vmatmul.mubr.msk.f32.gmra.mxu1 %vm91_vm0, %v3502_v37  ;;  %6689 = vmatprep.mubr.msk.f32.mxu0 %vm91_vm0, %v3503_v0  ;;  %v3506_v26 = vmax.f32 %v3490_v12, 0.0 }
 0xbf0   :  { %v3436_v23 = vpop.f32.mrf.mxu0  ;;  %6690 = vmatmul.mubr.msk.f32.gmra.mxu0 %vm91_vm0, %v3504_v3  ;;  %3670 = vmatprep.mubr.f32.mxu1 %v6881_v13 }
 0xbf1   :  { %v3505_v49 = vmax.f32 %v3489_v22, 0.0  ;;  %v3437_v36 = vadd.f32 %v8214_v16, %v3436_v23  ;;  %v3492_v62 = vadd.f32 %v3442_v60, %v7895_v4 }
 0xbf2   :  { %v6668_v20 = vpop.f32.mrf.mxu0 }
 0xbf3   :  { %v3491_v15 = vadd.f32 %v3437_v36, %v7898_v63  ;;  %v3452_v42 = vadd.f32 %v6668_v20, %v8214_v16  ;;  %5816 = vmatmul.mubr.msk.f32.gmra.mxu1 %vm91_vm0, %v3503_v0  ;;  %6692 = vmatprep.mubr.msk.f32.mxu0 %vm91_vm0, %v3505_v49  ;;  %v3508_v55 = vmax.f32 %v3492_v62, 0.0 }
 0xbf4   :  { %v3446_v2 = vpop.f32.mrf.mxu0  ;;  %6693 = vmatmul.mubr.msk.f32.gmra.mxu0 %vm91_vm0, %v3506_v26  ;;  %3676 = vmatprep.mubr.f32.mxu1 %v6881_v13 }
 0xbf5   :  { %v3507_v17 = vmax.f32 %v3491_v15, 0.0  ;;  %v3447_v24 = vadd.f32 %v8214_v16, %v3446_v2  ;;  %v3494_v4 = vadd.f32 %v3452_v42, %v7907_v11 }
 0xbf6   :  { %v6671_v37 = vpop.f32.mrf.mxu0 }
 0xbf7   :  { %v3493_v63 = vadd.f32 %v3447_v24, %v7910_v45  ;;  %v3462_v7 = vadd.f32 %v6671_v37, %v8214_v16  ;;  %5817 = vmatmul.mubr.msk.f32.gmra.mxu1 %vm91_vm0, %v3504_v3  ;;  %6695 = vmatprep.mubr.msk.f32.mxu0 %vm91_vm0, %v3507_v17  ;;  %v3510_v41 = vmax.f32 %v3494_v4, 0.0 }
 0xbf8   :  { %v3456_v52 = vpop.f32.mrf.mxu0  ;;  %6696 = vmatmul.mubr.msk.f32.gmra.mxu0 %vm91_vm0, %v3508_v55  ;;  %3682 = vmatprep.mubr.f32.mxu1 %v6881_v13 }
 0xbf9   :  { %v3509_v47 = vmax.f32 %v3493_v63, 0.0  ;;  %v3457_v58 = vadd.f32 %v8214_v16, %v3456_v52  ;;  %v3496_v11 = vadd.f32 %v3462_v7, %v7919_v57 }
 0xbfa   :  { %v6674_v0 = vpop.f32.mrf.mxu0 }
 0xbfb   :  { %v3495_v45 = vadd.f32 %v3457_v58, %v7922_v27  ;;  %v3472_v38 = vadd.f32 %v6674_v0, %v8214_v16  ;;  %5818 = vmatmul.mubr.msk.f32.gmra.mxu1 %vm91_vm0, %v3505_v49  ;;  %6698 = vmatprep.mubr.msk.f32.mxu0 %vm91_vm0, %v3509_v47  ;;  %v3512_v22 = vmax.f32 %v3496_v11, 0.0 }
 0xbfc   :  { %v3466_v3 = vpop.f32.mrf.mxu0  ;;  %6699 = vmatmul.mubr.msk.f32.gmra.mxu0 %vm91_vm0, %v3510_v41  ;;  %3688 = vmatprep.mubr.f32.mxu1 %v6881_v13 }
 0xbfd   :  { %v3511_v12 = vmax.f32 %v3495_v45, 0.0  ;;  %v3467_v19 = vadd.f32 %v8214_v16, %v3466_v3  ;;  %v3498_v57 = vadd.f32 %v3472_v38, %v7931_v39  ;;  %v8336_v45 = vld [vmem:[%s9686_s9] sm:$0x7]  ;;  %s6882_s9 = smov 2  }
 0xbfe   :  { %v6677_v60 = vpop.f32.mrf.mxu0 }
 0xbff   :  { %v3497_v27 = vadd.f32 %v3467_v19, %v7934_v30  ;;  %v3482_v23 = vadd.f32 %v6677_v60, %v8214_v16  ;;  %5819 = vmatmul.mubr.msk.f32.gmra.mxu1 %vm91_vm0, %v3506_v26  ;;  %6701 = vmatprep.mubr.msk.f32.mxu0 %vm91_vm0, %v3511_v12  ;;  %v3514_v20 = vmax.f32 %v3498_v57, 0.0 }
 0xc00   :  { %v3476_v49 = vpop.f32.mrf.mxu0  ;;  %6702 = vmatmul.mubr.msk.f32.gmra.mxu0 %vm91_vm0, %v3512_v22  ;;  %3694 = vmatprep.mubr.f32.mxu1 %v6881_v13 }
 0xc01   :  { %v3513_v36 = vmax.f32 %v3497_v27, 0.0  ;;  %v3477_v62 = vadd.f32 %v8214_v16, %v3476_v49  ;;  %v3500_v39 = vadd.f32 %v3482_v23, %v7943_v34  ;;  %v8295_v34 = vpop.permute.xlu1 %4021 }
 0xc02   :  { %9718 = vst [vmem:[#allocation21_spill] sm:$0xff] %v8295_v34 }
 0xc03   :  { %v3499_v15 = vadd.f32 %v3477_v62, %v7946_v31  ;;  %5820 = vmatmul.mubr.msk.f32.gmra.mxu1 %vm91_vm0, %v3507_v17  ;;  %6704 = vmatprep.mubr.msk.f32.mxu0 %vm91_vm0, %v3513_v36  ;;  %v3516_v26 = vmax.f32 %v3500_v39, 0.0 }
 0xc04   :  { %6705 = vmatmul.mubr.msk.f32.gmra.mxu0 %vm91_vm0, %v3514_v20  ;;  %3700 = vmatprep.mubr.f32.mxu1 %v6881_v13 }
 0xc05   :  { %v3515_v30 = vmax.f32 %v3499_v15, 0.0  ;;  %v8297_v31 = vpop.permute.xlu1 %4024 }
 0xc06   :  { %9719 = vst [vmem:[#allocation22_spill] sm:$0xff] %v8297_v31 }
 0xc07   :  { %5821 = vmatmul.mubr.msk.f32.gmra.mxu1 %vm91_vm0, %v3508_v55  ;;  %6707 = vmatprep.mubr.msk.f32.mxu0 %vm91_vm0, %v3515_v30 }
 0xc08   :  { %6708 = vmatmul.mubr.msk.f32.gmra.mxu0 %vm91_vm0, %v3516_v26  ;;  %3706 = vmatprep.mubr.f32.mxu1 %v6881_v13 }
 0xc09   :  { %v8299_v16 = vpop.permute.xlu1 %4030 }
 0xc0a   :  { %9720 = vst [vmem:[#allocation23_spill] sm:$0xff] %v8299_v16 }
 0xc0b   :  { %5822 = vmatmul.mubr.msk.f32.gmra.mxu1 %vm91_vm0, %v3509_v47 }
 0xc0c   :  { %3712 = vmatprep.mubr.f32.mxu1 %v6881_v13 }
 0xc0d   :  { %v8301_v42 = vpop.permute.xlu1 %4036 }
 0xc0e   :  { %9721 = vst [vmem:[#allocation24_spill] sm:$0xff] %v8301_v42 }
 0xc0f   :  { %5823 = vmatmul.mubr.msk.f32.gmra.mxu1 %vm91_vm0, %v3510_v41  ;;  %v8328_v41 = vshrl.u32 %v3531_v51, 7 }
 0xc10   :  { %3718 = vmatprep.mubr.f32.mxu1 %v6881_v13 }
 0xc11   :  { %v8303_v2 = vpop.permute.xlu1 %4042  ;;  %v3537_v0 = vsub.s32 1, %v8328_v41 }
 0xc12   :  { %9722 = vst [vmem:[#allocation25_spill] sm:$0xff] %v8303_v2 }
 0xc13   :  { %5824 = vmatmul.mubr.msk.f32.gmra.mxu1 %vm91_vm0, %v3511_v12  ;;  %v8341_v3 = vrot.slane %v8336_v45, %v3537_v0 }
 0xc14   :  { %3724 = vmatprep.mubr.f32.mxu1 %v6881_v13 }
 0xc15   :  { %v8305_v17 = vpop.permute.xlu1 %4048 }
 0xc16   :  { %9723 = vst [vmem:[#allocation26_spill] sm:$0xff] %v8305_v17 }
 0xc17   :  { %5825 = vmatmul.mubr.msk.f32.gmra.mxu1 %vm91_vm0, %v3512_v22 }
 0xc18   :  { %3730 = vmatprep.mubr.f32.mxu1 %v6881_v13 }
 0xc19   :  { %v8307_v24 = vpop.permute.xlu1 %4054 }
 0xc1a   :  { %9724 = vst [vmem:[#allocation27_spill] sm:$0xff] %v8307_v24 }
 0xc1b   :  { %5826 = vmatmul.mubr.msk.f32.gmra.mxu1 %vm91_vm0, %v3513_v36 }
 0xc1c   :  { %3736 = vmatprep.mubr.f32.mxu1 %v6881_v13 }
 0xc1d   :  { %v8309_v55 = vpop.permute.xlu1 %4060 }
 0xc1e   :  { %9725 = vst [vmem:[#allocation28_spill] sm:$0xff] %v8309_v55  ;;  %vm4077_vm1 = vcmp.le.s32.totalorder %v7849_v43, %v8309_v55 }
 0xc1f   :  { %5827 = vmatmul.mubr.msk.f32.gmra.mxu1 %vm91_vm0, %v3514_v20 }
 0xc20   :  { %3742 = vmatprep.mubr.f32.mxu1 %v6881_v13 }
 0xc21   :  { %v8311_v4 = vpop.permute.xlu1 %4258 }
 0xc22   :  { %vm4305_vm7 = vcmp.eq.s32.totalorder %v8311_v4, 1 }
 0xc23   :  { %5828 = vmatmul.mubr.msk.f32.gmra.mxu1 %vm91_vm0, %v3515_v30 }
 0xc24   :  { %3748 = vmatprep.mubr.f32.mxu1 %v6881_v13  ;;  %v8313_v13 = vpop.permute.xlu0 %4261 }
 0xc25   :  { %v8315_v37 = vpop.permute.xlu1 %4264  ;;  %vm4306_vm8 = vcmp.eq.s32.totalorder %v8313_v13, 1 }
 0xc27   :  { %5829 = vmatmul.mubr.msk.f32.gmra.mxu1 %vm91_vm0, %v3516_v26 }
 0xc28   :  { %v8317_v63 = vpop.permute.xlu0 %4267 }
 0xc29   :  { %v8319_v7 = vpop.permute.xlu1 %4270 }
 0xc2c   :  { %v8321_v52 = vpop.permute.xlu0 %4273 }
 0xc2d   :  { %v8323_v47 = vpop.permute.xlu1 %4276 }
 0xc30   :  { %v8325_v58 = vpop.permute.xlu0 %4279 }
 0xc31   :  { %v8330_v11 = vpop.permute.xlu1 %4282 }
 0xc34   :  { %v8338_v38 = vpop.permute.xlu0 %4285 }
 0xc35   :  { %v8345_v19 = vpop.permute.xlu1 %4288 }
 0xc38   :  { %v8356_v23 = vpop.permute.xlu0 %4291 }
 0xc39   :  { %v8362_v62 = vpop.permute.xlu1 %4294 }
 0xc3c   :  { %v8375_v0 = vpop.permute.xlu0 %4297 }
 0xcab   :  { %v8343_v12 = vpop.f32.mrf.mxu1 }
 0xcac   :  { %9726 = vst [vmem:[#allocation29_spill] sm:$0xff] %v8343_v12  ;;  %v8347_v51 = vpop.f32.mrf.mxu0 }
 0xcad   :  { %9727 = vst [vmem:[#allocation30_spill] sm:$0xff] %v8347_v51  ;;  %v3662_v22 = vpop.f32.mrf.mxu1 }
 0xcae   :  { %v8350_v57 = vadd.f32 %v3662_v22, %v8341_v3  ;;  %v8352_v60 = vpop.f32.mrf.mxu0 }
 0xcaf   :  { %9728 = vst [vmem:[#allocation31_spill] sm:$0xff] %v8352_v60  ;;  %v8354_v27 = vpop.f32.mrf.mxu1 }
 0xcb0   :  { %9729 = vst [vmem:[#allocation32_spill] sm:$0xff] %v8354_v27  ;;  %v8358_v49 = vpop.f32.mrf.mxu0  ;;  %4177 = vrot.lane.b32.xlu1 %v8350_v57, %s6880_s27 }
 0xcb1   :  { %9730 = vst [vmem:[#allocation33_spill] sm:$0xff] %v8358_v49  ;;  %v3668_v36 = vpop.f32.mrf.mxu1 }
 0xcb2   :  { %v8365_v20 = vadd.f32 %v3668_v36, %v8341_v3  ;;  %v8367_v39 = vpop.f32.mrf.mxu0  ;;  %v8384_v36 = vpop.permute.xlu1 %4300 }
 0xcb3   :  { %9731 = vst [vmem:[#allocation34_spill] sm:$0xff] %v8367_v39  ;;  %v8369_v15 = vpop.f32.mrf.mxu1 }
 0xcb4   :  { %9732 = vst [vmem:[#allocation35_spill] sm:$0xff] %v8369_v15  ;;  %v8371_v30 = vpop.f32.mrf.mxu0  ;;  %4179 = vrot.lane.b32.xlu0 %v8365_v20, %s6880_s27 }
 0xcb5   :  { %9733 = vst [vmem:[#allocation36_spill] sm:$0xff] %v8371_v30  ;;  %v3674_v26 = vpop.f32.mrf.mxu1 }
 0xcb6   :  { %v8378_v22 = vadd.f32 %v3674_v26, %v8341_v3  ;;  %v8380_v35 = vpop.f32.mrf.mxu0  ;;  %v8397_v26 = vpop.permute.xlu0 %4303 }
 0xcb7   :  { %9734 = vst [vmem:[#allocation37_spill] sm:$0xff] %v8380_v35  ;;  %v8382_v24 = vpop.f32.mrf.mxu1  ;;  %v8403_v16 = vpop.permute.xlu1 %4418 }
 0xcb8   :  { %9735 = vst [vmem:[#allocation38_spill] sm:$0xff] %v8382_v24  ;;  %v8386_v56 = vpop.f32.mrf.mxu0  ;;  %4181 = vrot.lane.b32.xlu1 %v8378_v22, %s6880_s27  ;;  %9740 = vst [vmem:[#allocation43_spill] sm:$0xff] %v8403_v16 }
 0xcb9   :  { %9736 = vst [vmem:[#allocation39_spill] sm:$0xff] %v8386_v56  ;;  %v3680_v17 = vpop.f32.mrf.mxu1 }
 0xcba   :  { %v8391_v33 = vadd.f32 %v3680_v17, %v8341_v3  ;;  %v8393_v2 = vpop.f32.mrf.mxu0  ;;  %v8416_v31 = vpop.permute.xlu0 %4421 }
 0xcbb   :  { %9737 = vst [vmem:[#allocation40_spill] sm:$0xff] %v8393_v2  ;;  %v8395_v1 = vpop.f32.mrf.mxu1  ;;  %9744 = vst [vmem:[#allocation47_spill] sm:$0xff] %v8416_v31  ;;  %v8426_v53 = vpop.permute.xlu1 %4424 }
 0xcbc   :  { %9738 = vst [vmem:[#allocation41_spill] sm:$0xff] %v8395_v1  ;;  %v8399_v42 = vpop.f32.mrf.mxu0  ;;  %4183 = vrot.lane.b32.xlu0 %v8391_v33, %s6880_s27  ;;  %9747 = vst [vmem:[#allocation50_spill] sm:$0xff] %v8426_v53  ;;  %v4694_v53 = vand.u32 8, %v8011_v48 }
 0xcbd   :  { %9739 = vst [vmem:[#allocation42_spill] sm:$0xff] %v8399_v42  ;;  %v3686_v25 = vpop.f32.mrf.mxu1 }
 0xcbe   :  { %v8406_v9 = vadd.f32 %v3686_v25, %v8341_v3  ;;  %v8408_v24 = vpop.f32.mrf.mxu0  ;;  %v3541_v25 = vsub.s32 2, %v8328_v41  ;;  %vm4710_vm12 = vcmp.ne.s32.totalorder %v4694_v53, 0  ;;  %v4699_v53 = vand.u32 8, %v8161_v46 }
 0xcbf   :  { %9741 = vst [vmem:[#allocation44_spill] sm:$0xff] %v8408_v24  ;;  %v8410_v17 = vpop.f32.mrf.mxu1  ;;  %v8442_v24 = vpop.permute.xlu0 %4427 }
 0xcc0   :  { %9742 = vst [vmem:[#allocation45_spill] sm:$0xff] %v8410_v17  ;;  %v8412_v15 = vpop.f32.mrf.mxu0  ;;  %4185 = vrot.lane.b32.xlu1 %v8406_v9, %s6880_s27  ;;  %9752 = vst [vmem:[#allocation55_spill] sm:$0xff] %v8442_v24  ;;  %v8447_v2 = vpop.permute.xlu1 %4430  ;;  %vm4715_vm3 = vcmp.ne.s32.totalorder %v4699_v53, 0 }
 0xcc1   :  { %9743 = vst [vmem:[#allocation46_spill] sm:$0xff] %v8412_v15  ;;  %v3692_v1 = vpop.f32.mrf.mxu1  ;;  %9753 = vst [vmem:[#allocation56_spill] sm:$0xff] %v8447_v2 }
 0xcc2   :  { %v8419_v27 = vadd.f32 %v3692_v1, %v8341_v3  ;;  %v8421_v34 = vpop.f32.mrf.mxu0  ;;  %v8438_v1 = vrot.slane %v8336_v45, %v3541_v25 }
 0xcc3   :  { %9745 = vst [vmem:[#allocation48_spill] sm:$0xff] %v8421_v34  ;;  %v8424_v59 = vpop.f32.mrf.mxu1  ;;  %v8457_v39 = vpop.permute.xlu0 %4433 }
 0xcc4   :  { %9746 = vst [vmem:[#allocation49_spill] sm:$0xff] %v8424_v59  ;;  %v8428_v17 = vpop.f32.mrf.mxu0  ;;  %4187 = vrot.lane.b32.xlu0 %v8419_v27, %s6880_s27  ;;  %9750 = vst [vmem:[#allocation53_spill] sm:$0xff] %v8438_v1 }
 0xcc5   :  { %9748 = vst [vmem:[#allocation51_spill] sm:$0xff] %v8428_v17  ;;  %v3698_v15 = vpop.f32.mrf.mxu1  ;;  %9755 = vst [vmem:[#allocation58_spill] sm:$0xff] %v8457_v39  ;;  %v3533_v39 = vsub.s32 0, %v8328_v41 }
 0xcc6   :  { %v8433_v12 = vadd.f32 %v3698_v15, %v8341_v3  ;;  %v8435_v42 = vpop.f32.mrf.mxu0 }
 0xcc7   :  { %9749 = vst [vmem:[#allocation52_spill] sm:$0xff] %v8435_v42  ;;  %v8440_v34 = vpop.f32.mrf.mxu1 }
 0xcc8   :  { %9751 = vst [vmem:[#allocation54_spill] sm:$0xff] %v8440_v34  ;;  %v6709_v59 = vpop.f32.mrf.mxu0  ;;  %4189 = vrot.lane.b32.xlu1 %v8433_v12, %s6880_s27 }
 0xcc9   :  { %v3897_v17 = vadd.f32 %v6709_v59, %v8438_v1  ;;  %v3704_v56 = vpop.f32.mrf.mxu1 }
 0xcca   :  { %v8450_v15 = vadd.f32 %v3704_v56, %v8341_v3  ;;  %v3891_v42 = vpop.f32.mrf.mxu0  ;;  %v8464_v56 = vpop.permute.xlu1 %4436 }
 0xccb   :  { %v5861_v30 = vmul.f32 -1.442695, %v3897_v17  ;;  %v3892_v25 = vadd.f32 %v3891_v42, %v8438_v1  ;;  %v8453_v35 = vpop.f32.mrf.mxu1  ;;  %9757 = vst [vmem:[#allocation60_spill] sm:$0xff] %v8464_v56 }
 0xccc   :  { %9754 = vst [vmem:[#allocation57_spill] sm:$0xff] %v8453_v35  ;;  %4191 = vrot.lane.b32.xlu0 %v8450_v15, %s6880_s27  ;;  %v8473_v35 = vpop.permute.xlu0 %4439 }
 0xccd   :  { %v5860_v34 = vmul.f32 -1.442695, %v3892_v25  ;;  %v3710_v49 = vpop.f32.mrf.mxu1  ;;  %6727 = vpow2.f32 %v5861_v30  ;;  %9759 = vst [vmem:[#allocation62_spill] sm:$0xff] %v8473_v35 }
 0xcce   :  { %v8460_v59 = vadd.f32 %v3710_v49, %v8341_v3  ;;  %v8477_v30 = vpop.permute.xlu1 %4442 }
 0xccf   :  { %v8462_v51 = vpop.f32.mrf.mxu1  ;;  %6729 = vpow2.f32 %v5860_v34  ;;  %9760 = vst [vmem:[#allocation63_spill] sm:$0xff] %v8477_v30 }
 0xcd0   :  { %9756 = vst [vmem:[#allocation59_spill] sm:$0xff] %v8462_v51  ;;  %4193 = vrot.lane.b32.xlu1 %v8460_v59, %s6880_s27  ;;  %v8486_v60 = vpop.permute.xlu0 %4445 }
 0xcd1   :  { %v3716_v42 = vpop.f32.mrf.mxu1  ;;  %9762 = vst [vmem:[#allocation65_spill] sm:$0xff] %v8486_v60 }
 0xcd2   :  { %v8469_v17 = vadd.f32 %v3716_v42, %v8341_v3  ;;  %v8493_v56 = vpop.permute.xlu1 %4448 }
 0xcd3   :  { %v8471_v25 = vpop.f32.mrf.mxu1  ;;  %9764 = vst [vmem:[#allocation67_spill] sm:$0xff] %v8493_v56  ;;  %v8510_v56 = vrot.slane %v8336_v45, %v3533_v39 }
 0xcd4   :  { %9758 = vst [vmem:[#allocation61_spill] sm:$0xff] %v8471_v25  ;;  %4195 = vrot.lane.b32.xlu0 %v8469_v17, %s6880_s27  ;;  %v8503_v24 = vpop.permute.xlu0 %4451 }
 0xcd5   :  { %v3722_v49 = vpop.f32.mrf.mxu1  ;;  %9766 = vst [vmem:[#allocation69_spill] sm:$0xff] %v8503_v24  ;;  %9768 = vst [vmem:[#allocation71_spill] sm:$0xff] %v8510_v56 }
 0xcd6   :  { %v8480_v51 = vadd.f32 %v3722_v49, %v8341_v3 }
 0xcd7   :  { %v8482_v34 = vpop.f32.mrf.mxu1 }
 0xcd8   :  { %9761 = vst [vmem:[#allocation64_spill] sm:$0xff] %v8482_v34  ;;  %4197 = vrot.lane.b32.xlu1 %v8480_v51, %s6880_s27 }
 0xcd9   :  { %v3728_v42 = vpop.f32.mrf.mxu1 }
 0xcda   :  { %v8489_v25 = vadd.f32 %v3728_v42, %v8341_v3  ;;  %v6728_v1 = vpop.eup %6727 }
 0xcdb   :  { %v8491_v35 = vpop.f32.mrf.mxu1  ;;  %v3963_v30 = vadd.f32 1.0, %v6728_v1 }
 0xcdc   :  { %9763 = vst [vmem:[#allocation66_spill] sm:$0xff] %v8491_v35  ;;  %4199 = vrot.lane.b32.xlu0 %v8489_v25, %s6880_s27  ;;  %v6730_v49 = vpop.eup %6729  ;;  %v8507_v35 = vpop.permute.xlu1 %4454 }
 0xcdd   :  { %v3734_v34 = vpop.f32.mrf.mxu1  ;;  %6731 = vrcp.f32 %v3963_v30  ;;  %v3962_v2 = vadd.f32 1.0, %v6730_v49  ;;  %9767 = vst [vmem:[#allocation70_spill] sm:$0xff] %v8507_v35 }
 0xcde   :  { %v8499_v60 = vadd.f32 %v3734_v34, %v8341_v3 }
 0xcdf   :  { %v8501_v42 = vpop.f32.mrf.mxu1  ;;  %6733 = vrcp.f32 %v3962_v2  ;;  %v4691_v2 = vand.u32 8, %v8132_v32 }
 0xce0   :  { %9765 = vst [vmem:[#allocation68_spill] sm:$0xff] %v8501_v42  ;;  %4201 = vrot.lane.b32.xlu1 %v8499_v60, %s6880_s27  ;;  %v8519_v42 = vpop.permute.xlu0 %4457  ;;  %v8524_v45 = vpop.permute.xlu1 %4460 }
 0xce1   :  { %v3740_v1 = vpop.f32.mrf.mxu1  ;;  %9769 = vst [vmem:[#allocation72_spill] sm:$0xff] %v8519_v42  ;;  %9770 = vst [vmem:[#allocation73_spill] sm:$0xff] %v8524_v45  ;;  %vm4707_vm0 = vcmp.ne.s32.totalorder %v4691_v2, 0  ;;  %v9772_v2 = vmov 0  }
 0xce2   :  { %v8513_v41 = vadd.f32 %v3740_v1, %v8341_v3  ;;  %v4692_v1 = vand.u32 8, %v8007_v44 }
 0xce3   :  { %v3744_v30 = vpop.f32.mrf.mxu1 }
 0xce4   :  { %v3745_v34 = vadd.f32 %v3744_v30, %v8510_v56  ;;  %4203 = vrot.lane.b32.xlu0 %v8513_v41, %s6880_s27  ;;  %v4693_v30 = vand.u32 8, %v8141_v8  ;;  %v8545_v31 = vpop.permute.xlu0 %4463  ;;  %vm4708_vm10 = vcmp.ne.s32.totalorder %v4692_v1, 0  ;;  %v8558_v55 = vpop.permute.xlu1 %4578  ;;  %v4697_v1 = vand.u32 8, %v8155_v18 }
 0xce5   :  { %v3746_v49 = vpop.f32.mrf.mxu1  ;;  %9773 = vst [vmem:[#allocation75_spill] sm:$0xff] %v8545_v31 }
 0xce6   :  { %v8522_v24 = vadd.f32 %v3746_v49, %v8341_v3  ;;  %vm4709_vm11 = vcmp.ne.s32.totalorder %v4693_v30, 0  ;;  %vm4713_vm15 = vcmp.ne.s32.totalorder %v4697_v1, 0 }
 0xce7   :  { %v3750_v35 = vpop.f32.mrf.mxu1 }
 0xce8   :  { %v3751_v39 = vadd.f32 %v3750_v35, %v8510_v56  ;;  %4205 = vrot.lane.b32.xlu1 %v8522_v24, %s6880_s27  ;;  %v4723_v56 = vsel %vm4707_vm0, 1, %v9772_v2  ;;  %v8567_v30 = vpop.permute.xlu0 %4581  ;;  %vm4307_vm0 = vcmp.eq.s32.totalorder %v8315_v37, 1 }
 0xce9   :  { %v3752_v42 = vpop.f32.mrf.mxu1 }
 0xcea   :  { %v4093_v49 = vsel %vm4077_vm1, %v3751_v39, 0.0  ;;  %v8537_v45 = vadd.f32 %v3752_v42, %v8341_v3  ;;  %v8539_v35 = vpop.eup %6731  ;;  %v4695_v3 = vand.u32 8, %v8149_v29  ;;  %v4092_v39 = vsel %vm4076_vm9, %v3745_v34, 0.0 }
 0xceb   :  { %9771 = vst [vmem:[#allocation74_spill] sm:$0xff] %v8539_v35  ;;  %v8548_v16 = vmul.f32 %v8539_v35, %v4093_v49  ;;  %v4724_v49 = vsel %vm4708_vm10, 1, %v9772_v2  ;;  %v4726_v34 = vsel %vm4710_vm12, 1, %v9772_v2  ;;  %vm4308_vm10 = vcmp.eq.s32.totalorder %v8317_v63, 1 }
 0xcec   :  { %4207 = vrot.lane.b32.xlu0 %v8537_v45, %s6880_s27  ;;  %4744 = vperm.xlu1 %6726, %v4723_v56   ;;  %v8553_v42 = vpop.eup %6733  ;;  %vm4711_vm13 = vcmp.ne.s32.totalorder %v4695_v3, 0  ;;  %v4696_v56 = vand.u32 8, %v8019_v40  ;;  %vm4310_vm12 = vcmp.eq.s32.totalorder %v8321_v52, 1  ;;  %s6884_s27 = smov 16  }
 0xced   :  { %9774 = vst [vmem:[#allocation76_spill] sm:$0xff] %v8548_v16  ;;  %9775 = vst [vmem:[#allocation77_spill] sm:$0xff] %v8553_v42  ;;  %v8561_v31 = vmul.f32 %v8553_v42, %v4092_v39  ;;  %v4725_v16 = vsel %vm4709_vm11, 1, %v9772_v2  ;;  %v4727_v35 = vsel %vm4711_vm13, 1, %v9772_v2  ;;  %v8571_v39 = vpop.permute.xlu1 %4584  ;;  %v4702_v42 = vand.u32 8, %v8037_v14 }
 0xcee   :  { %vm4712_vm14 = vcmp.ne.s32.totalorder %v4696_v56, 0  ;;  %vm4309_vm11 = vcmp.eq.s32.totalorder %v8319_v7, 1  ;;  %vm4311_vm13 = vcmp.eq.s32.totalorder %v8323_v47, 1 }
 0xcef   :  { %9776 = vst [vmem:[#allocation78_spill] sm:$0xff] %v8561_v31  ;;  %v4728_v3 = vsel %vm4712_vm14, 1, %v9772_v2  ;;  %v8577_v31 = vpop.permute.xlu0 %4587  ;;  %vm4718_vm6 = vcmp.ne.s32.totalorder %v4702_v42, 0  ;;  %vm4312_vm14 = vcmp.eq.s32.totalorder %v8325_v58, 1 }
 0xcf0   :  { %4747 = vperm.xlu0 %6725, %v4724_v49   ;;  %4750 = vperm.xlu1 %6726, %v4725_v16   ;;  %v4698_v16 = vand.u32 8, %v8025_v5  ;;  %v4729_v49 = vsel %vm4713_vm15, 1, %v9772_v2  ;;  %9777 = vst [vmem:[#allocation79_spill] sm:$0xff] %v8577_v31  ;;  %v4734_v43 = vsel %vm4718_vm6, 1, %v9772_v2  ;;  %vm4313_vm15 = vcmp.eq.s32.totalorder %v8330_v11, 1 }
 0xcf1   :  { %v8581_v56 = vpop.permute.xlu1 %4590  ;;  %vm4318_vm6 = vcmp.eq.s32.totalorder %v8375_v0, 1  ;;  %v4704_v0 = vand.u32 8, %v8043_v28 }
 0xcf2   :  { %vm4714_vm2 = vcmp.ne.s32.totalorder %v4698_v16, 0  ;;  %9778 = vst [vmem:[#allocation80_spill] sm:$0xff] %v8581_v56  ;;  %v4732_v16 = vsel %vm4716_vm4, 1, %v9772_v2  ;;  %vm4316_vm4 = vcmp.eq.s32.totalorder %v8356_v23, 1 }
 0xcf3   :  { %v4730_v1 = vsel %vm4714_vm2, 1, %v9772_v2  ;;  %vm4314_vm2 = vcmp.eq.s32.totalorder %v8338_v38, 1 }
 0xcf4   :  { %4753 = vperm.xlu0 %6725, %v4726_v34   ;;  %4756 = vperm.xlu1 %6726, %v4727_v35   ;;  %v4701_v35 = vand.u32 8, %v8167_v61  ;;  %v4731_v34 = vsel %vm4715_vm3, 1, %v9772_v2  ;;  %vm4315_vm3 = vcmp.eq.s32.totalorder %v8345_v19, 1 }
 0xcf6   :  { %vm4717_vm5 = vcmp.ne.s32.totalorder %v4701_v35, 0 }
 0xcf7   :  { %v4733_v53 = vsel %vm4717_vm5, 1, %v9772_v2  ;;  %vm4317_vm5 = vcmp.eq.s32.totalorder %v8362_v62, 1 }
 0xcf8   :  { %4759 = vperm.xlu0 %6725, %v4728_v3   ;;  %4762 = vperm.xlu1 %6726, %v4729_v49   ;;  %v8586_v3 = vpop.permute.xlu0 %4593  ;;  %v8590_v49 = vpop.permute.xlu1 %4596 }
 0xcf9   :  { %9779 = vst [vmem:[#allocation81_spill] sm:$0xff] %v8586_v3 }
 0xcfc   :  { %4765 = vperm.xlu0 %6725, %v4730_v1   ;;  %4768 = vperm.xlu1 %6726, %v4731_v34   ;;  %v8593_v56 = vpop.permute.xlu0 %4599  ;;  %v8595_v6 = vpop.permute.xlu1 %4602 }
 0xcfd   :  { %9780 = vst [vmem:[#allocation82_spill] sm:$0xff] %v8593_v56 }
 0xd00   :  { %4771 = vperm.xlu0 %6725, %v4732_v16   ;;  %4774 = vperm.xlu1 %6726, %v4733_v53   ;;  %v8597_v35 = vpop.permute.xlu0 %4605  ;;  %v8599_v1 = vpop.permute.xlu1 %4608 }
 0xd01   :  { %9781 = vst [vmem:[#allocation83_spill] sm:$0xff] %v8597_v35 }
 0xd04   :  { %4777 = vperm.xlu0 %6725, %v4734_v43   ;;  %v8601_v34 = vpop.permute.xlu0 %4611  ;;  %v8603_v3 = vpop.permute.xlu1 %4614 }
 0xd08   :  { %v8605_v31 = vpop.permute.xlu0 %4617  ;;  %v8607_v16 = vpop.permute.xlu1 %4620 }
 0xd09   :  { %9782 = vst [vmem:[#allocation84_spill] sm:$0xff] %v8605_v31  ;;  %9783 = vst [vmem:[#allocation85_spill] sm:$0xff] %v8607_v16 }
 0xd0c   :  { %v8609_v42 = vpop.permute.xlu0 %4623  ;;  %v8611_v53 = vpop.permute.xlu1 %4738 }
 0xd10   :  { %v8613_v56 = vpop.permute.xlu0 %4741 }
 0xd11   :  { %9784 = vst [vmem:[#allocation86_spill] sm:$0xff] %v8613_v56 }
 0xd22   :  { %v4178_v43 = vpop.permute.xlu1 %4177 }
 0xd23   :  { %v8617_v35 = vsel %vm4305_vm7, %v4178_v43, %v8350_v57  ;;  %vm4319_vm7 = vcmp.eq.s32.totalorder %v8384_v36, 1 }
 0xd24   :  { %4337 = vrot.lane.b32.xlu1 %v8617_v35, %s6882_s9 }
 0xd26   :  { %v4180_v31 = vpop.permute.xlu0 %4179 }
 0xd27   :  { %v8623_v16 = vsel %vm4306_vm8, %v4180_v31, %v8365_v20 }
 0xd28   :  { %4339 = vrot.lane.b32.xlu0 %v8623_v16, %s6882_s9 }
 0xd2a   :  { %v4182_v4 = vpop.permute.xlu1 %4181 }
 0xd2b   :  { %v8629_v56 = vsel %vm4307_vm0, %v4182_v4, %v8378_v22  ;;  %vm4320_vm0 = vcmp.eq.s32.totalorder %v8397_v26, 1  ;;  %v4851_v4 = vand.u32 16, %v8132_v32 }
 0xd2c   :  { %4341 = vrot.lane.b32.xlu1 %v8629_v56, %s6882_s9 }
 0xd2e   :  { %v4184_v57 = vpop.permute.xlu0 %4183 }
 0xd2f   :  { %v8635_v13 = vsel %vm4308_vm10, %v4184_v57, %v8391_v33  ;;  %vm4720_vm10 = vcmp.ne.s32.totalorder %v4704_v0, 0  ;;  %v4859_v0 = vand.u32 16, %v8161_v46 }
 0xd30   :  { %4343 = vrot.lane.b32.xlu0 %v8635_v13, %s6882_s9  ;;  %v4736_v57 = vsel %vm4720_vm10, 1, %v9772_v2 }
 0xd32   :  { %v4186_v31 = vpop.permute.xlu1 %4185 }
 0xd33   :  { %v8641_v37 = vsel %vm4309_vm11, %v4186_v31, %v8406_v9  ;;  %v4853_v31 = vand.u32 16, %v8141_v8 }
 0xd34   :  { %4345 = vrot.lane.b32.xlu1 %v8641_v37, %s6882_s9 }
 0xd36   :  { %v4188_v20 = vpop.permute.xlu0 %4187 }
 0xd37   :  { %v8647_v63 = vsel %vm4310_vm12, %v4188_v20, %v8419_v27 }
 0xd38   :  { %4347 = vrot.lane.b32.xlu0 %v8647_v63, %s6882_s9 }
 0xd3a   :  { %v4190_v33 = vpop.permute.xlu1 %4189 }
 0xd3b   :  { %v8653_v7 = vsel %vm4311_vm13, %v4190_v33, %v8433_v12  ;;  %vm4867_vm13 = vcmp.ne.s32.totalorder %v4851_v4, 0 }
 0xd3c   :  { %4349 = vrot.lane.b32.xlu1 %v8653_v7, %s6882_s9  ;;  %v4883_v33 = vsel %vm4867_vm13, 1, %v9772_v2 }
 0xd3e   :  { %v4192_v9 = vpop.permute.xlu0 %4191 }
 0xd3f   :  { %v8659_v52 = vsel %vm4312_vm14, %v4192_v9, %v8450_v15  ;;  %v4854_v9 = vand.u32 16, %v8011_v48 }
 0xd40   :  { %4351 = vrot.lane.b32.xlu0 %v8659_v52, %s6882_s9 }
 0xd42   :  { %v4194_v27 = vpop.permute.xlu1 %4193 }
 0xd43   :  { %v8665_v47 = vsel %vm4313_vm15, %v4194_v27, %v8460_v59  ;;  %vm4869_vm15 = vcmp.ne.s32.totalorder %v4853_v31, 0  ;;  %v4855_v27 = vand.u32 16, %v8149_v29 }
 0xd44   :  { %4353 = vrot.lane.b32.xlu1 %v8665_v47, %s6882_s9 }
 0xd46   :  { %v4196_v12 = vpop.permute.xlu0 %4195 }
 0xd47   :  { %v8671_v58 = vsel %vm4314_vm2, %v4196_v12, %v8469_v17  ;;  %v4703_v17 = vand.u32 8, %v8173_v50  ;;  %vm4870_vm2 = vcmp.ne.s32.totalorder %v4854_v9, 0 }
 0xd48   :  { %4355 = vrot.lane.b32.xlu0 %v8671_v58, %s6882_s9 }
 0xd49   :  { %vm4719_vm8 = vcmp.ne.s32.totalorder %v4703_v17, 0 }
 0xd4a   :  { %v4198_v22 = vpop.permute.xlu1 %4197  ;;  %v4735_v36 = vsel %vm4719_vm8, 1, %v9772_v2 }
 0xd4b   :  { %v8677_v11 = vsel %vm4315_vm3, %v4198_v22, %v8480_v51  ;;  %v4885_v22 = vsel %vm4869_vm15, 1, %v9772_v2  ;;  %vm4871_vm3 = vcmp.ne.s32.totalorder %v4855_v27, 0 }
 0xd4c   :  { %4357 = vrot.lane.b32.xlu1 %v8677_v11, %s6882_s9  ;;  %v4887_v17 = vsel %vm4871_vm3, 1, %v9772_v2 }
 0xd4e   :  { %v4200_v15 = vpop.permute.xlu0 %4199 }
 0xd4f   :  { %v8683_v38 = vsel %vm4316_vm4, %v4200_v15, %v8489_v25  ;;  %v4849_v25 = vand.u32 16, %v8127_v10  ;;  %v4856_v15 = vand.u32 16, %v8019_v40 }
 0xd50   :  { %4359 = vrot.lane.b32.xlu0 %v8683_v38, %s6882_s9 }
 0xd51   :  { %vm4865_vm11 = vcmp.ne.s32.totalorder %v4849_v25, 0  ;;  %vm4872_vm4 = vcmp.ne.s32.totalorder %v4856_v15, 0 }
 0xd52   :  { %v4202_v59 = vpop.permute.xlu1 %4201  ;;  %v4881_v26 = vsel %vm4865_vm11, 1, %v9772_v2  ;;  %v4888_v25 = vsel %vm4872_vm4, 1, %v9772_v2 }
 0xd53   :  { %v8689_v19 = vsel %vm4317_vm5, %v4202_v59, %v8499_v60  ;;  %v4857_v59 = vand.u32 16, %v8155_v18 }
 0xd54   :  { %4361 = vrot.lane.b32.xlu1 %v8689_v19, %s6882_s9 }
 0xd55   :  { %vm4873_vm5 = vcmp.ne.s32.totalorder %v4857_v59, 0 }
 0xd56   :  { %v4204_v51 = vpop.permute.xlu0 %4203 }
 0xd57   :  { %v8695_v23 = vsel %vm4318_vm6, %v4204_v51, %v8513_v41  ;;  %v4886_v51 = vsel %vm4870_vm2, 1, %v9772_v2 }
 0xd58   :  { %4363 = vrot.lane.b32.xlu0 %v8695_v23, %s6882_s9 }
 0xd5a   :  { %v4206_v62 = vpop.permute.xlu1 %4205 }
 0xd5b   :  { %v8702_v60 = vsel %vm4319_vm7, %v4206_v62, %v8522_v24  ;;  %v4850_v24 = vand.u32 16, %v8003_v21  ;;  %v4858_v62 = vand.u32 16, %v8025_v5  ;;  %vm4875_vm7 = vcmp.ne.s32.totalorder %v4859_v0, 0 }
 0xd5c   :  { %4365 = vrot.lane.b32.xlu1 %v8702_v60, %s6882_s9 }
 0xd5d   :  { %vm4866_vm12 = vcmp.ne.s32.totalorder %v4850_v24, 0  ;;  %vm4874_vm6 = vcmp.ne.s32.totalorder %v4858_v62, 0  ;;  %v4860_v24 = vand.u32 16, %v8031_v54 }
 0xd5e   :  { %v4208_v41 = vpop.permute.xlu0 %4207  ;;  %v4882_v20 = vsel %vm4866_vm12, 1, %v9772_v2  ;;  %v4890_v4 = vsel %vm4874_vm6, 1, %v9772_v2 }
 0xd5f   :  { %v8710_v43 = vsel %vm4320_vm0, %v4208_v41, %v8537_v45  ;;  %v4852_v45 = vand.u32 16, %v8007_v44  ;;  %v4889_v41 = vsel %vm4873_vm5, 1, %v9772_v2  ;;  %vm4876_vm8 = vcmp.ne.s32.totalorder %v4860_v24, 0 }
 0xd60   :  { %4367 = vrot.lane.b32.xlu0 %v8710_v43, %s6882_s9  ;;  %4780 = vperm.xlu1 %6726, %v4735_v36   ;;  %v4892_v31 = vsel %vm4876_vm8, 1, %v9772_v2 }
 0xd61   :  { %vm4868_vm14 = vcmp.ne.s32.totalorder %v4852_v45, 0 }
 0xd62   :  { %v4884_v12 = vsel %vm4868_vm14, 1, %v9772_v2 }
 0xd64   :  { %4783 = vperm.xlu0 %6725, %v4736_v57   ;;  %4898 = vperm.xlu1 %6726, %v4881_v26   ;;  %v4891_v57 = vsel %vm4875_vm7, 1, %v9772_v2 }
 0xd67   :  { %v8735_v36 = vpop.permute.xlu1 %4744 }
 0xd68   :  { %4901 = vperm.xlu0 %6725, %v4882_v20   ;;  %4904 = vperm.xlu1 %6726, %v4883_v33  }
 0xd6b   :  { %v8740_v26 = vpop.permute.xlu0 %4747  ;;  %v8742_v45 = vpop.permute.xlu1 %4750 }
 0xd6c   :  { %4907 = vperm.xlu0 %6725, %v4884_v12   ;;  %4910 = vperm.xlu1 %6726, %v4885_v22  }
 0xd6f   :  { %v8745_v20 = vpop.permute.xlu0 %4753  ;;  %v8747_v33 = vpop.permute.xlu1 %4756 }
 0xd70   :  { %4913 = vperm.xlu0 %6725, %v4886_v51   ;;  %4916 = vperm.xlu1 %6726, %v4887_v17   ;;  %v9786_v51 = vld [vmem:[#allocation43_spill] sm:$0xff] }
 0xd71   :  { %vm4465_vm0 = vcmp.eq.s32.totalorder %v9786_v51, 1 }
 0xd73   :  { %v8749_v9 = vpop.permute.xlu0 %4759  ;;  %v8751_v27 = vpop.permute.xlu1 %4762 }
 0xd74   :  { %4919 = vperm.xlu0 %6725, %v4888_v25   ;;  %4922 = vperm.xlu1 %6726, %v4889_v41   ;;  %v9788_v25 = vld [vmem:[#allocation47_spill] sm:$0xff] }
 0xd75   :  { %vm4466_vm10 = vcmp.eq.s32.totalorder %v9788_v25, 1 }
 0xd77   :  { %v8753_v12 = vpop.permute.xlu0 %4765  ;;  %v8755_v22 = vpop.permute.xlu1 %4768 }
 0xd78   :  { %4925 = vperm.xlu0 %6725, %v4890_v4   ;;  %4928 = vperm.xlu1 %6726, %v4891_v57   ;;  %v9789_v4 = vld [vmem:[#allocation50_spill] sm:$0xff] }
 0xd79   :  { %vm4467_vm11 = vcmp.eq.s32.totalorder %v9789_v4, 1 }
 0xd7b   :  { %v8757_v15 = vpop.permute.xlu0 %4771  ;;  %v8759_v59 = vpop.permute.xlu1 %4774 }
 0xd7c   :  { %4931 = vperm.xlu0 %6725, %v4892_v31   ;;  %9785 = vst [vmem:[#allocation87_spill] sm:$0xff] %v8759_v59 }
 0xd7f   :  { %v8762_v17 = vpop.permute.xlu0 %4777 }
 0xd80   :  { %9787 = vst [vmem:[#allocation43_spill] sm:$0xff] %v8762_v17  ;;  %v5013_v17 = vand.u32 32, %v8141_v8 }
 0xd96   :  { %v4338_v62 = vpop.permute.xlu1 %4337 }
 0xd97   :  { %v8765_v0 = vsel %vm4465_vm0, %v4338_v62, %v8617_v35  ;;  %v9790_v35 = vld [vmem:[#allocation55_spill] sm:$0xff] }
 0xd98   :  { %4497 = vrot.lane.b32.xlu1 %v8765_v0, %s6883_s6  ;;  %vm4468_vm12 = vcmp.eq.s32.totalorder %v9790_v35, 1 }
 0xd9a   :  { %v4340_v41 = vpop.permute.xlu0 %4339 }
 0xd9b   :  { %v8771_v24 = vsel %vm4466_vm10, %v4340_v41, %v8623_v16  ;;  %v9791_v16 = vld [vmem:[#allocation56_spill] sm:$0xff] }
 0xd9c   :  { %4499 = vrot.lane.b32.xlu0 %v8771_v24, %s6883_s6  ;;  %vm4469_vm13 = vcmp.eq.s32.totalorder %v9791_v16, 1 }
 0xd9e   :  { %v4342_v57 = vpop.permute.xlu1 %4341 }
 0xd9f   :  { %v8777_v31 = vsel %vm4467_vm11, %v4342_v57, %v8629_v56  ;;  %v9792_v56 = vld [vmem:[#allocation58_spill] sm:$0xff] }
 0xda0   :  { %4501 = vrot.lane.b32.xlu1 %v8777_v31, %s6883_s6  ;;  %vm4470_vm14 = vcmp.eq.s32.totalorder %v9792_v56, 1 }
 0xda2   :  { %v4344_v51 = vpop.permute.xlu0 %4343 }
 0xda3   :  { %v8783_v62 = vsel %vm4468_vm12, %v4344_v51, %v8635_v13  ;;  %v9793_v13 = vld [vmem:[#allocation60_spill] sm:$0xff] }
 0xda4   :  { %4503 = vrot.lane.b32.xlu0 %v8783_v62, %s6883_s6  ;;  %vm4471_vm15 = vcmp.eq.s32.totalorder %v9793_v13, 1 }
 0xda6   :  { %v4346_v25 = vpop.permute.xlu1 %4345 }
 0xda7   :  { %v8789_v41 = vsel %vm4469_vm13, %v4346_v25, %v8641_v37  ;;  %v9794_v37 = vld [vmem:[#allocation62_spill] sm:$0xff] }
 0xda8   :  { %4505 = vrot.lane.b32.xlu1 %v8789_v41, %s6883_s6  ;;  %vm4472_vm2 = vcmp.eq.s32.totalorder %v9794_v37, 1 }
 0xdaa   :  { %v4348_v4 = vpop.permute.xlu0 %4347 }
 0xdab   :  { %v8795_v57 = vsel %vm4470_vm14, %v4348_v4, %v8647_v63  ;;  %v9795_v63 = vld [vmem:[#allocation63_spill] sm:$0xff] }
 0xdac   :  { %4507 = vrot.lane.b32.xlu0 %v8795_v57, %s6883_s6  ;;  %vm4473_vm3 = vcmp.eq.s32.totalorder %v9795_v63, 1 }
 0xdae   :  { %v4350_v35 = vpop.permute.xlu1 %4349 }
 0xdaf   :  { %v8801_v51 = vsel %vm4471_vm15, %v4350_v35, %v8653_v7  ;;  %v9796_v7 = vld [vmem:[#allocation65_spill] sm:$0xff] }
 0xdb0   :  { %4509 = vrot.lane.b32.xlu1 %v8801_v51, %s6883_s6  ;;  %vm4474_vm4 = vcmp.eq.s32.totalorder %v9796_v7, 1 }
 0xdb2   :  { %v4352_v16 = vpop.permute.xlu0 %4351 }
 0xdb3   :  { %v8807_v25 = vsel %vm4472_vm2, %v4352_v16, %v8659_v52  ;;  %v9797_v52 = vld [vmem:[#allocation67_spill] sm:$0xff] }
 0xdb4   :  { %4511 = vrot.lane.b32.xlu0 %v8807_v25, %s6883_s6  ;;  %vm4475_vm5 = vcmp.eq.s32.totalorder %v9797_v52, 1 }
 0xdb6   :  { %v4354_v56 = vpop.permute.xlu1 %4353 }
 0xdb7   :  { %v8813_v4 = vsel %vm4473_vm3, %v4354_v56, %v8665_v47  ;;  %v9798_v47 = vld [vmem:[#allocation69_spill] sm:$0xff] }
 0xdb8   :  { %4513 = vrot.lane.b32.xlu1 %v8813_v4, %s6883_s6  ;;  %vm4476_vm6 = vcmp.eq.s32.totalorder %v9798_v47, 1  ;;  %v9801_v47 = vld [vmem:[#allocation73_spill] sm:$0xff] }
 0xdb9   :  { %vm4479_vm0 = vcmp.eq.s32.totalorder %v9801_v47, 1 }
 0xdba   :  { %v4356_v13 = vpop.permute.xlu0 %4355 }
 0xdbb   :  { %v8819_v35 = vsel %vm4474_vm4, %v4356_v13, %v8671_v58  ;;  %v9799_v58 = vld [vmem:[#allocation70_spill] sm:$0xff] }
 0xdbc   :  { %4515 = vrot.lane.b32.xlu0 %v8819_v35, %s6883_s6  ;;  %vm4477_vm7 = vcmp.eq.s32.totalorder %v9799_v58, 1  ;;  %v4862_v58 = vand.u32 16, %v8037_v14 }
 0xdbe   :  { %v4358_v37 = vpop.permute.xlu1 %4357  ;;  %vm4878_vm12 = vcmp.ne.s32.totalorder %v4862_v58, 0 }
 0xdbf   :  { %v8825_v16 = vsel %vm4475_vm5, %v4358_v37, %v8677_v11  ;;  %v9800_v11 = vld [vmem:[#allocation72_spill] sm:$0xff]  ;;  %vm5029_vm5 = vcmp.ne.s32.totalorder %v5013_v17, 0 }
 0xdc0   :  { %4517 = vrot.lane.b32.xlu1 %v8825_v16, %s6883_s6  ;;  %vm4478_vm8 = vcmp.eq.s32.totalorder %v9800_v11, 1 }
 0xdc2   :  { %v4360_v63 = vpop.permute.xlu0 %4359 }
 0xdc3   :  { %v8831_v56 = vsel %vm4476_vm6, %v4360_v63, %v8683_v38  ;;  %v4861_v38 = vand.u32 16, %v8167_v61 }
 0xdc4   :  { %4519 = vrot.lane.b32.xlu0 %v8831_v56, %s6883_s6 }
 0xdc5   :  { %vm4877_vm10 = vcmp.ne.s32.totalorder %v4861_v38, 0  ;;  %v5009_v38 = vand.u32 32, %v8127_v10 }
 0xdc6   :  { %v4362_v7 = vpop.permute.xlu1 %4361  ;;  %v4893_v47 = vsel %vm4877_vm10, 1, %v9772_v2 }
 0xdc7   :  { %v8837_v13 = vsel %vm4477_vm7, %v4362_v7, %v8689_v19  ;;  %v9802_v7 = vld [vmem:[#allocation75_spill] sm:$0xff]  ;;  %vm5025_vm15 = vcmp.ne.s32.totalorder %v5009_v38, 0  ;;  %v5014_v38 = vand.u32 32, %v8011_v48 }
 0xdc8   :  { %4521 = vrot.lane.b32.xlu1 %v8837_v13, %s6883_s6  ;;  %vm4480_vm11 = vcmp.eq.s32.totalorder %v9802_v7, 1  ;;  %v5041_v58 = vsel %vm5025_vm15, 1, %v9772_v2 }
 0xdc9   :  { %vm5030_vm6 = vcmp.ne.s32.totalorder %v5014_v38, 0 }
 0xdca   :  { %v4364_v52 = vpop.permute.xlu0 %4363  ;;  %v5046_v17 = vsel %vm5030_vm6, 1, %v9772_v2 }
 0xdcb   :  { %v8843_v37 = vsel %vm4478_vm8, %v4364_v52, %v8695_v23  ;;  %v4863_v23 = vand.u32 16, %v8173_v50 }
 0xdcc   :  { %4523 = vrot.lane.b32.xlu0 %v8843_v37, %s6883_s6 }
 0xdcd   :  { %vm4879_vm13 = vcmp.ne.s32.totalorder %v4863_v23, 0  ;;  %v5012_v23 = vand.u32 32, %v8007_v44 }
 0xdce   :  { %v4366_v63 = vpop.permute.xlu1 %4365  ;;  %v4895_v7 = vsel %vm4879_vm13, 1, %v9772_v2  ;;  %vm4627_vm13 = vcmp.eq.s32.totalorder %v8571_v39, 1 }
 0xdcf   :  { %v8850_v19 = vsel %vm4479_vm0, %v4366_v63, %v8702_v60  ;;  %v4864_v60 = vand.u32 16, %v8043_v28  ;;  %v4894_v63 = vsel %vm4878_vm12, 1, %v9772_v2  ;;  %vm5028_vm4 = vcmp.ne.s32.totalorder %v5012_v23, 0 }
 0xdd0   :  { %4525 = vrot.lane.b32.xlu1 %v8850_v19, %s6883_s6  ;;  %vm4626_vm12 = vcmp.eq.s32.totalorder %v8567_v30, 1 }
 0xdd1   :  { %vm4880_vm14 = vcmp.ne.s32.totalorder %v4864_v60, 0 }
 0xdd2   :  { %v4368_v11 = vpop.permute.xlu0 %4367 }
 0xdd3   :  { %v8858_v52 = vsel %vm4480_vm11, %v4368_v11, %v8710_v43  ;;  %v5010_v43 = vand.u32 32, %v8003_v21  ;;  %v5011_v11 = vand.u32 32, %v8132_v32  ;;  %vm4625_vm11 = vcmp.eq.s32.totalorder %v8558_v55, 1 }
 0xdd4   :  { %4527 = vrot.lane.b32.xlu0 %v8858_v52, %s6883_s6  ;;  %4934 = vperm.xlu1 %6726, %v4893_v47   ;;  %v4896_v47 = vsel %vm4880_vm14, 1, %v9772_v2 }
 0xdd5   :  { %vm5026_vm2 = vcmp.ne.s32.totalorder %v5010_v43, 0  ;;  %vm5027_vm3 = vcmp.ne.s32.totalorder %v5011_v11, 0  ;;  %v5044_v43 = vsel %vm5028_vm4, 1, %v9772_v2  ;;  %v5045_v11 = vsel %vm5029_vm5, 1, %v9772_v2 }
 0xdd6   :  { %v5043_v60 = vsel %vm5027_vm3, 1, %v9772_v2  ;;  %vm4631_vm3 = vcmp.eq.s32.totalorder %v8590_v49, 1  ;;  %vm4633_vm5 = vcmp.eq.s32.totalorder %v8595_v6, 1 }
 0xdd8   :  { %4937 = vperm.xlu0 %6725, %v4894_v63   ;;  %4940 = vperm.xlu1 %6726, %v4895_v7   ;;  %v5042_v63 = vsel %vm5026_vm2, 1, %v9772_v2  ;;  %v5015_v7 = vand.u32 32, %v8149_v29 }
 0xdda   :  { %vm5031_vm7 = vcmp.ne.s32.totalorder %v5015_v7, 0 }
 0xddc   :  { %4943 = vperm.xlu0 %6725, %v4896_v47   ;;  %5058 = vperm.xlu1 %6726, %v5041_v58   ;;  %v8877_v47 = vpop.permute.xlu1 %4780  ;;  %v5016_v58 = vand.u32 32, %v8019_v40 }
 0xddd   :  { %9803 = vst [vmem:[#allocation47_spill] sm:$0xff] %v8877_v47 }
 0xdde   :  { %vm5032_vm8 = vcmp.ne.s32.totalorder %v5016_v58, 0 }
 0xddf   :  { %v8883_v23 = vpop.permute.xlu0 %4783  ;;  %v5048_v38 = vsel %vm5032_vm8, 1, %v9772_v2  ;;  %vm4636_vm8 = vcmp.eq.s32.totalorder %v8601_v34, 1 }
 0xde0   :  { %5061 = vperm.xlu0 %6725, %v5042_v63   ;;  %5064 = vperm.xlu1 %6726, %v5043_v60   ;;  %v5017_v63 = vand.u32 32, %v8155_v18  ;;  %9804 = vst [vmem:[#allocation50_spill] sm:$0xff] %v8883_v23  ;;  %v5047_v60 = vsel %vm5031_vm7, 1, %v9772_v2  ;;  %v8887_v59 = vpop.permute.xlu1 %4898  ;;  %vm4635_vm7 = vcmp.eq.s32.totalorder %v8599_v1, 1 }
 0xde1   :  { %9805 = vst [vmem:[#allocation55_spill] sm:$0xff] %v8887_v59 }
 0xde2   :  { %vm5033_vm0 = vcmp.ne.s32.totalorder %v5017_v63, 0 }
 0xde3   :  { %v5049_v7 = vsel %vm5033_vm0, 1, %v9772_v2  ;;  %vm4637_vm0 = vcmp.eq.s32.totalorder %v8603_v3, 1 }
 0xde4   :  { %5067 = vperm.xlu0 %6725, %v5044_v43   ;;  %5070 = vperm.xlu1 %6726, %v5045_v11   ;;  %v5018_v43 = vand.u32 32, %v8025_v5  ;;  %v8892_v11 = vpop.permute.xlu0 %4901  ;;  %v8894_v23 = vpop.permute.xlu1 %4904 }
 0xde6   :  { %vm5034_vm10 = vcmp.ne.s32.totalorder %v5018_v43, 0 }
 0xde7   :  { %v5050_v47 = vsel %vm5034_vm10, 1, %v9772_v2 }
 0xde8   :  { %5073 = vperm.xlu0 %6725, %v5046_v17   ;;  %5076 = vperm.xlu1 %6726, %v5047_v60   ;;  %v8897_v17 = vpop.permute.xlu0 %4907  ;;  %v8899_v58 = vpop.permute.xlu1 %4910 }
 0xde9   :  { %9806 = vst [vmem:[#allocation56_spill] sm:$0xff] %v8897_v17 }
 0xdec   :  { %5079 = vperm.xlu0 %6725, %v5048_v38   ;;  %5082 = vperm.xlu1 %6726, %v5049_v7   ;;  %v8901_v63 = vpop.permute.xlu0 %4913  ;;  %v8903_v60 = vpop.permute.xlu1 %4916 }
 0xdf0   :  { %5085 = vperm.xlu0 %6725, %v5050_v47   ;;  %v8905_v59 = vpop.permute.xlu0 %4919  ;;  %v8907_v5 = vpop.permute.xlu1 %4922 }
 0xdf1   :  { %9807 = vst [vmem:[#allocation58_spill] sm:$0xff] %v8905_v59  ;;  %9808 = vst [vmem:[#allocation60_spill] sm:$0xff] %v8907_v5 }
 0xdf4   :  { %v8909_v38 = vpop.permute.xlu0 %4925  ;;  %v8911_v43 = vpop.permute.xlu1 %4928 }
 0xdf8   :  { %v8914_v7 = vpop.permute.xlu0 %4931 }
 0xdf9   :  { %9809 = vst [vmem:[#allocation62_spill] sm:$0xff] %v8914_v7 }
 0xe0a   :  { %v4498_v47 = vpop.permute.xlu1 %4497 }
 0xe0b   :  { %v8917_v17 = vsel %vm4625_vm11, %v4498_v47, %v8765_v0  ;;  %v9810_v0 = vld [vmem:[#allocation79_spill] sm:$0xff] }
 0xe0c   :  { %4657 = vrot.lane.b32.xlu1 %v8917_v17, %s6875_s17  ;;  %vm4628_vm14 = vcmp.eq.s32.totalorder %v9810_v0, 1 }
 0xe0e   :  { %v4500_v59 = vpop.permute.xlu0 %4499 }
 0xe0f   :  { %v8923_v5 = vsel %vm4626_vm12, %v4500_v59, %v8771_v24  ;;  %v9811_v59 = vld [vmem:[#allocation80_spill] sm:$0xff] }
 0xe10   :  { %4659 = vrot.lane.b32.xlu0 %v8923_v5, %s6875_s17  ;;  %vm4629_vm15 = vcmp.eq.s32.totalorder %v9811_v59, 1 }
 0xe12   :  { %v4502_v55 = vpop.permute.xlu1 %4501 }
 0xe13   :  { %v8929_v7 = vsel %vm4627_vm13, %v4502_v55, %v8777_v31  ;;  %v9812_v31 = vld [vmem:[#allocation81_spill] sm:$0xff]  ;;  %vm4640_vm13 = vcmp.eq.s32.totalorder %v8609_v42, 1 }
 0xe14   :  { %4661 = vrot.lane.b32.xlu1 %v8929_v7, %s6875_s17  ;;  %vm4630_vm2 = vcmp.eq.s32.totalorder %v9812_v31, 1 }
 0xe16   :  { %v4504_v47 = vpop.permute.xlu0 %4503 }
 0xe17   :  { %v8935_v30 = vsel %vm4628_vm14, %v4504_v47, %v8783_v62 }
 0xe18   :  { %4663 = vrot.lane.b32.xlu0 %v8935_v30, %s6875_s17 }
 0xe1a   :  { %v4506_v24 = vpop.permute.xlu1 %4505 }
 0xe1b   :  { %v8941_v39 = vsel %vm4629_vm15, %v4506_v24, %v8789_v41  ;;  %v9813_v41 = vld [vmem:[#allocation82_spill] sm:$0xff] }
 0xe1c   :  { %4665 = vrot.lane.b32.xlu1 %v8941_v39, %s6875_s17  ;;  %vm4632_vm4 = vcmp.eq.s32.totalorder %v9813_v41, 1 }
 0xe1e   :  { %v4508_v55 = vpop.permute.xlu0 %4507 }
 0xe1f   :  { %v8947_v0 = vsel %vm4630_vm2, %v4508_v55, %v8795_v57 }
 0xe20   :  { %4667 = vrot.lane.b32.xlu0 %v8947_v0, %s6875_s17 }
 0xe22   :  { %v4510_v62 = vpop.permute.xlu1 %4509 }
 0xe23   :  { %v8953_v47 = vsel %vm4631_vm3, %v4510_v62, %v8801_v51  ;;  %v9814_v51 = vld [vmem:[#allocation83_spill] sm:$0xff] }
 0xe24   :  { %4669 = vrot.lane.b32.xlu1 %v8953_v47, %s6875_s17  ;;  %vm4634_vm6 = vcmp.eq.s32.totalorder %v9814_v51, 1 }
 0xe26   :  { %v4512_v59 = vpop.permute.xlu0 %4511 }
 0xe27   :  { %v8959_v24 = vsel %vm4632_vm4, %v4512_v59, %v8807_v25  ;;  %v9816_v59 = vld [vmem:[#allocation85_spill] sm:$0xff] }
 0xe28   :  { %4671 = vrot.lane.b32.xlu0 %v8959_v24, %s6875_s17  ;;  %vm4639_vm11 = vcmp.eq.s32.totalorder %v9816_v59, 1  ;;  %v5170_v59 = vand.u32 64, %v8003_v21 }
 0xe2a   :  { %v4514_v57 = vpop.permute.xlu1 %4513 }
 0xe2b   :  { %v8965_v49 = vsel %vm4633_vm5, %v4514_v57, %v8813_v4  ;;  %v5020_v57 = vand.u32 32, %v8031_v54 }
 0xe2c   :  { %4673 = vrot.lane.b32.xlu1 %v8965_v49, %s6875_s17 }
 0xe2d   :  { %vm5036_vm14 = vcmp.ne.s32.totalorder %v5020_v57, 0 }
 0xe2e   :  { %v4516_v31 = vpop.permute.xlu0 %4515 }
 0xe2f   :  { %v8971_v55 = vsel %vm4634_vm6, %v4516_v31, %v8819_v35  ;;  %vm5186_vm6 = vcmp.ne.s32.totalorder %v5170_v59, 0 }
 0xe30   :  { %4675 = vrot.lane.b32.xlu0 %v8971_v55, %s6875_s17 }
 0xe32   :  { %v4518_v25 = vpop.permute.xlu1 %4517 }
 0xe33   :  { %v8977_v6 = vsel %vm4635_vm7, %v4518_v25, %v8825_v16  ;;  %v9815_v16 = vld [vmem:[#allocation84_spill] sm:$0xff] }
 0xe34   :  { %4677 = vrot.lane.b32.xlu1 %v8977_v6, %s6875_s17  ;;  %vm4638_vm10 = vcmp.eq.s32.totalorder %v9815_v16, 1  ;;  %v5169_v16 = vand.u32 64, %v8127_v10  ;;  %v5172_v10 = vand.u32 64, %v8007_v44 }
 0xe36   :  { %v4520_v4 = vpop.permute.xlu0 %4519  ;;  %vm5185_vm5 = vcmp.ne.s32.totalorder %v5169_v16, 0 }
 0xe37   :  { %v8983_v62 = vsel %vm4636_vm8, %v4520_v4, %v8831_v56  ;;  %v5019_v56 = vand.u32 32, %v8161_v46  ;;  %v5023_v4 = vand.u32 32, %v8173_v50  ;;  %vm5188_vm8 = vcmp.ne.s32.totalorder %v5172_v10, 0 }
 0xe38   :  { %4679 = vrot.lane.b32.xlu0 %v8983_v62, %s6875_s17  ;;  %v5204_v44 = vsel %vm5188_vm8, 1, %v9772_v2  ;;  %vm4794_vm8 = vcmp.eq.s32.totalorder %v8753_v12, 1 }
 0xe39   :  { %vm5035_vm12 = vcmp.ne.s32.totalorder %v5019_v56, 0  ;;  %vm5039_vm3 = vcmp.ne.s32.totalorder %v5023_v4, 0  ;;  %v5175_v4 = vand.u32 64, %v8149_v29 }
 0xe3a   :  { %v4522_v35 = vpop.permute.xlu1 %4521  ;;  %v5051_v25 = vsel %vm5035_vm12, 1, %v9772_v2  ;;  %v5055_v56 = vsel %vm5039_vm3, 1, %v9772_v2  ;;  %vm4789_vm3 = vcmp.eq.s32.totalorder %v8742_v45, 1 }
 0xe3b   :  { %v8989_v1 = vsel %vm4637_vm0, %v4522_v35, %v8837_v13  ;;  %v5052_v35 = vsel %vm5036_vm14, 1, %v9772_v2 }
 0xe3c   :  { %4681 = vrot.lane.b32.xlu1 %v8989_v1, %s6875_s17 }
 0xe3e   :  { %v4524_v41 = vpop.permute.xlu0 %4523 }
 0xe3f   :  { %v8995_v34 = vsel %vm4638_vm10, %v4524_v41, %v8843_v37  ;;  %v5021_v37 = vand.u32 32, %v8167_v61 }
 0xe40   :  { %4683 = vrot.lane.b32.xlu0 %v8995_v34, %s6875_s17 }
 0xe41   :  { %vm5037_vm15 = vcmp.ne.s32.totalorder %v5021_v37, 0  ;;  %v5201_v37 = vsel %vm5185_vm5, 1, %v9772_v2  ;;  %vm4791_vm5 = vcmp.eq.s32.totalorder %v8747_v33, 1 }
 0xe42   :  { %v4526_v3 = vpop.permute.xlu1 %4525  ;;  %v5053_v42 = vsel %vm5037_vm15, 1, %v9772_v2  ;;  %vm4787_vm15 = vcmp.eq.s32.totalorder %v8735_v36, 1 }
 0xe43   :  { %v9002_v13 = vsel %vm4639_vm11, %v4526_v3, %v8850_v19  ;;  %v5022_v19 = vand.u32 32, %v8037_v14  ;;  %v5171_v3 = vand.u32 64, %v8132_v32  ;;  %v5174_v32 = vand.u32 64, %v8011_v48 }
 0xe44   :  { %4685 = vrot.lane.b32.xlu1 %v9002_v13, %s6875_s17  ;;  %vm5191_vm11 = vcmp.ne.s32.totalorder %v5175_v4, 0 }
 0xe45   :  { %vm5038_vm2 = vcmp.ne.s32.totalorder %v5022_v19, 0  ;;  %vm5187_vm7 = vcmp.ne.s32.totalorder %v5171_v3, 0  ;;  %v5202_v19 = vsel %vm5186_vm6, 1, %v9772_v2  ;;  %vm5190_vm10 = vcmp.ne.s32.totalorder %v5174_v32, 0 }
 0xe46   :  { %v4528_v51 = vpop.permute.xlu0 %4527  ;;  %v5054_v41 = vsel %vm5038_vm2, 1, %v9772_v2  ;;  %v5203_v21 = vsel %vm5187_vm7, 1, %v9772_v2  ;;  %v5206_v16 = vsel %vm5190_vm10, 1, %v9772_v2  ;;  %v5207_v48 = vsel %vm5191_vm11, 1, %v9772_v2 }
 0xe47   :  { %v9010_v31 = vsel %vm4640_vm13, %v4528_v51, %v8858_v52  ;;  %v5024_v52 = vand.u32 32, %v8043_v28  ;;  %v5173_v51 = vand.u32 64, %v8141_v8  ;;  %vm4785_vm13 = vcmp.eq.s32.totalorder %v8611_v53, 1 }
 0xe48   :  { %4687 = vrot.lane.b32.xlu0 %v9010_v31, %s6875_s17  ;;  %5088 = vperm.xlu1 %6726, %v5051_v25   ;;  %vm4788_vm2 = vcmp.eq.s32.totalorder %v8740_v26, 1  ;;  %vm4792_vm6 = vcmp.eq.s32.totalorder %v8749_v9, 1  ;;  %vm4793_vm7 = vcmp.eq.s32.totalorder %v8751_v27, 1  ;;  %vm4796_vm10 = vcmp.eq.s32.totalorder %v8757_v15, 1 }
 0xe49   :  { %vm5040_vm4 = vcmp.ne.s32.totalorder %v5024_v52, 0  ;;  %vm5189_vm0 = vcmp.ne.s32.totalorder %v5173_v51, 0  ;;  %v5176_v52 = vand.u32 64, %v8019_v40 }
 0xe4a   :  { %v5056_v57 = vsel %vm5040_vm4, 1, %v9772_v2  ;;  %v5205_v8 = vsel %vm5189_vm0, 1, %v9772_v2  ;;  %vm4790_vm4 = vcmp.eq.s32.totalorder %v8745_v20, 1  ;;  %vm4795_vm0 = vcmp.eq.s32.totalorder %v8755_v22, 1 }
 0xe4b   :  { %vm5192_vm12 = vcmp.ne.s32.totalorder %v5176_v52, 0 }
 0xe4c   :  { %5091 = vperm.xlu0 %6725, %v5052_v35   ;;  %5094 = vperm.xlu1 %6726, %v5053_v42  }
 0xe4f   :  { %v9029_v25 = vpop.permute.xlu1 %4934 }
 0xe50   :  { %5097 = vperm.xlu0 %6725, %v5054_v41   ;;  %5100 = vperm.xlu1 %6726, %v5055_v56   ;;  %v5208_v56 = vsel %vm5192_vm12, 1, %v9772_v2 }
 0xe53   :  { %v9035_v35 = vpop.permute.xlu0 %4937  ;;  %v9039_v42 = vpop.permute.xlu1 %4940 }
 0xe54   :  { %5103 = vperm.xlu0 %6725, %v5056_v57   ;;  %5218 = vperm.xlu1 %6726, %v5201_v37  }
 0xe57   :  { %v9044_v41 = vpop.permute.xlu0 %4943  ;;  %v9046_v29 = vpop.permute.xlu1 %5058 }
 0xe58   :  { %5221 = vperm.xlu0 %6725, %v5202_v19   ;;  %5224 = vperm.xlu1 %6726, %v5203_v21  }
 0xe5b   :  { %v9049_v59 = vpop.permute.xlu0 %5061  ;;  %v9051_v3 = vpop.permute.xlu1 %5064 }
 0xe5c   :  { %5227 = vperm.xlu0 %6725, %v5204_v44   ;;  %5230 = vperm.xlu1 %6726, %v5205_v8   ;;  %v9817_v44 = vld [vmem:[#allocation86_spill] sm:$0xff] }
 0xe5d   :  { %vm4786_vm14 = vcmp.eq.s32.totalorder %v9817_v44, 1  ;;  %v9820_v44 = vld [vmem:[#allocation47_spill] sm:$0xff] }
 0xe5f   :  { %v9053_v57 = vpop.permute.xlu0 %5067  ;;  %v9055_v40 = vpop.permute.xlu1 %5070 }
 0xe60   :  { %5233 = vperm.xlu0 %6725, %v5206_v16   ;;  %5236 = vperm.xlu1 %6726, %v5207_v48  }
 0xe63   :  { %v9057_v37 = vpop.permute.xlu0 %5073  ;;  %v9059_v10 = vpop.permute.xlu1 %5076 }
 0xe64   :  { %5239 = vperm.xlu0 %6725, %v5208_v56  }
 0xe67   :  { %v9061_v51 = vpop.permute.xlu0 %5079  ;;  %v9063_v19 = vpop.permute.xlu1 %5082 }
 0xe6b   :  { %v9066_v21 = vpop.permute.xlu0 %5085 }
 0xe7e   :  { %v4658_v32 = vpop.permute.xlu1 %4657 }
 0xe7f   :  { %v9069_v4 = vsel %vm4785_vm13, %v4658_v32, %v8917_v17  ;;  %vm4799_vm13 = vcmp.eq.s32.totalorder %v9820_v44, 1 }
 0xe80   :  { %4817 = vrot.lane.b32.xlu1 %v9069_v4, %s6884_s27 }
 0xe82   :  { %v4660_v8 = vpop.permute.xlu0 %4659 }
 0xe83   :  { %v9075_v52 = vsel %vm4786_vm14, %v4660_v8, %v8923_v5 }
 0xe84   :  { %4819 = vrot.lane.b32.xlu0 %v9075_v52, %s6884_s27 }
 0xe86   :  { %v4662_v53 = vpop.permute.xlu1 %4661 }
 0xe87   :  { %v9081_v16 = vsel %vm4787_vm15, %v4662_v53, %v8929_v7  ;;  %v9821_v53 = vld [vmem:[#allocation20_spill] sm:$0xff] }
 0xe88   :  { %4821 = vrot.lane.b32.xlu1 %v9081_v16, %s6884_s27 }
 0xe8a   :  { %v4664_v17 = vpop.permute.xlu0 %4663 }
 0xe8b   :  { %v9087_v48 = vsel %vm4788_vm2, %v4664_v17, %v8935_v30  ;;  %v5178_v17 = vand.u32 64, %v9821_v53 }
 0xe8c   :  { %4823 = vrot.lane.b32.xlu0 %v9087_v48, %s6884_s27 }
 0xe8d   :  { %vm5194_vm2 = vcmp.ne.s32.totalorder %v5178_v17, 0 }
 0xe8e   :  { %v4666_v5 = vpop.permute.xlu1 %4665 }
 0xe8f   :  { %v9093_v36 = vsel %vm4789_vm3, %v4666_v5, %v8941_v39  ;;  %v9822_v5 = vld [vmem:[#allocation50_spill] sm:$0xff] }
 0xe90   :  { %4825 = vrot.lane.b32.xlu1 %v9093_v36, %s6884_s27  ;;  %vm4800_vm15 = vcmp.eq.s32.totalorder %v9822_v5, 1 }
 0xe92   :  { %v4668_v7 = vpop.permute.xlu0 %4667 }
 0xe93   :  { %v9099_v26 = vsel %vm4790_vm4, %v4668_v7, %v8947_v0 }
 0xe94   :  { %4827 = vrot.lane.b32.xlu0 %v9099_v26, %s6884_s27 }
 0xe96   :  { %v4670_v30 = vpop.permute.xlu1 %4669 }
 0xe97   :  { %v9105_v45 = vsel %vm4791_vm5, %v4670_v30, %v8953_v47 }
 0xe98   :  { %4829 = vrot.lane.b32.xlu1 %v9105_v45, %s6884_s27 }
 0xe9a   :  { %v4672_v39 = vpop.permute.xlu0 %4671 }
 0xe9b   :  { %v9111_v20 = vsel %vm4792_vm6, %v4672_v39, %v8959_v24  ;;  %v5181_v39 = vand.u32 64, %v8167_v61 }
 0xe9c   :  { %4831 = vrot.lane.b32.xlu0 %v9111_v20, %s6884_s27 }
 0xe9d   :  { %vm5197_vm5 = vcmp.ne.s32.totalorder %v5181_v39, 0 }
 0xe9e   :  { %v4674_v0 = vpop.permute.xlu1 %4673 }
 0xe9f   :  { %v9117_v33 = vsel %vm4793_vm7, %v4674_v0, %v8965_v49 }
 0xea0   :  { %4833 = vrot.lane.b32.xlu1 %v9117_v33, %s6884_s27 }
 0xea2   :  { %v4676_v47 = vpop.permute.xlu0 %4675 }
 0xea3   :  { %v9123_v9 = vsel %vm4794_vm8, %v4676_v47, %v8971_v55  ;;  %v9818_v55 = vld [vmem:[#allocation87_spill] sm:$0xff]  ;;  %v5183_v47 = vand.u32 64, %v8173_v50 }
 0xea4   :  { %4835 = vrot.lane.b32.xlu0 %v9123_v9, %s6884_s27  ;;  %vm4797_vm11 = vcmp.eq.s32.totalorder %v9818_v55, 1 }
 0xea5   :  { %vm5199_vm7 = vcmp.ne.s32.totalorder %v5183_v47, 0 }
 0xea6   :  { %v4678_v24 = vpop.permute.xlu1 %4677  ;;  %v5215_v55 = vsel %vm5199_vm7, 1, %v9772_v2  ;;  %vm4957_vm7 = vcmp.eq.s32.totalorder %v9029_v25, 1 }
 0xea7   :  { %v9129_v27 = vsel %vm4795_vm0, %v4678_v24, %v8977_v6  ;;  %v9819_v6 = vld [vmem:[#allocation43_spill] sm:$0xff] }
 0xea8   :  { %4837 = vrot.lane.b32.xlu1 %v9129_v27, %s6884_s27  ;;  %vm4798_vm12 = vcmp.eq.s32.totalorder %v9819_v6, 1 }
 0xeaa   :  { %v4680_v49 = vpop.permute.xlu0 %4679 }
 0xeab   :  { %v9135_v12 = vsel %vm4796_vm10, %v4680_v49, %v8983_v62  ;;  %v5177_v62 = vand.u32 64, %v8155_v18  ;;  %v5213_v49 = vsel %vm5197_vm5, 1, %v9772_v2  ;;  %vm4946_vm10 = vcmp.eq.s32.totalorder %v8892_v11, 1 }
 0xeac   :  { %4839 = vrot.lane.b32.xlu0 %v9135_v12, %s6884_s27  ;;  %vm4955_vm5 = vcmp.eq.s32.totalorder %v8911_v43, 1 }
 0xead   :  { %vm5193_vm14 = vcmp.ne.s32.totalorder %v5177_v62, 0  ;;  %v6793_v62 = vld [vmem:[%s9678_s1 + $0x10] sm:$0xff] }
 0xeae   :  { %v4682_v56 = vpop.permute.xlu1 %4681  ;;  %v5209_v18 = vsel %vm5193_vm14, 1, %v9772_v2  ;;  %v5864_v44 = vadd.s32 4294967168, %v6793_v62  ;;  %vm4950_vm14 = vcmp.eq.s32.totalorder %v8901_v63, 1 }
 0xeaf   :  { %v9141_v22 = vsel %vm4797_vm11, %v4682_v56, %v8989_v1  ;;  %vm4947_vm11 = vcmp.eq.s32.totalorder %v8894_v23, 1 }
 0xeb0   :  { %4841 = vrot.lane.b32.xlu1 %v9141_v22, %s6884_s27 }
 0xeb2   :  { %v4684_v32 = vpop.permute.xlu0 %4683 }
 0xeb3   :  { %v9147_v15 = vsel %vm4798_vm12, %v4684_v32, %v8995_v34  ;;  %v5179_v34 = vand.u32 64, %v8161_v46  ;;  %v5210_v46 = vsel %vm5194_vm2, 1, %v9772_v2 }
 0xeb4   :  { %4843 = vrot.lane.b32.xlu0 %v9147_v15, %s6884_s27 }
 0xeb5   :  { %vm5195_vm3 = vcmp.ne.s32.totalorder %v5179_v34, 0 }
 0xeb6   :  { %v4686_v8 = vpop.permute.xlu1 %4685  ;;  %v5211_v0 = vsel %vm5195_vm3, 1, %v9772_v2 }
 0xeb7   :  { %v9154_v1 = vsel %vm4799_vm13, %v4686_v8, %v9002_v13  ;;  %v5180_v13 = vand.u32 64, %v8031_v54  ;;  %v5184_v54 = vand.u32 64, %v8043_v28  ;;  %v6792_v28 = vld [vmem:[%s9678_s1 + $0x8] sm:$0xff]  ;;  %vm4949_vm13 = vcmp.eq.s32.totalorder %v8899_v58, 1 }
 0xeb8   :  { %4845 = vrot.lane.b32.xlu1 %v9154_v1, %s6884_s27  ;;  %v5863_v32 = vadd.s32 4294967168, %v6792_v28 }
 0xeb9   :  { %vm5196_vm4 = vcmp.ne.s32.totalorder %v5180_v13, 0  ;;  %vm5200_vm8 = vcmp.ne.s32.totalorder %v5184_v54, 0 }
 0xeba   :  { %v4688_v7 = vpop.permute.xlu0 %4687  ;;  %v5212_v24 = vsel %vm5196_vm4, 1, %v9772_v2  ;;  %v5216_v6 = vsel %vm5200_vm8, 1, %v9772_v2  ;;  %vm4954_vm4 = vcmp.eq.s32.totalorder %v8909_v38, 1  ;;  %vm4958_vm8 = vcmp.eq.s32.totalorder %v9035_v35, 1 }
 0xebb   :  { %v9162_v30 = vsel %vm4800_vm15, %v4688_v7, %v9010_v31  ;;  %v5182_v31 = vand.u32 64, %v8037_v14  ;;  %v6791_v14 = vld [vmem:[%s9678_s1] sm:$0xff]  ;;  %vm4951_vm15 = vcmp.eq.s32.totalorder %v8903_v60, 1 }
 0xebc   :  { %4847 = vrot.lane.b32.xlu0 %v9162_v30, %s6884_s27  ;;  %5242 = vperm.xlu1 %6726, %v5209_v18   ;;  %v5862_v56 = vadd.s32 4294967168, %v6791_v14 }
 0xebd   :  { %vm5198_vm6 = vcmp.ne.s32.totalorder %v5182_v31, 0 }
 0xebe   :  { %v5214_v61 = vsel %vm5198_vm6, 1, %v9772_v2  ;;  %v6794_v2 = vld [vmem:[%s9678_s1 + $0x18] sm:$0xff] }
 0xebf   :  { %v5865_v17 = vadd.s32 4294967168, %v6794_v2 }
 0xec0   :  { %5245 = vperm.xlu0 %6725, %v5210_v46   ;;  %5248 = vperm.xlu1 %6726, %v5211_v0  }
 0xec3   :  { %v9181_v50 = vpop.permute.xlu1 %5088 }
 0xec4   :  { %5251 = vperm.xlu0 %6725, %v5212_v24   ;;  %5254 = vperm.xlu1 %6726, %v5213_v49   ;;  %v9823_v24 = vld [vmem:[#allocation55_spill] sm:$0xff] }
 0xec5   :  { %vm4945_vm0 = vcmp.eq.s32.totalorder %v9823_v24, 1 }
 0xec7   :  { %v9190_v8 = vpop.permute.xlu0 %5091  ;;  %v9192_v53 = vpop.permute.xlu1 %5094 }
 0xec8   :  { %5257 = vperm.xlu0 %6725, %v5214_v61   ;;  %5260 = vperm.xlu1 %6726, %v5215_v55  }
 0xecb   :  { %v9197_v34 = vpop.permute.xlu0 %5097  ;;  %v9199_v5 = vpop.permute.xlu1 %5100 }
 0xecc   :  { %5263 = vperm.xlu0 %6725, %v5216_v6   ;;  %5314 = vperm.xlu1 %6726, %v5862_v56  }
 0xecf   :  { %v9201_v7 = vpop.permute.xlu0 %5103  ;;  %v9203_v18 = vpop.permute.xlu1 %5218 }
 0xed0   :  { %5317 = vperm.xlu0 %6725, %v5863_v32   ;;  %5320 = vperm.xlu1 %6726, %v5864_v44  }
 0xed3   :  { %v9205_v13 = vpop.permute.xlu0 %5221  ;;  %v9207_v39 = vpop.permute.xlu1 %5224 }
 0xed4   :  { %5323 = vperm.xlu0 %6725, %v5865_v17  }
 0xed7   :  { %v9209_v46 = vpop.permute.xlu0 %5227  ;;  %v9211_v0 = vpop.permute.xlu1 %5230 }
 0xedb   :  { %v9213_v31 = vpop.permute.xlu0 %5233  ;;  %v9215_v47 = vpop.permute.xlu1 %5236 }
 0xedf   :  { %v9218_v49 = vpop.permute.xlu0 %5239 }
 0xef2   :  { %v4818_v54 = vpop.permute.xlu1 %4817 }
 0xef3   :  { %v9221_v61 = vsel %vm4945_vm0, %v4818_v54, %v9069_v4  ;;  %v9824_v4 = vld [vmem:[#allocation56_spill] sm:$0xff]  ;;  %vm4959_vm0 = vcmp.eq.s32.totalorder %v9039_v42, 1  ;;  %v6796_v42 = vld [vmem:[%s9678_s1 + $0x30] sm:$0xff] }
 0xef4   :  { %4977 = vrot.lane.b32.xlu1 %v9221_v61, %s6885_s13  ;;  %vm4948_vm12 = vcmp.eq.s32.totalorder %v9824_v4, 1 }
 0xef6   :  { %v4820_v55 = vpop.permute.xlu0 %4819 }
 0xef7   :  { %v9227_v14 = vsel %vm4946_vm10, %v4820_v55, %v9075_v52  ;;  %vm4960_vm10 = vcmp.eq.s32.totalorder %v9044_v41, 1  ;;  %v6798_v41 = vld [vmem:[%s9678_s1 + $0x40] sm:$0xff] }
 0xef8   :  { %4979 = vrot.lane.b32.xlu0 %v9227_v14, %s6885_s13 }
 0xefa   :  { %v4822_v56 = vpop.permute.xlu1 %4821 }
 0xefb   :  { %v9233_v6 = vsel %vm4947_vm11, %v4822_v56, %v9081_v16  ;;  %v6797_v56 = vld [vmem:[%s9678_s1 + $0x28] sm:$0xff]  ;;  %vm5105_vm11 = vcmp.eq.s32.totalorder %v9046_v29, 1 }
 0xefc   :  { %4981 = vrot.lane.b32.xlu1 %v9233_v6, %s6885_s13  ;;  %v5867_v4 = vadd.s32 4294967168, %v6797_v56 }
 0xefe   :  { %v4824_v28 = vpop.permute.xlu0 %4823 }
 0xeff   :  { %v9239_v11 = vsel %vm4948_vm12, %v4824_v28, %v9087_v48  ;;  %v6799_v28 = vld [vmem:[%s9678_s1 + $0x38] sm:$0xff]  ;;  %vm5106_vm12 = vcmp.eq.s32.totalorder %v9049_v59, 1 }
 0xf00   :  { %4983 = vrot.lane.b32.xlu0 %v9239_v11, %s6885_s13 }
 0xf02   :  { %v4826_v52 = vpop.permute.xlu1 %4825 }
 0xf03   :  { %v9245_v23 = vsel %vm4949_vm13, %v4826_v52, %v9093_v36  ;;  %v9825_v36 = vld [vmem:[#allocation58_spill] sm:$0xff]  ;;  %v5869_v52 = vadd.s32 4294967168, %v6799_v28  ;;  %vm5107_vm13 = vcmp.eq.s32.totalorder %v9051_v3, 1 }
 0xf04   :  { %4985 = vrot.lane.b32.xlu1 %v9245_v23, %s6885_s13  ;;  %vm4952_vm2 = vcmp.eq.s32.totalorder %v9825_v36, 1  ;;  %v6801_v36 = vld [vmem:[%s9678_s1 + $0x48] sm:$0xff] }
 0xf06   :  { %v4828_v16 = vpop.permute.xlu0 %4827 }
 0xf07   :  { %v9251_v32 = vsel %vm4950_vm14, %v4828_v16, %v9099_v26  ;;  %v9826_v26 = vld [vmem:[#allocation60_spill] sm:$0xff]  ;;  %v6800_v16 = vld [vmem:[%s9678_s1 + $0x50] sm:$0xff]  ;;  %vm5108_vm14 = vcmp.eq.s32.totalorder %v9053_v57, 1 }
 0xf08   :  { %4987 = vrot.lane.b32.xlu0 %v9251_v32, %s6885_s13  ;;  %vm4953_vm3 = vcmp.eq.s32.totalorder %v9826_v26, 1  ;;  %v6802_v26 = vld [vmem:[%s9678_s1 + $0x60] sm:$0xff] }
 0xf0a   :  { %v4830_v48 = vpop.permute.xlu1 %4829 }
 0xf0b   :  { %v9257_v58 = vsel %vm4951_vm15, %v4830_v48, %v9105_v45  ;;  %v5872_v48 = vadd.s32 4294967168, %v6800_v16  ;;  %vm5109_vm15 = vcmp.eq.s32.totalorder %v9055_v40, 1 }
 0xf0c   :  { %4989 = vrot.lane.b32.xlu1 %v9257_v58, %s6885_s13 }
 0xf0e   :  { %v4832_v62 = vpop.permute.xlu0 %4831 }
 0xf0f   :  { %v9263_v63 = vsel %vm4952_vm2, %v4832_v62, %v9111_v20  ;;  %v5871_v62 = vadd.s32 4294967168, %v6801_v36  ;;  %vm5110_vm2 = vcmp.eq.s32.totalorder %v9057_v37, 1 }
 0xf10   :  { %4991 = vrot.lane.b32.xlu0 %v9263_v63, %s6885_s13 }
 0xf12   :  { %v4834_v44 = vpop.permute.xlu1 %4833 }
 0xf13   :  { %v9269_v60 = vsel %vm4953_vm3, %v4834_v44, %v9117_v33  ;;  %v9827_v33 = vld [vmem:[#allocation62_spill] sm:$0xff]  ;;  %v5874_v44 = vadd.s32 4294967168, %v6802_v26  ;;  %vm5111_vm3 = vcmp.eq.s32.totalorder %v9059_v10, 1  ;;  %v9833_v26 = vld [vmem:[#allocation53_spill] sm:$0xff] }
 0xf14   :  { %4993 = vrot.lane.b32.xlu1 %v9269_v60, %s6885_s13  ;;  %vm4956_vm6 = vcmp.eq.s32.totalorder %v9827_v33, 1  ;;  %v6804_v33 = vld [vmem:[%s9678_s1 + $0x68] sm:$0xff] }
 0xf16   :  { %v4836_v45 = vpop.permute.xlu0 %4835 }
 0xf17   :  { %v9275_v2 = vsel %vm4954_vm4, %v4836_v45, %v9123_v9  ;;  %v6803_v45 = vld [vmem:[%s9678_s1 + $0x58] sm:$0xff]  ;;  %vm5112_vm4 = vcmp.eq.s32.totalorder %v9061_v51, 1 }
 0xf18   :  { %4995 = vrot.lane.b32.xlu0 %v9275_v2, %s6885_s13 }
 0xf1a   :  { %v4838_v20 = vpop.permute.xlu1 %4837 }
 0xf1b   :  { %v9281_v17 = vsel %vm4955_vm5, %v4838_v20, %v9129_v27  ;;  %v5873_v20 = vadd.s32 4294967168, %v6803_v45  ;;  %vm5113_vm5 = vcmp.eq.s32.totalorder %v9063_v19, 1 }
 0xf1c   :  { %4997 = vrot.lane.b32.xlu1 %v9281_v17, %s6885_s13 }
 0xf1e   :  { %v4840_v24 = vpop.permute.xlu0 %4839 }
 0xf1f   :  { %v9287_v38 = vsel %vm4956_vm6, %v4840_v24, %v9135_v12  ;;  %v5875_v24 = vadd.s32 4294967168, %v6804_v33  ;;  %vm5114_vm6 = vcmp.eq.s32.totalorder %v9066_v21, 1 }
 0xf20   :  { %4999 = vrot.lane.b32.xlu0 %v9287_v38, %s6885_s13 }
 0xf22   :  { %v4842_v9 = vpop.permute.xlu1 %4841 }
 0xf23   :  { %v9293_v43 = vsel %vm4957_vm7, %v4842_v9, %v9141_v22  ;;  %v6795_v22 = vld [vmem:[%s9678_s1 + $0x20] sm:$0xff]  ;;  %vm5115_vm7 = vcmp.eq.s32.totalorder %v9181_v50, 1 }
 0xf24   :  { %5001 = vrot.lane.b32.xlu1 %v9293_v43, %s6885_s13  ;;  %v5866_v55 = vadd.s32 4294967168, %v6795_v22 }
 0xf26   :  { %v4844_v27 = vpop.permute.xlu0 %4843 }
 0xf27   :  { %v9299_v54 = vsel %vm4958_vm8, %v4844_v27, %v9147_v15  ;;  %vm5116_vm8 = vcmp.eq.s32.totalorder %v9190_v8, 1 }
 0xf28   :  { %5003 = vrot.lane.b32.xlu0 %v9299_v54, %s6885_s13 }
 0xf2a   :  { %v4846_v12 = vpop.permute.xlu1 %4845 }
 0xf2b   :  { %v9305_v25 = vsel %vm4959_vm0, %v4846_v12, %v9154_v1  ;;  %v5868_v1 = vadd.s32 4294967168, %v6796_v42  ;;  %vm5117_vm0 = vcmp.eq.s32.totalorder %v9192_v53, 1 }
 0xf2c   :  { %5005 = vrot.lane.b32.xlu1 %v9305_v25, %s6885_s13 }
 0xf2e   :  { %v4848_v35 = vpop.permute.xlu0 %4847 }
 0xf2f   :  { %v9314_v15 = vsel %vm4960_vm10, %v4848_v35, %v9162_v30  ;;  %v5870_v30 = vadd.s32 4294967168, %v6798_v41  ;;  %vm5118_vm10 = vcmp.eq.s32.totalorder %v9197_v34, 1 }
 0xf30   :  { %5007 = vrot.lane.b32.xlu0 %v9314_v15, %s6885_s13  ;;  %5326 = vperm.xlu1 %6726, %v5866_v55  }
 0xf34   :  { %5329 = vperm.xlu0 %6725, %v5867_v4   ;;  %5332 = vperm.xlu1 %6726, %v5868_v1  }
 0xf37   :  { %v9345_v9 = vpop.permute.xlu1 %5242 }
 0xf38   :  { %5335 = vperm.xlu0 %6725, %v5869_v52   ;;  %5338 = vperm.xlu1 %6726, %v5870_v30  }
 0xf3b   :  { %v9347_v27 = vpop.permute.xlu0 %5245  ;;  %v9349_v12 = vpop.permute.xlu1 %5248 }
 0xf3c   :  { %5341 = vperm.xlu0 %6725, %v5871_v62   ;;  %5344 = vperm.xlu1 %6726, %v5872_v48  }
 0xf3f   :  { %v9351_v22 = vpop.permute.xlu0 %5251  ;;  %v9353_v55 = vpop.permute.xlu1 %5254 }
 0xf40   :  { %5347 = vperm.xlu0 %6725, %v5873_v20   ;;  %5350 = vperm.xlu1 %6726, %v5874_v44   ;;  %v9834_v44 = vld [vmem:[#allocation31_spill] sm:$0xff]  ;;  %v9835_v20 = vld [vmem:[#allocation30_spill] sm:$0xff] }
 0xf41   :  { %v3822_v45 = vadd.f32 %v9834_v44, %v9833_v26  ;;  %v9841_v44 = vld [vmem:[#allocation39_spill] sm:$0xff] }
 0xf43   :  { %v9355_v35 = vpop.permute.xlu0 %5257  ;;  %v9357_v42 = vpop.permute.xlu1 %5260  ;;  %v5846_v33 = vmul.f32 -1.442695, %v3822_v45  ;;  %v3857_v45 = vadd.f32 %v9841_v44, %v9833_v26 }
 0xf44   :  { %5353 = vperm.xlu0 %6725, %v5875_v24   ;;  %9828 = vst [vmem:[#allocation63_spill] sm:$0xff] %v9357_v42 }
 0xf45   :  { %6735 = vpow2.f32 %v5846_v33 }
 0xf47   :  { %v9359_v1 = vpop.permute.xlu0 %5263  ;;  %v9361_v56 = vpop.permute.xlu1 %5314 }
 0xf48   :  { %9829 = vst [vmem:[#allocation65_spill] sm:$0xff] %v9359_v1 }
 0xf4b   :  { %v9363_v4 = vpop.permute.xlu0 %5317  ;;  %v9365_v41 = vpop.permute.xlu1 %5320 }
 0xf4f   :  { %v9368_v30 = vpop.permute.xlu0 %5323 }
 0xf66   :  { %v4978_v28 = vpop.permute.xlu1 %4977 }
 0xf67   :  { %v9371_v52 = vsel %vm5105_vm11, %v4978_v28, %v9221_v61  ;;  %vm5119_vm11 = vcmp.eq.s32.totalorder %v9199_v5, 1  ;;  %v6806_v5 = vld [vmem:[%s9678_s1 + $0x78] sm:$0xff] }
 0xf68   :  { %5137 = vrot.lane.b32.xlu1 %v9371_v52, %s6886_s0 }
 0xf6a   :  { %v4980_v16 = vpop.permute.xlu0 %4979 }
 0xf6b   :  { %v9377_v48 = vsel %vm5106_vm12, %v4980_v16, %v9227_v14  ;;  %vm5120_vm12 = vcmp.eq.s32.totalorder %v9201_v7, 1  ;;  %v3827_v7 = vadd.f32 %v9835_v20, %v9833_v26  ;;  %v9837_v16 = vld [vmem:[#allocation33_spill] sm:$0xff] }
 0xf6c   :  { %5139 = vrot.lane.b32.xlu0 %v9377_v48, %s6886_s0 }
 0xf6d   :  { %v5847_v24 = vmul.f32 -1.442695, %v3827_v7 }
 0xf6e   :  { %v4982_v29 = vpop.permute.xlu1 %4981 }
 0xf6f   :  { %v9383_v36 = vsel %vm5107_vm13, %v4982_v29, %v9233_v6  ;;  %6737 = vpow2.f32 %v5847_v24  ;;  %v3837_v29 = vadd.f32 %v9837_v16, %v9833_v26 }
 0xf70   :  { %5141 = vrot.lane.b32.xlu1 %v9383_v36, %s6886_s0 }
 0xf72   :  { %v4984_v61 = vpop.permute.xlu0 %4983 }
 0xf73   :  { %v9389_v59 = vsel %vm5108_vm14, %v4984_v61, %v9239_v11 }
 0xf74   :  { %5143 = vrot.lane.b32.xlu0 %v9389_v59, %s6886_s0 }
 0xf76   :  { %v4986_v14 = vpop.permute.xlu1 %4985 }
 0xf77   :  { %v9395_v3 = vsel %vm5109_vm15, %v4986_v14, %v9245_v23 }
 0xf78   :  { %5145 = vrot.lane.b32.xlu1 %v9395_v3, %s6886_s0 }
 0xf7a   :  { %v4988_v6 = vpop.permute.xlu0 %4987 }
 0xf7b   :  { %v9401_v57 = vsel %vm5110_vm2, %v4988_v6, %v9251_v32  ;;  %v5849_v6 = vmul.f32 -1.442695, %v3837_v29  ;;  %vm5265_vm2 = vcmp.eq.s32.totalorder %v9203_v18, 1 }
 0xf7c   :  { %5147 = vrot.lane.b32.xlu0 %v9401_v57, %s6886_s0 }
 0xf7e   :  { %v4990_v11 = vpop.permute.xlu1 %4989 }
 0xf7f   :  { %v9407_v40 = vsel %vm5111_vm3, %v4990_v11, %v9257_v58  ;;  %v9838_v11 = vld [vmem:[#allocation37_spill] sm:$0xff] }
 0xf80   :  { %5149 = vrot.lane.b32.xlu1 %v9407_v40, %s6886_s0 }
 0xf82   :  { %v4992_v23 = vpop.permute.xlu0 %4991 }
 0xf83   :  { %v9413_v37 = vsel %vm5112_vm4, %v4992_v23, %v9263_v63  ;;  %v3842_v23 = vadd.f32 %v9838_v11, %v9833_v26 }
 0xf84   :  { %5151 = vrot.lane.b32.xlu0 %v9413_v37, %s6886_s0 }
 0xf86   :  { %v4994_v32 = vpop.permute.xlu1 %4993 }
 0xf87   :  { %v9419_v10 = vsel %vm5113_vm5, %v4994_v32, %v9269_v60  ;;  %v9839_v32 = vld [vmem:[#allocation36_spill] sm:$0xff] }
 0xf88   :  { %5153 = vrot.lane.b32.xlu1 %v9419_v10, %s6886_s0 }
 0xf8a   :  { %v4996_v58 = vpop.permute.xlu0 %4995 }
 0xf8b   :  { %v9425_v51 = vsel %vm5114_vm6, %v4996_v58, %v9275_v2  ;;  %v3847_v58 = vadd.f32 %v9839_v32, %v9833_v26 }
 0xf8c   :  { %5155 = vrot.lane.b32.xlu0 %v9425_v51, %s6886_s0 }
 0xf8e   :  { %v4998_v63 = vpop.permute.xlu1 %4997 }
 0xf8f   :  { %v9431_v19 = vsel %vm5115_vm7, %v4998_v63, %v9281_v17  ;;  %vm5266_vm7 = vcmp.eq.s32.totalorder %v9205_v13, 1 }
 0xf90   :  { %5157 = vrot.lane.b32.xlu1 %v9431_v19, %s6886_s0 }
 0xf92   :  { %v5000_v60 = vpop.permute.xlu0 %4999 }
 0xf93   :  { %v9437_v21 = vsel %vm5116_vm8, %v5000_v60, %v9287_v38  ;;  %v5850_v60 = vmul.f32 -1.442695, %v3842_v23  ;;  %v9843_v23 = vld [vmem:[#allocation42_spill] sm:$0xff] }
 0xf94   :  { %5159 = vrot.lane.b32.xlu0 %v9437_v21, %s6886_s0  ;;  %v3867_v32 = vadd.f32 %v9843_v23, %v9833_v26 }
 0xf96   :  { %v5002_v2 = vpop.permute.xlu1 %5001 }
 0xf97   :  { %v9443_v50 = vsel %vm5117_vm0, %v5002_v2, %v9293_v43  ;;  %v6805_v43 = vld [vmem:[%s9678_s1 + $0x70] sm:$0xff]  ;;  %v6736_v2 = vpop.eup %6735  ;;  %s6887_s1 = smov [#allocation7]  }
 0xf98   :  { %5161 = vrot.lane.b32.xlu1 %v9443_v50, %s6886_s0  ;;  %v5876_v62 = vadd.s32 4294967168, %v6805_v43  ;;  %v9840_v43 = vld [vmem:[#allocation40_spill] sm:$0xff]  ;;  %s5510_s12 = sshll.u32 %s6887_s1, 4  ;;  %s5511_s12 = int_to_ptr.vmem [resolvable:$true] %s5510_s12 }
 0xf99   :  { %s6847_s13 = scalar_lea.vmem %s5511_s12, 2048  ;;  %p6852_p11 = scmp.lt.s32.totalorder %s5511_s12, %s5511_s12 }
 0xf9a   :  { %v5004_v17 = vpop.permute.xlu0 %5003  ;;  %p6848_p10 = scmp.ne.s32.totalorder %s5511_s12, %s6847_s13  ;;  %p6853_p12 = scmp.lt.s32.totalorder %s6847_s13, %s6847_s13 }
 0xf9b   :  { %v9449_v8 = vsel %vm5118_vm10, %v5004_v17, %v9299_v54  ;;  %vm5267_vm10 = vcmp.eq.s32.totalorder %v9207_v39, 1 }
 0xf9c   :  { %9830 = vst [vmem:[#allocation67_spill] sm:$0xff] %v9449_v8  ;;  %5163 = vrot.lane.b32.xlu0 %v9449_v8, %s6886_s0  ;;  %v9854_v8 = vld [vmem:[#allocation22_spill] sm:$0xff]  ;;  %p6854_p13 = por %p6853_p12, %p6852_p11 }
 0xf9e   :  { %v5006_v38 = vpop.permute.xlu1 %5005  ;;  %p6855_p0 = pnand %p6854_p13, %p6848_p10 }
 0xf9f   :  { %v9455_v53 = vsel %vm5119_vm11, %v5006_v38, %v9305_v25  ;;  %v5877_v25 = vadd.s32 4294967168, %v6806_v5  ;;  %v5851_v38 = vmul.f32 -1.442695, %v3847_v58  ;;  %v6738_v5 = vpop.eup %6737 }
 0xfa0   :  { %9831 = vst [vmem:[#allocation69_spill] sm:$0xff] %v9455_v53  ;;  %5165 = vrot.lane.b32.xlu1 %v9455_v53, %s6886_s0  ;;  %v3949_v33 = vadd.f32 1.0, %v6738_v5 }
 0xfa2   :  { %v5008_v34 = vpop.permute.xlu0 %5007 }
 0xfa3   :  { %v9464_v54 = vsel %vm5120_vm12, %v5008_v34, %v9314_v15  ;;  %v9836_v15 = vld [vmem:[#allocation34_spill] sm:$0xff]  ;;  %v3948_v34 = vadd.f32 1.0, %v6736_v2 }
 0xfa4   :  { %9832 = vst [vmem:[#allocation70_spill] sm:$0xff] %v9464_v54  ;;  %5167 = vrot.lane.b32.xlu0 %v9464_v54, %s6886_s0  ;;  %5356 = vperm.xlu1 %6726, %v5876_v62   ;;  %v3832_v28 = vadd.f32 %v9836_v15, %v9833_v26  ;;  %v3852_v62 = vadd.f32 %v9840_v43, %v9833_v26  ;;  %v5853_v15 = vmul.f32 -1.442695, %v3857_v45  ;;  %v9844_v43 = vld [vmem:[#allocation48_spill] sm:$0xff] }
 0xfa6   :  { %v5848_v61 = vmul.f32 -1.442695, %v3832_v28  ;;  %v5852_v20 = vmul.f32 -1.442695, %v3852_v62  ;;  %v9842_v28 = vld [vmem:[#allocation44_spill] sm:$0xff]  ;;  %v3872_v62 = vadd.f32 %v9844_v43, %v9833_v26 }
 0xfa7   :  { %v3862_v16 = vadd.f32 %v9842_v28, %v9833_v26  ;;  %v9847_v28 = vld [vmem:[#allocation11_spill] sm:$0xff] }
 0xfa8   :  { %5359 = vperm.xlu0 %6725, %v5877_v25   ;;  %6739 = vpow2.f32 %v5848_v61  ;;  %vm5361_vm13 = vcmp.gt.s32.totalorder %v9847_v28, %v9361_v56  ;;  %vm5362_vm5 = vcmp.gt.s32.totalorder %v9847_v28, %v9363_v4  ;;  %vm4065_vm6 = vcmp.le.s32.totalorder %v9847_v28, %v9854_v8 }
 0xfa9   :  { %6741 = vpow2.f32 %v5849_v6  ;;  %v5854_v58 = vmul.f32 -1.442695, %v3862_v16  ;;  %v9848_v16 = vld [vmem:[#allocation12_spill] sm:$0xff]  ;;  %vm5363_vm0 = vcmp.gt.s32.totalorder %v9847_v28, %v9365_v41  ;;  %vm5364_vm12 = vcmp.gt.s32.totalorder %v9847_v28, %v9368_v30 }
 0xfaa   :  { %6743 = vpow2.f32 %v5850_v60  ;;  %vm4062_vm14 = vcmp.le.s32.totalorder %v9847_v28, %v9848_v16 }
 0xfab   :  { %v9479_v14 = vpop.permute.xlu1 %5326  ;;  %6745 = vpow2.f32 %v5851_v38  ;;  %vm5377_vm4 = vmand %vm4062_vm14, %vm5361_vm13  ;;  %vm5268_vm13 = vcmp.eq.s32.totalorder %v9209_v46, 1 }
 0xfac   :  { %6747 = vrcp.f32 %v3948_v34  ;;  %v5855_v34 = vmul.f32 -1.442695, %v3867_v32  ;;  %v9850_v32 = vld [vmem:[#allocation46_spill] sm:$0xff] }
 0xfad   :  { %6749 = vpow2.f32 %v5852_v20 }
 0xfae   :  { %6751 = vrcp.f32 %v3949_v33  ;;  %v9845_v33 = vld [vmem:[#allocation71_spill] sm:$0xff] }
 0xfaf   :  { %v9485_v63 = vpop.permute.xlu0 %5329  ;;  %v9487_v17 = vpop.permute.xlu1 %5332  ;;  %6753 = vpow2.f32 %v5853_v15 }
 0xfb3   :  { %v9491_v25 = vpop.permute.xlu0 %5335  ;;  %v9495_v7 = vpop.permute.xlu1 %5338 }
 0xfb5   :  { %v6740_v24 = vpop.eup %6739 }
 0xfb6   :  { %v3950_v61 = vadd.f32 1.0, %v6740_v24  ;;  %v6742_v6 = vpop.eup %6741  ;;  %v9846_v24 = vld [vmem:[#allocation29_spill] sm:$0xff] }
 0xfb7   :  { %v9499_v29 = vpop.permute.xlu0 %5341  ;;  %v9501_v11 = vpop.permute.xlu1 %5344  ;;  %v3951_v60 = vadd.f32 1.0, %v6742_v6  ;;  %v3661_v15 = vadd.f32 %v9846_v24, %v9845_v33  ;;  %v5856_v6 = vmul.f32 -1.442695, %v3872_v62  ;;  %v9851_v24 = vld [vmem:[#allocation21_spill] sm:$0xff] }
 0xfb8   :  { %6755 = vrcp.f32 %v3950_v61  ;;  %v6744_v2 = vpop.eup %6743  ;;  %v9849_v61 = vld [vmem:[#allocation13_spill] sm:$0xff]  ;;  %vm4064_vm3 = vcmp.le.s32.totalorder %v9847_v28, %v9851_v24 }
 0xfb9   :  { %6757 = vpow2.f32 %v5854_v58  ;;  %v6746_v44 = vpop.eup %6745  ;;  %v3952_v45 = vadd.f32 1.0, %v6744_v2  ;;  %vm4063_vm15 = vcmp.le.s32.totalorder %v9847_v28, %v9849_v61  ;;  %v3877_v58 = vadd.f32 %v9850_v32, %v9833_v26  ;;  %vm5379_vm11 = vmand %vm4064_vm3, %vm5363_vm0 }
 0xfba   :  { %6759 = vrcp.f32 %v3951_v60  ;;  %v6748_v20 = vpop.eup %6747  ;;  %v3953_v23 = vadd.f32 1.0, %v6746_v44  ;;  %v4078_v18 = vsel %vm4062_vm14, %v3661_v15, 0.0  ;;  %v9852_v44 = vld [vmem:[#allocation32_spill] sm:$0xff]  ;;  %vm5378_vm8 = vmand %vm4063_vm15, %vm5362_vm5  ;;  %vm5366_vm5 = vcmp.gt.s32.totalorder %v9847_v28, %v9485_v63 }
 0xfbb   :  { %v9505_v38 = vpop.permute.xlu0 %5347  ;;  %v9509_v5 = vpop.permute.xlu1 %5350  ;;  %6761 = vpow2.f32 %v5855_v34  ;;  %v5425_v56 = vsub.f32 1.0, %v6748_v20  ;;  %v3667_v32 = vadd.f32 %v9852_v44, %v9845_v33  ;;  %v5409_v53 = vmul.f32 %v6748_v20, %v4078_v18  ;;  %vm5380_vm14 = vmand %vm4065_vm6, %vm5364_vm12 }
 0xfbc   :  { %v6750_v43 = vpop.eup %6749  ;;  %6763 = vrcp.f32 %v3952_v45  ;;  %v9853_v45 = vld [vmem:[#allocation52_spill] sm:$0xff]  ;;  %vm5367_vm0 = vcmp.gt.s32.totalorder %v9847_v28, %v9487_v17 }
 0xfbd   :  { %v6752_v34 = vpop.eup %6751  ;;  %6765 = vpow2.f32 %v5856_v6  ;;  %v3882_v1 = vadd.f32 %v9853_v45, %v9833_v26 }
 0xfbe   :  { %6767 = vrcp.f32 %v3953_v23  ;;  %v6754_v16 = vpop.eup %6753  ;;  %v5426_v6 = vsub.f32 1.0, %v6752_v34  ;;  %v9855_v23 = vld [vmem:[#allocation35_spill] sm:$0xff] }
 0xfbf   :  { %v9522_v60 = vpop.permute.xlu0 %5353 }
 0xfc5   :  { %v6756_v20 = vpop.eup %6755 }
 0xfda   :  { %v5138_v2 = vpop.permute.xlu1 %5137 }
 0xfdb   :  { %v5281_v62 = vsel %vm5265_vm2, %v5138_v2, %v9371_v52  ;;  %v5857_v52 = vmul.f32 -1.442695, %v3877_v58  ;;  %v3954_v2 = vadd.f32 1.0, %v6750_v43  ;;  %v3673_v58 = vadd.f32 %v9855_v23, %v9845_v33 }
 0xfdc   :  { %v5393_v54 = vsel %vm5377_vm4, %v5281_v62, 0.0 }
 0xfdd   :  { %v5441_v42 = vmul.f32 %v5425_v56, %v5393_v54  ;;  %v4079_v54 = vsel %vm4063_vm15, %v3667_v32, 0.0  ;;  %v5858_v56 = vmul.f32 -1.442695, %v3882_v1  ;;  %6769 = vpow2.f32 %v5857_v52  ;;  %v6758_v32 = vpop.eup %6757 }
 0xfde   :  { %v5140_v15 = vpop.permute.xlu0 %5139  ;;  %v5410_v43 = vmul.f32 %v6752_v34, %v4079_v54  ;;  %6771 = vrcp.f32 %v3954_v2  ;;  %v5427_v34 = vsub.f32 1.0, %v6756_v20  ;;  %v6760_v45 = vpop.eup %6759  ;;  %v4080_v52 = vsel %vm4064_vm3, %v3673_v58, 0.0 }
 0xfdf   :  { %v5457_v4 = vadd.f32 %v5441_v42, %v5409_v53  ;;  %v5282_v62 = vsel %vm5266_vm7, %v5140_v15, %v9377_v48  ;;  %v3955_v42 = vadd.f32 1.0, %v6754_v16  ;;  %v9856_v48 = vld [vmem:[#allocation51_spill] sm:$0xff]  ;;  %v5411_v16 = vmul.f32 %v6756_v20, %v4080_v52 }
 0xfe0   :  { %v5394_v13 = vsel %vm5378_vm8, %v5282_v62, 0.0  ;;  %v3887_v53 = vadd.f32 %v9856_v48, %v9833_v26  ;;  %v9857_v26 = vld [vmem:[#allocation38_spill] sm:$0xff]  ;;  %6773 = vpow2.f32 %v5858_v56  ;;  %v6762_v62 = vpop.eup %6761  ;;  %v3956_v54 = vadd.f32 1.0, %v6758_v32 }
 0xfe1   :  { %v5473_v18 = vmax.f32 %v5457_v4, 0.0  ;;  %v5442_v44 = vmul.f32 %v5426_v6, %v5394_v13  ;;  %v3679_v39 = vadd.f32 %v9857_v26, %v9845_v33  ;;  %6775 = vrcp.f32 %v3955_v42  ;;  %v6764_v20 = vpop.eup %6763  ;;  %v9858_v13 = vld [vmem:[#allocation41_spill] sm:$0xff]  ;;  %v9859_v48 = vld [vmem:[#allocation14_spill] sm:$0xff] }
 0xfe2   :  { %v5142_v61 = vpop.permute.xlu1 %5141  ;;  %v5859_v6 = vmul.f32 -1.442695, %v3887_v53  ;;  %v5428_v23 = vsub.f32 1.0, %v6760_v45  ;;  %v3685_v46 = vadd.f32 %v9858_v13, %v9845_v33  ;;  %vm5365_vm15 = vcmp.gt.s32.totalorder %v9847_v28, %v9479_v14  ;;  %v6766_v42 = vpop.eup %6765 }
 0xfe3   :  { %5489 = vst [vmem:[#allocation7] sm:$0xff] %v5473_v18  ;;  %v5458_v41 = vadd.f32 %v5442_v44, %v5410_v43  ;;  %v5283_v1 = vsel %vm5267_vm10, %v5142_v61, %v9383_v36  ;;  %v4081_v58 = vsel %vm4065_vm6, %v3679_v39, 0.0  ;;  %vm4066_vm2 = vcmp.le.s32.totalorder %v9847_v28, %v9859_v48  ;;  %v6768_v53 = vpop.eup %6767  ;;  %v9861_v39 = vld [vmem:[#allocation23_spill] sm:$0xff] }
 0xfe4   :  { %v5395_v15 = vsel %vm5379_vm11, %v5283_v1, 0.0  ;;  %v5412_v56 = vmul.f32 %v6760_v45, %v4081_v58  ;;  %6777 = vpow2.f32 %v5859_v6  ;;  %vm5269_vm3 = vcmp.eq.s32.totalorder %v9211_v0, 1  ;;  %vm5381_vm4 = vmand %vm4066_vm2, %vm5365_vm15  ;;  %v9863_v58 = vld [vmem:[#allocation15_spill] sm:$0xff] }
 0xfe5   :  { %v5474_v2 = vmax.f32 %v5458_v41, 0.0  ;;  %v5443_v4 = vmul.f32 %v5427_v34, %v5395_v15  ;;  %6779 = vrcp.f32 %v3956_v54  ;;  %v5429_v32 = vsub.f32 1.0, %v6764_v20  ;;  %v9860_v34 = vld [vmem:[#allocation45_spill] sm:$0xff] }
 0xfe6   :  { %v5144_v36 = vpop.permute.xlu0 %5143  ;;  %v4082_v41 = vsel %vm4066_vm2, %v3685_v46, 0.0  ;;  %v3691_v1 = vadd.f32 %v9860_v34, %v9845_v33  ;;  %vm4067_vm6 = vcmp.le.s32.totalorder %v9847_v28, %v9861_v39  ;;  %vm5270_vm7 = vcmp.eq.s32.totalorder %v9213_v31, 1 }
 0xfe7   :  { %5490 = vst [vmem:[#allocation7 + $0x8] sm:$0xff] %v5474_v2  ;;  %v5459_v24 = vadd.f32 %v5443_v4, %v5411_v16  ;;  %v5284_v30 = vsel %vm5268_vm13, %v5144_v36, %v9389_v59  ;;  %v3957_v59 = vadd.f32 1.0, %v6762_v62  ;;  %v5413_v52 = vmul.f32 %v6764_v20, %v4082_v41  ;;  %vm5382_vm8 = vmand %vm4067_vm6, %vm5366_vm5  ;;  %v9862_v62 = vld [vmem:[#allocation49_spill] sm:$0xff] }
 0xfe8   :  { %v5396_v43 = vsel %vm5380_vm14, %v5284_v30, 0.0  ;;  %v5430_v4 = vsub.f32 1.0, %v6768_v53  ;;  %v4083_v36 = vsel %vm4067_vm6, %v3691_v1, 0.0  ;;  %v3697_v54 = vadd.f32 %v9862_v62, %v9845_v33 }
 0xfe9   :  { %v5475_v18 = vmax.f32 %v5459_v24, 0.0  ;;  %v5444_v44 = vmul.f32 %v5428_v23, %v5396_v43  ;;  %6781 = vrcp.f32 %v3957_v59  ;;  %v5414_v23 = vmul.f32 %v6768_v53, %v4083_v36  ;;  %v9865_v53 = vld [vmem:[#allocation24_spill] sm:$0xff] }
 0xfea   :  { %v5146_v8 = vpop.permute.xlu1 %5145  ;;  %v6770_v16 = vpop.eup %6769  ;;  %vm4068_vm10 = vcmp.le.s32.totalorder %v9847_v28, %v9863_v58  ;;  %vm5271_vm11 = vcmp.eq.s32.totalorder %v9215_v47, 1  ;;  %vm5368_vm13 = vcmp.gt.s32.totalorder %v9847_v28, %v9491_v25  ;;  %vm4069_vm14 = vcmp.le.s32.totalorder %v9847_v28, %v9865_v53 }
 0xfeb   :  { %5491 = vst [vmem:[#allocation7 + $0x10] sm:$0xff] %v5475_v18  ;;  %v5460_v61 = vadd.f32 %v5444_v44, %v5412_v56  ;;  %v5285_v14 = vsel %vm5269_vm3, %v5146_v8, %v9395_v3  ;;  %v3958_v3 = vadd.f32 1.0, %v6766_v42  ;;  %v6772_v63 = vpop.eup %6771  ;;  %v3959_v13 = vadd.f32 1.0, %v6770_v16  ;;  %vm5383_vm12 = vmand %vm4068_vm10, %vm5367_vm0  ;;  %v9864_v44 = vld [vmem:[#allocation54_spill] sm:$0xff] }
 0xfec   :  { %v5397_v45 = vsel %vm5381_vm4, %v5285_v14, 0.0  ;;  %v5431_v56 = vsub.f32 1.0, %v6772_v63  ;;  %v4084_v18 = vsel %vm4068_vm10, %v3697_v54, 0.0  ;;  %v3703_v42 = vadd.f32 %v9864_v44, %v9845_v33  ;;  %vm5384_vm2 = vmand %vm4069_vm14, %vm5368_vm13 }
 0xfed   :  { %v5476_v26 = vmax.f32 %v5460_v61, 0.0  ;;  %v5445_v0 = vmul.f32 %v5429_v32, %v5397_v45  ;;  %v6774_v20 = vpop.eup %6773  ;;  %6783 = vrcp.f32 %v3958_v3  ;;  %v5415_v59 = vmul.f32 %v6772_v63, %v4084_v18  ;;  %v9866_v45 = vld [vmem:[#allocation57_spill] sm:$0xff]  ;;  %v9868_v63 = vld [vmem:[#allocation59_spill] sm:$0xff] }
 0xfee   :  { %v5148_v15 = vpop.permute.xlu0 %5147  ;;  %v6776_v46 = vpop.eup %6775  ;;  %6785 = vrcp.f32 %v3959_v13  ;;  %vm5272_vm15 = vcmp.eq.s32.totalorder %v9218_v49, 1  ;;  %v4085_v1 = vsel %vm4069_vm14, %v3703_v42, 0.0  ;;  %vm5369_vm3 = vcmp.gt.s32.totalorder %v9847_v28, %v9495_v7 }
 0xfef   :  { %5492 = vst [vmem:[#allocation7 + $0x18] sm:$0xff] %v5476_v26  ;;  %v5461_v2 = vadd.f32 %v5445_v0, %v5413_v52  ;;  %v5286_v6 = vsel %vm5270_vm7, %v5148_v15, %v9401_v57  ;;  %v5432_v41 = vsub.f32 1.0, %v6776_v46  ;;  %v3709_v52 = vadd.f32 %v9866_v45, %v9845_v33  ;;  %v9867_v15 = vld [vmem:[#allocation16_spill] sm:$0xff] }
 0xff0   :  { %v5398_v24 = vsel %vm5382_vm8, %v5286_v6, 0.0  ;;  %v5416_v0 = vmul.f32 %v6776_v46, %v4085_v1  ;;  %vm4070_vm4 = vcmp.le.s32.totalorder %v9847_v28, %v9867_v15  ;;  %vm5273_vm5 = vcmp.eq.s32.totalorder %v9345_v9, 1 }
 0xff1   :  { %v5477_v31 = vmax.f32 %v5461_v2, 0.0  ;;  %v5446_v30 = vmul.f32 %v5430_v4, %v5398_v24  ;;  %v6778_v32 = vpop.eup %6777  ;;  %vm5385_vm6 = vmand %vm4070_vm4, %vm5369_vm3  ;;  %v4086_v7 = vsel %vm4070_vm4, %v3709_v52, 0.0  ;;  %v3715_v36 = vadd.f32 %v9868_v63, %v9845_v33 }
 0xff2   :  { %v5150_v57 = vpop.permute.xlu1 %5149  ;;  %v6780_v25 = vpop.eup %6779  ;;  %v3961_v16 = vadd.f32 1.0, %v6778_v32  ;;  %vm5370_vm7 = vcmp.gt.s32.totalorder %v9847_v28, %v9499_v29  ;;  %vm5274_vm0 = vcmp.eq.s32.totalorder %v9347_v27, 1  ;;  %v9870_v29 = vld [vmem:[#allocation61_spill] sm:$0xff]  ;;  %vm5275_vm13 = vcmp.eq.s32.totalorder %v9349_v12, 1  ;;  %v9873_v12 = vld [vmem:[#allocation26_spill] sm:$0xff] }
 0xff3   :  { %5493 = vst [vmem:[#allocation7 + $0x20] sm:$0xff] %v5477_v31  ;;  %v5462_v43 = vadd.f32 %v5446_v30, %v5414_v23  ;;  %v5287_v17 = vsel %vm5271_vm11, %v5150_v57, %v9407_v40  ;;  %v3960_v40 = vadd.f32 1.0, %v6774_v20  ;;  %v5433_v4 = vsub.f32 1.0, %v6780_v25  ;;  %v9869_v23 = vld [vmem:[#allocation25_spill] sm:$0xff] }
 0xff4   :  { %v5399_v48 = vsel %vm5383_vm12, %v5287_v17, 0.0  ;;  %v5417_v54 = vmul.f32 %v6780_v25, %v4086_v7  ;;  %vm4071_vm8 = vcmp.le.s32.totalorder %v9847_v28, %v9869_v23  ;;  %v3721_v57 = vadd.f32 %v9870_v29, %v9845_v33  ;;  %v9871_v17 = vld [vmem:[#allocation17_spill] sm:$0xff] }
 0xff5   :  { %v5478_v8 = vmax.f32 %v5462_v43, 0.0  ;;  %v5447_v47 = vmul.f32 %v5431_v56, %v5399_v48  ;;  %6787 = vrcp.f32 %v3960_v40  ;;  %vm5386_vm10 = vmand %vm4071_vm8, %vm5370_vm7  ;;  %v4087_v13 = vsel %vm4071_vm8, %v3715_v36, 0.0 }
 0xff6   :  { %v5152_v61 = vpop.permute.xlu0 %5151  ;;  %6789 = vrcp.f32 %v3961_v16  ;;  %vm5371_vm11 = vcmp.gt.s32.totalorder %v9847_v28, %v9501_v11  ;;  %vm4072_vm12 = vcmp.le.s32.totalorder %v9847_v28, %v9871_v17  ;;  %v9872_v11 = vld [vmem:[#allocation64_spill] sm:$0xff]  ;;  %vm5276_vm3 = vcmp.eq.s32.totalorder %v9351_v22, 1  ;;  %v9875_v22 = vld [vmem:[#allocation18_spill] sm:$0xff] }
 0xff7   :  { %5494 = vst [vmem:[#allocation7 + $0x28] sm:$0xff] %v5478_v8  ;;  %v5463_v14 = vadd.f32 %v5447_v47, %v5415_v59  ;;  %v5288_v34 = vsel %vm5272_vm15, %v5152_v61, %v9413_v37  ;;  %v6782_v37 = vpop.eup %6781  ;;  %vm5387_vm14 = vmand %vm4072_vm12, %vm5371_vm11  ;;  %v4088_v59 = vsel %vm4072_vm12, %v3721_v57, 0.0  ;;  %v3727_v8 = vadd.f32 %v9872_v11, %v9845_v33  ;;  %v9881_v57 = vld [vmem:[#allocation77_spill] sm:$0xff] }
 0xff8   :  { %v5400_v26 = vsel %vm5384_vm2, %v5288_v34, 0.0  ;;  %v5434_v30 = vsub.f32 1.0, %v6782_v37  ;;  %v5418_v43 = vmul.f32 %v6782_v37, %v4087_v13  ;;  %vm5372_vm15 = vcmp.gt.s32.totalorder %v9847_v28, %v9505_v38  ;;  %v9874_v38 = vld [vmem:[#allocation66_spill] sm:$0xff]  ;;  %v9880_v13 = vld [vmem:[#allocation69_spill] sm:$0xff] }
 0xff9   :  { %v5479_v49 = vmax.f32 %v5463_v14, 0.0  ;;  %v5448_v39 = vmul.f32 %v5432_v41, %v5400_v26  ;;  %vm4073_vm2 = vcmp.le.s32.totalorder %v9847_v28, %v9873_v12  ;;  %v3733_v1 = vadd.f32 %v9874_v38, %v9845_v33 }
 0xffa   :  { %v5154_v3 = vpop.permute.xlu1 %5153  ;;  %v6784_v58 = vpop.eup %6783  ;;  %vm5388_vm4 = vmand %vm4073_vm2, %vm5372_vm15  ;;  %v4089_v25 = vsel %vm4073_vm2, %v3727_v8, 0.0  ;;  %vm5277_vm7 = vcmp.eq.s32.totalorder %v9353_v55, 1  ;;  %v9877_v55 = vld [vmem:[#allocation27_spill] sm:$0xff]  ;;  %vm5278_vm11 = vcmp.eq.s32.totalorder %v9355_v35, 1 }
 0xffb   :  { %5495 = vst [vmem:[#allocation7 + $0x30] sm:$0xff] %v5479_v49  ;;  %v5464_v2 = vadd.f32 %v5448_v39, %v5416_v0  ;;  %v5289_v6 = vsel %vm5273_vm5, %v5154_v3, %v9419_v10  ;;  %v6786_v44 = vpop.eup %6785  ;;  %v5435_v42 = vsub.f32 1.0, %v6784_v58  ;;  %v5419_v53 = vmul.f32 %v6784_v58, %v4088_v59  ;;  %v9879_v35 = vld [vmem:[#allocation63_spill] sm:$0xff]  ;;  %v9886_v59 = vld [vmem:[#allocation74_spill] sm:$0xff] }
 0xffc   :  { %v5401_v62 = vsel %vm5385_vm6, %v5289_v6, 0.0  ;;  %v5436_v14 = vsub.f32 1.0, %v6786_v44  ;;  %vm5373_vm5 = vcmp.gt.s32.totalorder %v9847_v28, %v9509_v5  ;;  %v5420_v52 = vmul.f32 %v6786_v44, %v4089_v25  ;;  %v9876_v5 = vld [vmem:[#allocation68_spill] sm:$0xff]  ;;  %v9884_v44 = vld [vmem:[#allocation70_spill] sm:$0xff] }
 0xffd   :  { %v5480_v24 = vmax.f32 %v5464_v2, 0.0  ;;  %v5449_v9 = vmul.f32 %v5433_v4, %v5401_v62  ;;  %vm4074_vm6 = vcmp.le.s32.totalorder %v9847_v28, %v9875_v22  ;;  %v3739_v37 = vadd.f32 %v9876_v5, %v9845_v33  ;;  %v9878_v62 = vld [vmem:[#allocation67_spill] sm:$0xff] }
 0xffe   :  { %v5156_v31 = vpop.permute.xlu0 %5155  ;;  %vm5389_vm8 = vmand %vm4074_vm6, %vm5373_vm5  ;;  %v4090_v3 = vsel %vm4074_vm6, %v3733_v1, 0.0  ;;  %v5440_v11 = vsub.f32 1.0, %v9886_v59 }
 0xfff   :  { %5496 = vst [vmem:[#allocation7 + $0x38] sm:$0xff] %v5480_v24  ;;  %v5465_v10 = vadd.f32 %v5449_v9, %v5417_v54  ;;  %v5290_v20 = vsel %vm5274_vm0, %v5156_v31, %v9425_v51  ;;  %vm5374_vm0 = vcmp.gt.s32.totalorder %v9847_v28, %v9522_v60 }
0x1000   :  { %v5402_v46 = vsel %vm5386_vm10, %v5290_v20, 0.0  ;;  %vm4075_vm10 = vcmp.le.s32.totalorder %v9847_v28, %v9877_v55 }
0x1001   :  { %v5481_v56 = vmax.f32 %v5465_v10, 0.0  ;;  %v5450_v27 = vmul.f32 %v5434_v30, %v5402_v46  ;;  %vm5390_vm12 = vmand %vm4075_vm10, %vm5374_vm0  ;;  %v4091_v33 = vsel %vm4075_vm10, %v3739_v37, 0.0  ;;  %v5439_v46 = vsub.f32 1.0, %v9881_v57 }
0x1002   :  { %v5158_v18 = vpop.permute.xlu1 %5157  ;;  %v6788_v34 = vpop.eup %6787 }
0x1003   :  { %5497 = vst [vmem:[#allocation7 + $0x40] sm:$0xff] %v5481_v56  ;;  %v5466_v51 = vadd.f32 %v5450_v27, %v5418_v43  ;;  %v5291_v48 = vsel %vm5275_vm13, %v5158_v18, %v9431_v19  ;;  %v5437_v39 = vsub.f32 1.0, %v6788_v34  ;;  %v6790_v16 = vpop.eup %6789  ;;  %v5421_v4 = vmul.f32 %v6788_v34, %v4090_v3  ;;  %v9883_v18 = vld [vmem:[#allocation65_spill] sm:$0xff] }
0x1004   :  { %v5403_v47 = vsel %vm5387_vm14, %v5291_v48, 0.0  ;;  %v5438_v36 = vsub.f32 1.0, %v6790_v16  ;;  %v5422_v9 = vmul.f32 %v6790_v16, %v4091_v33  ;;  %vm5279_vm13 = vcmp.eq.s32.totalorder %v9879_v35, 1 }
0x1005   :  { %v5482_v61 = vmax.f32 %v5466_v51, 0.0  ;;  %v5451_v32 = vmul.f32 %v5435_v42, %v5403_v47  ;;  %vm5280_vm2 = vcmp.eq.s32.totalorder %v9883_v18, 1  ;;  %v9885_v42 = vld [vmem:[#allocation78_spill] sm:$0xff] }
0x1006   :  { %v5160_v40 = vpop.permute.xlu0 %5159 }
0x1007   :  { %5498 = vst [vmem:[#allocation7 + $0x48] sm:$0xff] %v5482_v61  ;;  %v5467_v19 = vadd.f32 %v5451_v32, %v5419_v53  ;;  %v5292_v41 = vsel %vm5276_vm3, %v5160_v40, %v9437_v21  ;;  %v9888_v32 = vld [vmem:[#allocation76_spill] sm:$0xff] }
0x1008   :  { %v5404_v45 = vsel %vm5388_vm4, %v5292_v41, 0.0 }
0x1009   :  { %v5483_v26 = vmax.f32 %v5467_v19, 0.0  ;;  %v5452_v0 = vmul.f32 %v5436_v14, %v5404_v45 }
0x100a   :  { %v5162_v49 = vpop.permute.xlu1 %5161 }
0x100b   :  { %5499 = vst [vmem:[#allocation7 + $0x50] sm:$0xff] %v5483_v26  ;;  %v5468_v21 = vadd.f32 %v5452_v0, %v5420_v52  ;;  %v5293_v15 = vsel %vm5277_vm7, %v5162_v49, %v9443_v50 }
0x100c   :  { %v5405_v2 = vsel %vm5389_vm8, %v5293_v15, 0.0 }
0x100d   :  { %v5484_v6 = vmax.f32 %v5468_v21, 0.0  ;;  %v5453_v7 = vmul.f32 %v5437_v39, %v5405_v2 }
0x100e   :  { %v5164_v63 = vpop.permute.xlu0 %5163 }
0x100f   :  { %5500 = vst [vmem:[#allocation7 + $0x58] sm:$0xff] %v5484_v6  ;;  %v5469_v50 = vadd.f32 %v5453_v7, %v5421_v4  ;;  %v5294_v54 = vsel %vm5278_vm11, %v5164_v63, %v9878_v62 }
0x1010   :  { %v5406_v24 = vsel %vm5390_vm12, %v5294_v54, 0.0 }
0x1011   :  { %v5485_v60 = vmax.f32 %v5469_v50, 0.0  ;;  %v5454_v23 = vmul.f32 %v5438_v36, %v5406_v24 }
0x1012   :  { %v5166_v30 = vpop.permute.xlu1 %5165 }
0x1013   :  { %5501 = vst [vmem:[#allocation7 + $0x60] sm:$0xff] %v5485_v60  ;;  %v5470_v31 = vadd.f32 %v5454_v23, %v5422_v9  ;;  %v5295_v29 = vsel %vm5279_vm13, %v5166_v30, %v9880_v13 }
0x1015   :  { %v5486_v10 = vmax.f32 %v5470_v31, 0.0 }
0x1016   :  { %v5168_v20 = vpop.permute.xlu0 %5167 }
0x1017   :  { %5502 = vst [vmem:[#allocation7 + $0x68] sm:$0xff] %v5486_v10  ;;  %v5296_v51 = vsel %vm5280_vm2, %v5168_v20, %v9884_v44 }
0x101f   :  { %v5357_v58 = vpop.permute.xlu1 %5356 }
0x1020   :  { %vm5375_vm14 = vcmp.gt.s32.totalorder %v9847_v28, %v5357_v58 }
0x1021   :  { %vm5391_vm15 = vmand %vm4076_vm9, %vm5375_vm14 }
0x1022   :  { %v5407_v56 = vsel %vm5391_vm15, %v5295_v29, 0.0 }
0x1023   :  { %v5455_v27 = vmul.f32 %v5439_v46, %v5407_v56  ;;  %v5360_v17 = vpop.permute.xlu0 %5359 }
0x1024   :  { %vm5376_vm3 = vcmp.gt.s32.totalorder %v9847_v28, %v5360_v17 }
0x1025   :  { %v5471_v48 = vadd.f32 %v5455_v27, %v9885_v42  ;;  %vm5392_vm4 = vmand %vm4077_vm1, %vm5376_vm3 }
0x1026   :  { %v5408_v47 = vsel %vm5392_vm4, %v5296_v51, 0.0 }
0x1027   :  { %v5487_v53 = vmax.f32 %v5471_v48, 0.0  ;;  %v5456_v61 = vmul.f32 %v5440_v11, %v5408_v47 }
0x1029   :  { %5503 = vst [vmem:[#allocation7 + $0x70] sm:$0xff] %v5487_v53  ;;  %v5472_v12 = vadd.f32 %v5456_v61, %v9888_v32 }
0x102b   :  { %v5488_v40 = vmax.f32 %v5472_v12, 0.0 }
0x102d   :  { %5504 = vst [vmem:[#allocation7 + $0x78] sm:$0xff] %v5488_v40 }
0x102e   :  { %6858 = shalt.err (!%p6855_p0)
}
0x102f   :  { %5516 = dma.vmem_to_hbm [thread:$0]  %s5511_s12, 2048, %s9687_s10, [#allocation4], %s6874_s16, %s6874_s16, %s6875_s17  }
0x1030   :  { %6871 = dma.done.wait [#allocation4], 2048  }
0x1031   :  { %6872 = vsyncadd [#allocation4], 4294965248 }
0x1032   :  { %5520 = vsyncpa [#allocation3], 1 }
0x1033   :  { %5521 = vsyncpa [#allocation6], 1 }
0x1034   :  { %5522 = vsyncpa [#allocation4], 1 }

</bundles_post_ra>
